<compile_context>
chip_gen: v6e
topology: v6e:2x2x1
jax: 0.10.0
libtpu: 0.0.40
codegen_flags: <defaults>
</compile_context>

<pallas_src>
import numpy as np
import jax
import jax.numpy as jnp
from jax.experimental import pallas as pl
from jax.experimental.pallas import tpu as pltpu

N_BATCH = 2
NC = 3            # input image channels (DCGAN `nc`)
NC_PAD = 4        # zero-padded channel count (lane alignment)
NDF = 8           # discriminator base width (`ndf`), small for the demo
IMG = 64          # DCGAN discriminator requires 64x64 inputs
LRELU_SLOPE = 0.2
BN_EPS = 1e-5


# ---------------------------------------------------------------------------
# The single fused Pallas kernel
# ---------------------------------------------------------------------------
def _disc_kernel(x1_ref,
                 t1_ref, t2_ref, t3_ref, t4_ref,
                 wb1_ref, wb2_ref, wb3_ref, wb4_ref,
                 gb2_ref, r2_ref, e2_ref,
                 gb3_ref, r3_ref, e3_ref,
                 gb4_ref, r4_ref, e4_ref,
                 w5_ref, gsel_ref,
                 out_ref):
    """Whole DCGAN discriminator forward, VMEM-resident, single launch."""

    def conv(act_bf16, t_ref, wb_ref):
        # act: (N*H, W*Cin) bf16
        # t:   (4, R, N*H) 0/1 H-tap gather, R = N*Ho (+1 folded BN-sum row)
        # wb:  (4*W*Cin, Wo*Cout) bf16 pre-stacked banded weights
        # 4 exact 0/1 gather matmuls -> lane concat -> ONE deep-K MXU matmul.
        taps = [
            jnp.dot(t_ref[i], act_bf16,
                    preferred_element_type=jnp.float32).astype(jnp.bfloat16)
            for i in range(4)
        ]
        g = jnp.concatenate(taps, axis=1)                     # (R, 4*W*Cin)
        return jnp.dot(g, wb_ref[...], preferred_element_type=jnp.float32)

    def lrelu(y):
        return jnp.maximum(y, LRELU_SLOPE * y)                # mul + max only

    def bn_lrelu(acc_full, gb_ref, r_ref, e_ref):
        # acc_full: (N*Ho + 1, Wo*C) f32; last row = per-lane column sum,
        # produced for free by the extra gather row (review #7).
        rows = acc_full.shape[0] - 1                          # N * Ho (mult of 8)
        c = r_ref.shape[1]
        count = rows * (acc_full.shape[1] // c)               # N * Ho * Wo
        acc = acc_full[:rows, :]
        s1 = acc_full[rows:rows + 1, :]                       # (1, Wo*C)
        mean_c = jnp.dot(s1, r_ref[...]) * (1.0 / count)      # (1, C)
        mean_l = jnp.dot(mean_c, e_ref[...])                  # (1, Wo*C)
        cen = acc - mean_l
        s2 = jnp.sum(cen * cen, axis=0, keepdims=True)
        var_c = jnp.dot(s2, r_ref[...]) * (1.0 / count)       # biased variance
        inv_l = jnp.dot(jax.lax.rsqrt(var_c + BN_EPS), e_ref[...])
        y = cen * inv_l * gb_ref[0:1, :] + gb_ref[1:2, :]
        return lrelu(y)

    # conv1 + LeakyReLU                     (N*32, 32*8)
    a1 = lrelu(conv(x1_ref[...], t1_ref, wb1_ref))
    # conv2 + BN + LeakyReLU                (N*16, 16*16)
    a2 = bn_lrelu(conv(a1.astype(jnp.bfloat16), t2_ref, wb2_ref),
                  gb2_ref, r2_ref, e2_ref)
    # conv3 + BN + LeakyReLU                (N*8, 8*32)
    a3 = bn_lrelu(conv(a2.astype(jnp.bfloat16), t3_ref, wb3_ref),
                  gb3_ref, r3_ref, e3_ref)
    # conv4 + BN + LeakyReLU                (N*4, 4*64)
    a4 = bn_lrelu(conv(a3.astype(jnp.bfloat16), t4_ref, wb4_ref),
                  gb4_ref, r4_ref, e4_ref)
    # conv5 (4x4 valid, Cout=1) == per-sample dot product, then sigmoid (EUP).
    prod = a4 * w5_ref[...]                                   # (N*4, 256) VPU
    per_n = jnp.dot(gsel_ref[...], prod,                      # (N, 256)
                    preferred_element_type=jnp.float32)
    out_ref[...] = jax.nn.sigmoid(jnp.sum(per_n, axis=1, keepdims=True))


# ---------------------------------------------------------------------------
# One-time host-side operand construction (hoisted out of the jitted forward)
# ---------------------------------------------------------------------------
def _gather_mat(h, n, sum_row):
    """T[i, ho, hin] = 1 iff hin == 2*ho + i - 1 (stride 2, pad 1), block-diag
    over n samples.  If sum_row, an extra last row holds the column sums so the
    conv matmul also emits the BN per-lane sum.  Shape (4, R, n*H), bf16."""
    ho = h // 2
    t = np.zeros((4, ho, h), np.float32)
    for i in range(4):
        for r in range(ho):
            src = 2 * r + i - 1
            if 0 <= src < h:
                t[i, r, src] = 1.0
    rows = n * ho + (1 if sum_row else 0)
    full = np.zeros((4, rows, n * h), np.float32)
    for b in range(n):
        full[:, b * ho:(b + 1) * ho, b * h:(b + 1) * h] = t
    if sum_row:
        full[:, n * ho, :] = full[:, :n * ho, :].sum(axis=1)   # 0/1, bf16-exact
    return jnp.asarray(full, jnp.bfloat16)


def _banded_weight(w_oihw, width):
    """Fold the W taps / stride-2 / pad-1 of a (Cout,Cin,4,4) conv weight into
    a banded matrix, pre-stacked over the 4 H-taps: (4*W*Cin, Wo*Cout) bf16,
    lanes ordered w-major (lane = wo*Cout + co)."""
    cout, cin = w_oihw.shape[0], w_oihw.shape[1]
    wo = width // 2
    s = np.zeros((4, width, wo), np.float32)        # S[j, w, wo] = [w == 2wo+j-1]
    for j in range(4):
        for o in range(wo):
            w = 2 * o + j - 1
            if 0 <= w < width:
                s[j, w, o] = 1.0
    wb = np.einsum('jwu,ocij->iwcuo', s, np.asarray(w_oihw, np.float32))
    return jnp.asarray(wb.reshape(4 * width * cin, wo * cout), jnp.bfloat16)


def _bn_operands(gamma, beta, wo):
    """gamma/beta tiled to the (wo, c) lane layout plus the constant lane-group
    reduction (R) / broadcast (E) matrices."""
    c = gamma.shape[0]
    e = np.tile(np.eye(c, dtype=np.float32), (1, wo))          # (C, Wo*C)
    gb = np.stack([np.tile(np.asarray(gamma, np.float32), wo),
                   np.tile(np.asarray(beta, np.float32), wo)], axis=0)
    return jnp.asarray(gb, jnp.float32), jnp.asarray(e.T), jnp.asarray(e)


def prepare_params(params, n=N_BATCH):
    """Build every kernel operand ONCE (review #1): gather matrices, stacked
    banded weights (NC padded 3->4, review #4), BN operands, conv5 operands."""
    w1 = np.zeros((NDF, NC_PAD, 4, 4), np.float32)
    w1[:, :NC] = np.asarray(params["w1"])
    prep = {
        "t1": _gather_mat(IMG, n, sum_row=False),
        "t2": _gather_mat(IMG // 2, n, sum_row=True),
        "t3": _gather_mat(IMG // 4, n, sum_row=True),
        "t4": _gather_mat(IMG // 8, n, sum_row=True),
        "wb1": _banded_weight(w1, IMG),
        "wb2": _banded_weight(np.asarray(params["w2"]), IMG // 2),
        "wb3": _banded_weight(np.asarray(params["w3"]), IMG // 4),
        "wb4": _banded_weight(np.asarray(params["w4"]), IMG // 8),
    }
    for i, wo in ((2, IMG // 4), (3, IMG // 8), (4, IMG // 16)):
        gb, r, e = _bn_operands(params[f"g{i}"], params[f"b{i}"], wo)
        prep[f"gb{i}"], prep[f"r{i}"], prep[f"e{i}"] = gb, r, e
    # Final 4x4 valid conv (Cout=1) as a per-row dot:
    # w5row[h, w*C + c] = w5[0, c, h, w]; gsel selects each sample's 4 rows.
    w5row = np.transpose(np.asarray(params["w5"])[0], (1, 2, 0)).reshape(
        4, 4 * NDF * 8)
    prep["w5"] = jnp.asarray(np.tile(w5row, (n, 1)), jnp.float32)   # (n*4, 256)
    prep["gsel"] = jnp.asarray(np.kron(np.eye(n, dtype=np.float32),
                                       np.ones((1, 4), np.float32)))  # (n, n*4)
    return prep


def _whole_spec(a):
    zeros = (0,) * a.ndim
    return pl.BlockSpec(a.shape, lambda i, _z=zeros: _z)


# ---------------------------------------------------------------------------
# Discriminator forward (jitted; only input prep + the single pallas_call)
# ---------------------------------------------------------------------------
def discriminator_forward(x_nchw, prep):
    n = x_nchw.shape[0]
    # NCHW -> NHWC, zero-pad C 3->4 (128-aligned lanes), flatten to
    # (N*H, W*Cpad) with lane index = w*Cpad + c (w-major), cast to bf16.
    x = jnp.transpose(x_nchw, (0, 2, 3, 1))
    x = jnp.pad(x, ((0, 0), (0, 0), (0, 0), (0, NC_PAD - NC)))
    x1 = x.reshape(n * IMG, IMG * NC_PAD).astype(jnp.bfloat16)

    operands = (x1, prep["t1"], prep["t2"], prep["t3"], prep["t4"],
                prep["wb1"], prep["wb2"], prep["wb3"], prep["wb4"],
                prep["gb2"], prep["r2"], prep["e2"],
                prep["gb3"], prep["r3"], prep["e3"],
                prep["gb4"], prep["r4"], prep["e4"],
                prep["w5"], prep["gsel"])

    out = pl.pallas_call(
        _disc_kernel,
        out_shape=jax.ShapeDtypeStruct((n, 1), jnp.float32),
        grid=(1,),
        in_specs=[_whole_spec(a) for a in operands],
        out_specs=pl.BlockSpec((n, 1), lambda i: (0, 0)),
        compiler_params=pltpu.CompilerParams(
            dimension_semantics=("arbitrary",)),      # keep on one TensorCore
        cost_estimate=pl.CostEstimate(
            flops=115_000_000, transcendentals=128, bytes_accessed=2_600_000),
    )(*operands)

    # output.view(-1, 1).squeeze(1)  ->  (N,)
    return out.reshape(-1)


def init_params(key):
    """Deterministic DCGAN-style init: conv ~ N(0, 0.02), BN gamma ~ N(1, 0.02)."""
    ks = jax.random.split(key, 9)

    def conv_w(k, co, ci):
        return 0.02 * jax.random.normal(k, (co, ci, 4, 4), jnp.float32)

    def bn_g(k, c):
        return 1.0 + 0.02 * jax.random.normal(k, (c,), jnp.float32)

    return {
        "w1": conv_w(ks[0], NDF, NC),
        "w2": conv_w(ks[1], NDF * 2, NDF),
        "g2": bn_g(ks[2], NDF * 2), "b2": jnp.zeros((NDF * 2,), jnp.float32),
        "w3": conv_w(ks[3], NDF * 4, NDF * 2),
        "g3": bn_g(ks[4], NDF * 4), "b3": jnp.zeros((NDF * 4,), jnp.float32),
        "w4": conv_w(ks[5], NDF * 8, NDF * 4),
        "g4": bn_g(ks[6], NDF * 8), "b4": jnp.zeros((NDF * 8,), jnp.float32),
        "w5": conv_w(ks[7], 1, NDF * 8),
    }


if __name__ == "__main__":
    key = jax.random.PRNGKey(0)
    k_par, k_inp = jax.random.split(key)
    params = init_params(k_par)
    # DCGAN discriminator requires 64x64 inputs (final 4x4 conv hits 1x1).
    x = jax.random.normal(k_inp, (N_BATCH, NC, IMG, IMG), jnp.float32)

    prep = jax.block_until_ready(prepare_params(params, N_BATCH))  # one-time
    fwd = jax.jit(discriminator_forward)
    out = jax.block_until_ready(fwd(x, prep))

    assert out.shape == (N_BATCH,), out.shape
    assert bool(jnp.all(jnp.isfinite(out)))
    assert bool(jnp.all((out >= 0.0) & (out <= 1.0)))  # sigmoid range
    print("KERNEL_OK")
</pallas_src>

<mosaic_0001>
module attributes {stable_mosaic.version = 11 : i64} {
  func.func @_disc_kernel(%arg0: i32, %arg1: memref<128x256xbf16, #tpu.memory_space<vmem>>, %arg2: memref<4x64x128xbf16, #tpu.memory_space<vmem>>, %arg3: memref<4x33x64xbf16, #tpu.memory_space<vmem>>, %arg4: memref<4x17x32xbf16, #tpu.memory_space<vmem>>, %arg5: memref<4x9x16xbf16, #tpu.memory_space<vmem>>, %arg6: memref<1024x256xbf16, #tpu.memory_space<vmem>>, %arg7: memref<1024x256xbf16, #tpu.memory_space<vmem>>, %arg8: memref<1024x256xbf16, #tpu.memory_space<vmem>>, %arg9: memref<1024x256xbf16, #tpu.memory_space<vmem>>, %arg10: memref<2x256xf32, #tpu.memory_space<vmem>>, %arg11: memref<256x16xf32, #tpu.memory_space<vmem>>, %arg12: memref<16x256xf32, #tpu.memory_space<vmem>>, %arg13: memref<2x256xf32, #tpu.memory_space<vmem>>, %arg14: memref<256x32xf32, #tpu.memory_space<vmem>>, %arg15: memref<32x256xf32, #tpu.memory_space<vmem>>, %arg16: memref<2x256xf32, #tpu.memory_space<vmem>>, %arg17: memref<256x64xf32, #tpu.memory_space<vmem>>, %arg18: memref<64x256xf32, #tpu.memory_space<vmem>>, %arg19: memref<8x256xf32, #tpu.memory_space<vmem>>, %arg20: memref<2x8xf32, #tpu.memory_space<vmem>>, %arg21: memref<2x1xf32, #tpu.memory_space<vmem>>) attributes {dimension_semantics = [#tpu.dimension_semantics<arbitrary>], iteration_bounds = array<i64: 1>, scalar_prefetch = 0 : i64, scratch_operands = 0 : i64, tpu.core_type = #tpu.core_type<tc>, window_params = [{pipeline_mode = #tpu.pipeline_mode<synchronous>, transform_indices = @transform_0, window_bounds = array<i64: 128, 256>}, {pipeline_mode = #tpu.pipeline_mode<synchronous>, transform_indices = @transform_1, window_bounds = array<i64: 4, 64, 128>}, {pipeline_mode = #tpu.pipeline_mode<synchronous>, transform_indices = @transform_2, window_bounds = array<i64: 4, 33, 64>}, {pipeline_mode = #tpu.pipeline_mode<synchronous>, transform_indices = @transform_3, window_bounds = array<i64: 4, 17, 32>}, {pipeline_mode = #tpu.pipeline_mode<synchronous>, transform_indices = @transform_4, window_bounds = array<i64: 4, 9, 16>}, {pipeline_mode = #tpu.pipeline_mode<synchronous>, transform_indices = @transform_5, window_bounds = array<i64: 1024, 256>}, {pipeline_mode = #tpu.pipeline_mode<synchronous>, transform_indices = @transform_6, window_bounds = array<i64: 1024, 256>}, {pipeline_mode = #tpu.pipeline_mode<synchronous>, transform_indices = @transform_7, window_bounds = array<i64: 1024, 256>}, {pipeline_mode = #tpu.pipeline_mode<synchronous>, transform_indices = @transform_8, window_bounds = array<i64: 1024, 256>}, {pipeline_mode = #tpu.pipeline_mode<synchronous>, transform_indices = @transform_9, window_bounds = array<i64: 2, 256>}, {pipeline_mode = #tpu.pipeline_mode<synchronous>, transform_indices = @transform_10, window_bounds = array<i64: 256, 16>}, {pipeline_mode = #tpu.pipeline_mode<synchronous>, transform_indices = @transform_11, window_bounds = array<i64: 16, 256>}, {pipeline_mode = #tpu.pipeline_mode<synchronous>, transform_indices = @transform_12, window_bounds = array<i64: 2, 256>}, {pipeline_mode = #tpu.pipeline_mode<synchronous>, transform_indices = @transform_13, window_bounds = array<i64: 256, 32>}, {pipeline_mode = #tpu.pipeline_mode<synchronous>, transform_indices = @transform_14, window_bounds = array<i64: 32, 256>}, {pipeline_mode = #tpu.pipeline_mode<synchronous>, transform_indices = @transform_15, window_bounds = array<i64: 2, 256>}, {pipeline_mode = #tpu.pipeline_mode<synchronous>, transform_indices = @transform_16, window_bounds = array<i64: 256, 64>}, {pipeline_mode = #tpu.pipeline_mode<synchronous>, transform_indices = @transform_17, window_bounds = array<i64: 64, 256>}, {pipeline_mode = #tpu.pipeline_mode<synchronous>, transform_indices = @transform_18, window_bounds = array<i64: 8, 256>}, {pipeline_mode = #tpu.pipeline_mode<synchronous>, transform_indices = @transform_19, window_bounds = array<i64: 2, 8>}, {pipeline_mode = #tpu.pipeline_mode<synchronous>, transform_indices = @transform_20, window_bounds = array<i64: 2, 1>}]} {
    %c0 = arith.constant 0 : index
    %c0_0 = arith.constant 0 : index
    %0 = vector.load %arg1[%c0, %c0_0] : memref<128x256xbf16, #tpu.memory_space<vmem>>, vector<128x256xbf16>
    %c0_1 = arith.constant 0 : index
    %c0_2 = arith.constant 0 : index
    %c0_3 = arith.constant 0 : index
    %1 = vector.load %arg2[%c0_1, %c0_2, %c0_3] : memref<4x64x128xbf16, #tpu.memory_space<vmem>>, vector<1x64x128xbf16>
    %2 = vector.shape_cast %1 : vector<1x64x128xbf16> to vector<64x128xbf16>
    %cst = arith.constant dense<0.000000e+00> : vector<64x256xf32>
    %3 = tpu.matmul %2, %0, %cst {dimension_numbers = #tpu.dot_dimension_numbers<[1], [0], [0], [1], [0, 0, 1, 1], [], []>} : vector<64x128xbf16>, vector<128x256xbf16>, vector<64x256xf32> -> vector<64x256xf32>
    %4 = arith.truncf %3 : vector<64x256xf32> to vector<64x256xbf16>
    %c1 = arith.constant 1 : index
    %c0_4 = arith.constant 0 : index
    %c0_5 = arith.constant 0 : index
    %5 = vector.load %arg2[%c1, %c0_4, %c0_5] : memref<4x64x128xbf16, #tpu.memory_space<vmem>>, vector<1x64x128xbf16>
    %6 = vector.shape_cast %5 : vector<1x64x128xbf16> to vector<64x128xbf16>
    %cst_6 = arith.constant dense<0.000000e+00> : vector<64x256xf32>
    %7 = tpu.matmul %6, %0, %cst_6 {dimension_numbers = #tpu.dot_dimension_numbers<[1], [0], [0], [1], [0, 0, 1, 1], [], []>} : vector<64x128xbf16>, vector<128x256xbf16>, vector<64x256xf32> -> vector<64x256xf32>
    %8 = arith.truncf %7 : vector<64x256xf32> to vector<64x256xbf16>
    %c2 = arith.constant 2 : index
    %c0_7 = arith.constant 0 : index
    %c0_8 = arith.constant 0 : index
    %9 = vector.load %arg2[%c2, %c0_7, %c0_8] : memref<4x64x128xbf16, #tpu.memory_space<vmem>>, vector<1x64x128xbf16>
    %10 = vector.shape_cast %9 : vector<1x64x128xbf16> to vector<64x128xbf16>
    %cst_9 = arith.constant dense<0.000000e+00> : vector<64x256xf32>
    %11 = tpu.matmul %10, %0, %cst_9 {dimension_numbers = #tpu.dot_dimension_numbers<[1], [0], [0], [1], [0, 0, 1, 1], [], []>} : vector<64x128xbf16>, vector<128x256xbf16>, vector<64x256xf32> -> vector<64x256xf32>
    %12 = arith.truncf %11 : vector<64x256xf32> to vector<64x256xbf16>
    %c3 = arith.constant 3 : index
    %c0_10 = arith.constant 0 : index
    %c0_11 = arith.constant 0 : index
    %13 = vector.load %arg2[%c3, %c0_10, %c0_11] : memref<4x64x128xbf16, #tpu.memory_space<vmem>>, vector<1x64x128xbf16>
    %14 = vector.shape_cast %13 : vector<1x64x128xbf16> to vector<64x128xbf16>
    %cst_12 = arith.constant dense<0.000000e+00> : vector<64x256xf32>
    %15 = tpu.matmul %14, %0, %cst_12 {dimension_numbers = #tpu.dot_dimension_numbers<[1], [0], [0], [1], [0, 0, 1, 1], [], []>} : vector<64x128xbf16>, vector<128x256xbf16>, vector<64x256xf32> -> vector<64x256xf32>
    %16 = arith.truncf %15 : vector<64x256xf32> to vector<64x256xbf16>
    %17 = tpu.concatenate %4, %8, %12, %16 in 1 : vector<64x256xbf16>, vector<64x256xbf16>, vector<64x256xbf16>, vector<64x256xbf16> -> vector<64x1024xbf16>
    %c0_13 = arith.constant 0 : index
    %c0_14 = arith.constant 0 : index
    %18 = vector.load %arg6[%c0_13, %c0_14] : memref<1024x256xbf16, #tpu.memory_space<vmem>>, vector<1024x256xbf16>
    %cst_15 = arith.constant dense<0.000000e+00> : vector<64x256xf32>
    %19 = tpu.matmul %17, %18, %cst_15 {dimension_numbers = #tpu.dot_dimension_numbers<[1], [0], [0], [1], [0, 0, 1, 1], [], []>} : vector<64x1024xbf16>, vector<1024x256xbf16>, vector<64x256xf32> -> vector<64x256xf32>
    %cst_16 = arith.constant 2.000000e-01 : f32
    %20 = vector.broadcast %cst_16 : f32 to vector<64x256xf32>
    %21 = arith.mulf %20, %19 : vector<64x256xf32>
    %22 = arith.maximumf %19, %21 : vector<64x256xf32>
    %23 = arith.truncf %22 : vector<64x256xf32> to vector<64x256xbf16>
    %c0_17 = arith.constant 0 : index
    %c0_18 = arith.constant 0 : index
    %c0_19 = arith.constant 0 : index
    %24 = vector.load %arg3[%c0_17, %c0_18, %c0_19] : memref<4x33x64xbf16, #tpu.memory_space<vmem>>, vector<1x33x64xbf16>
    %25 = vector.shape_cast %24 : vector<1x33x64xbf16> to vector<33x64xbf16>
    %cst_20 = arith.constant dense<0.000000e+00> : vector<33x256xf32>
    %26 = tpu.matmul %25, %23, %cst_20 {dimension_numbers = #tpu.dot_dimension_numbers<[1], [0], [0], [1], [0, 0, 1, 1], [], []>} : vector<33x64xbf16>, vector<64x256xbf16>, vector<33x256xf32> -> vector<33x256xf32>
    %27 = arith.truncf %26 : vector<33x256xf32> to vector<33x256xbf16>
    %c1_21 = arith.constant 1 : index
    %c0_22 = arith.constant 0 : index
    %c0_23 = arith.constant 0 : index
    %28 = vector.load %arg3[%c1_21, %c0_22, %c0_23] : memref<4x33x64xbf16, #tpu.memory_space<vmem>>, vector<1x33x64xbf16>
    %29 = vector.shape_cast %28 : vector<1x33x64xbf16> to vector<33x64xbf16>
    %cst_24 = arith.constant dense<0.000000e+00> : vector<33x256xf32>
    %30 = tpu.matmul %29, %23, %cst_24 {dimension_numbers = #tpu.dot_dimension_numbers<[1], [0], [0], [1], [0, 0, 1, 1], [], []>} : vector<33x64xbf16>, vector<64x256xbf16>, vector<33x256xf32> -> vector<33x256xf32>
    %31 = arith.truncf %30 : vector<33x256xf32> to vector<33x256xbf16>
    %c2_25 = arith.constant 2 : index
    %c0_26 = arith.constant 0 : index
    %c0_27 = arith.constant 0 : index
    %32 = vector.load %arg3[%c2_25, %c0_26, %c0_27] : memref<4x33x64xbf16, #tpu.memory_space<vmem>>, vector<1x33x64xbf16>
    %33 = vector.shape_cast %32 : vector<1x33x64xbf16> to vector<33x64xbf16>
    %cst_28 = arith.constant dense<0.000000e+00> : vector<33x256xf32>
    %34 = tpu.matmul %33, %23, %cst_28 {dimension_numbers = #tpu.dot_dimension_numbers<[1], [0], [0], [1], [0, 0, 1, 1], [], []>} : vector<33x64xbf16>, vector<64x256xbf16>, vector<33x256xf32> -> vector<33x256xf32>
    %35 = arith.truncf %34 : vector<33x256xf32> to vector<33x256xbf16>
    %c3_29 = arith.constant 3 : index
    %c0_30 = arith.constant 0 : index
    %c0_31 = arith.constant 0 : index
    %36 = vector.load %arg3[%c3_29, %c0_30, %c0_31] : memref<4x33x64xbf16, #tpu.memory_space<vmem>>, vector<1x33x64xbf16>
    %37 = vector.shape_cast %36 : vector<1x33x64xbf16> to vector<33x64xbf16>
    %cst_32 = arith.constant dense<0.000000e+00> : vector<33x256xf32>
    %38 = tpu.matmul %37, %23, %cst_32 {dimension_numbers = #tpu.dot_dimension_numbers<[1], [0], [0], [1], [0, 0, 1, 1], [], []>} : vector<33x64xbf16>, vector<64x256xbf16>, vector<33x256xf32> -> vector<33x256xf32>
    %39 = arith.truncf %38 : vector<33x256xf32> to vector<33x256xbf16>
    %40 = tpu.concatenate %27, %31, %35, %39 in 1 : vector<33x256xbf16>, vector<33x256xbf16>, vector<33x256xbf16>, vector<33x256xbf16> -> vector<33x1024xbf16>
    %c0_33 = arith.constant 0 : index
    %c0_34 = arith.constant 0 : index
    %41 = vector.load %arg7[%c0_33, %c0_34] : memref<1024x256xbf16, #tpu.memory_space<vmem>>, vector<1024x256xbf16>
    %cst_35 = arith.constant dense<0.000000e+00> : vector<33x256xf32>
    %42 = tpu.matmul %40, %41, %cst_35 {dimension_numbers = #tpu.dot_dimension_numbers<[1], [0], [0], [1], [0, 0, 1, 1], [], []>} : vector<33x1024xbf16>, vector<1024x256xbf16>, vector<33x256xf32> -> vector<33x256xf32>
    %43 = vector.extract_strided_slice %42 {offsets = [0, 0], sizes = [32, 256], strides = [1, 1]} : vector<33x256xf32> to vector<32x256xf32>
    %44 = vector.extract_strided_slice %42 {offsets = [32, 0], sizes = [1, 256], strides = [1, 1]} : vector<33x256xf32> to vector<1x256xf32>
    %c0_36 = arith.constant 0 : index
    %c0_37 = arith.constant 0 : index
    %45 = vector.load %arg11[%c0_36, %c0_37] : memref<256x16xf32, #tpu.memory_space<vmem>>, vector<256x16xf32>
    %cst_38 = arith.constant dense<0.000000e+00> : vector<1x16xf32>
    %46 = tpu.matmul %44, %45, %cst_38 {dimension_numbers = #tpu.dot_dimension_numbers<[1], [0], [0], [1], [0, 0, 1, 1], [], []>} : vector<1x256xf32>, vector<256x16xf32>, vector<1x16xf32> -> vector<1x16xf32>
    %cst_39 = arith.constant 0.001953125 : f32
    %47 = vector.broadcast %cst_39 : f32 to vector<1x16xf32>
    %48 = arith.mulf %46, %47 : vector<1x16xf32>
    %c0_40 = arith.constant 0 : index
    %c0_41 = arith.constant 0 : index
    %49 = vector.load %arg12[%c0_40, %c0_41] : memref<16x256xf32, #tpu.memory_space<vmem>>, vector<16x256xf32>
    %cst_42 = arith.constant dense<0.000000e+00> : vector<1x256xf32>
    %50 = tpu.matmul %48, %49, %cst_42 {dimension_numbers = #tpu.dot_dimension_numbers<[1], [0], [0], [1], [0, 0, 1, 1], [], []>} : vector<1x16xf32>, vector<16x256xf32>, vector<1x256xf32> -> vector<1x256xf32>
    %51 = vector.broadcast %50 : vector<1x256xf32> to vector<32x256xf32>
    %52 = arith.subf %43, %51 : vector<32x256xf32>
    %53 = arith.mulf %52, %52 : vector<32x256xf32>
    %cst_43 = arith.constant dense<0.000000e+00> : vector<256xf32>
    %54 = vector.multi_reduction <add>, %53, %cst_43 [0] : vector<32x256xf32> to vector<256xf32>
    %55 = vector.shape_cast %54 : vector<256xf32> to vector<1x256xf32>
    %c0_44 = arith.constant 0 : index
    %c0_45 = arith.constant 0 : index
    %56 = vector.load %arg11[%c0_44, %c0_45] : memref<256x16xf32, #tpu.memory_space<vmem>>, vector<256x16xf32>
    %cst_46 = arith.constant dense<0.000000e+00> : vector<1x16xf32>
    %57 = tpu.matmul %55, %56, %cst_46 {dimension_numbers = #tpu.dot_dimension_numbers<[1], [0], [0], [1], [0, 0, 1, 1], [], []>} : vector<1x256xf32>, vector<256x16xf32>, vector<1x16xf32> -> vector<1x16xf32>
    %cst_47 = arith.constant 0.001953125 : f32
    %58 = vector.broadcast %cst_47 : f32 to vector<1x16xf32>
    %59 = arith.mulf %57, %58 : vector<1x16xf32>
    %cst_48 = arith.constant 9.99999974E-6 : f32
    %60 = vector.broadcast %cst_48 : f32 to vector<1x16xf32>
    %61 = arith.addf %59, %60 : vector<1x16xf32>
    %62 = math.rsqrt %61 : vector<1x16xf32>
    %c0_49 = arith.constant 0 : index
    %c0_50 = arith.constant 0 : index
    %63 = vector.load %arg12[%c0_49, %c0_50] : memref<16x256xf32, #tpu.memory_space<vmem>>, vector<16x256xf32>
    %cst_51 = arith.constant dense<0.000000e+00> : vector<1x256xf32>
    %64 = tpu.matmul %62, %63, %cst_51 {dimension_numbers = #tpu.dot_dimension_numbers<[1], [0], [0], [1], [0, 0, 1, 1], [], []>} : vector<1x16xf32>, vector<16x256xf32>, vector<1x256xf32> -> vector<1x256xf32>
    %65 = vector.broadcast %64 : vector<1x256xf32> to vector<32x256xf32>
    %66 = arith.mulf %52, %65 : vector<32x256xf32>
    %c0_52 = arith.constant 0 : index
    %c0_53 = arith.constant 0 : index
    %67 = vector.load %arg10[%c0_52, %c0_53] : memref<2x256xf32, #tpu.memory_space<vmem>>, vector<1x256xf32>
    %68 = vector.broadcast %67 : vector<1x256xf32> to vector<32x256xf32>
    %69 = arith.mulf %66, %68 : vector<32x256xf32>
    %c1_54 = arith.constant 1 : index
    %c0_55 = arith.constant 0 : index
    %70 = vector.load %arg10[%c1_54, %c0_55] : memref<2x256xf32, #tpu.memory_space<vmem>>, vector<1x256xf32>
    %71 = vector.broadcast %70 : vector<1x256xf32> to vector<32x256xf32>
    %72 = arith.addf %69, %71 : vector<32x256xf32>
    %cst_56 = arith.constant 2.000000e-01 : f32
    %73 = vector.broadcast %cst_56 : f32 to vector<32x256xf32>
    %74 = arith.mulf %73, %72 : vector<32x256xf32>
    %75 = arith.maximumf %72, %74 : vector<32x256xf32>
    %76 = arith.truncf %75 : vector<32x256xf32> to vector<32x256xbf16>
    %c0_57 = arith.constant 0 : index
    %c0_58 = arith.constant 0 : index
    %c0_59 = arith.constant 0 : index
    %77 = vector.load %arg4[%c0_57, %c0_58, %c0_59] : memref<4x17x32xbf16, #tpu.memory_space<vmem>>, vector<1x17x32xbf16>
    %78 = vector.shape_cast %77 : vector<1x17x32xbf16> to vector<17x32xbf16>
    %cst_60 = arith.constant dense<0.000000e+00> : vector<17x256xf32>
    %79 = tpu.matmul %78, %76, %cst_60 {dimension_numbers = #tpu.dot_dimension_numbers<[1], [0], [0], [1], [0, 0, 1, 1], [], []>} : vector<17x32xbf16>, vector<32x256xbf16>, vector<17x256xf32> -> vector<17x256xf32>
    %80 = arith.truncf %79 : vector<17x256xf32> to vector<17x256xbf16>
    %c1_61 = arith.constant 1 : index
    %c0_62 = arith.constant 0 : index
    %c0_63 = arith.constant 0 : index
    %81 = vector.load %arg4[%c1_61, %c0_62, %c0_63] : memref<4x17x32xbf16, #tpu.memory_space<vmem>>, vector<1x17x32xbf16>
    %82 = vector.shape_cast %81 : vector<1x17x32xbf16> to vector<17x32xbf16>
    %cst_64 = arith.constant dense<0.000000e+00> : vector<17x256xf32>
    %83 = tpu.matmul %82, %76, %cst_64 {dimension_numbers = #tpu.dot_dimension_numbers<[1], [0], [0], [1], [0, 0, 1, 1], [], []>} : vector<17x32xbf16>, vector<32x256xbf16>, vector<17x256xf32> -> vector<17x256xf32>
    %84 = arith.truncf %83 : vector<17x256xf32> to vector<17x256xbf16>
    %c2_65 = arith.constant 2 : index
    %c0_66 = arith.constant 0 : index
    %c0_67 = arith.constant 0 : index
    %85 = vector.load %arg4[%c2_65, %c0_66, %c0_67] : memref<4x17x32xbf16, #tpu.memory_space<vmem>>, vector<1x17x32xbf16>
    %86 = vector.shape_cast %85 : vector<1x17x32xbf16> to vector<17x32xbf16>
    %cst_68 = arith.constant dense<0.000000e+00> : vector<17x256xf32>
    %87 = tpu.matmul %86, %76, %cst_68 {dimension_numbers = #tpu.dot_dimension_numbers<[1], [0], [0], [1], [0, 0, 1, 1], [], []>} : vector<17x32xbf16>, vector<32x256xbf16>, vector<17x256xf32> -> vector<17x256xf32>
    %88 = arith.truncf %87 : vector<17x256xf32> to vector<17x256xbf16>
    %c3_69 = arith.constant 3 : index
    %c0_70 = arith.constant 0 : index
    %c0_71 = arith.constant 0 : index
    %89 = vector.load %arg4[%c3_69, %c0_70, %c0_71] : memref<4x17x32xbf16, #tpu.memory_space<vmem>>, vector<1x17x32xbf16>
    %90 = vector.shape_cast %89 : vector<1x17x32xbf16> to vector<17x32xbf16>
    %cst_72 = arith.constant dense<0.000000e+00> : vector<17x256xf32>
    %91 = tpu.matmul %90, %76, %cst_72 {dimension_numbers = #tpu.dot_dimension_numbers<[1], [0], [0], [1], [0, 0, 1, 1], [], []>} : vector<17x32xbf16>, vector<32x256xbf16>, vector<17x256xf32> -> vector<17x256xf32>
    %92 = arith.truncf %91 : vector<17x256xf32> to vector<17x256xbf16>
    %93 = tpu.concatenate %80, %84, %88, %92 in 1 : vector<17x256xbf16>, vector<17x256xbf16>, vector<17x256xbf16>, vector<17x256xbf16> -> vector<17x1024xbf16>
    %c0_73 = arith.constant 0 : index
    %c0_74 = arith.constant 0 : index
    %94 = vector.load %arg8[%c0_73, %c0_74] : memref<1024x256xbf16, #tpu.memory_space<vmem>>, vector<1024x256xbf16>
    %cst_75 = arith.constant dense<0.000000e+00> : vector<17x256xf32>
    %95 = tpu.matmul %93, %94, %cst_75 {dimension_numbers = #tpu.dot_dimension_numbers<[1], [0], [0], [1], [0, 0, 1, 1], [], []>} : vector<17x1024xbf16>, vector<1024x256xbf16>, vector<17x256xf32> -> vector<17x256xf32>
    %96 = vector.extract_strided_slice %95 {offsets = [0, 0], sizes = [16, 256], strides = [1, 1]} : vector<17x256xf32> to vector<16x256xf32>
    %97 = vector.extract_strided_slice %95 {offsets = [16, 0], sizes = [1, 256], strides = [1, 1]} : vector<17x256xf32> to vector<1x256xf32>
    %c0_76 = arith.constant 0 : index
    %c0_77 = arith.constant 0 : index
    %98 = vector.load %arg14[%c0_76, %c0_77] : memref<256x32xf32, #tpu.memory_space<vmem>>, vector<256x32xf32>
    %cst_78 = arith.constant dense<0.000000e+00> : vector<1x32xf32>
    %99 = tpu.matmul %97, %98, %cst_78 {dimension_numbers = #tpu.dot_dimension_numbers<[1], [0], [0], [1], [0, 0, 1, 1], [], []>} : vector<1x256xf32>, vector<256x32xf32>, vector<1x32xf32> -> vector<1x32xf32>
    %cst_79 = arith.constant 7.812500e-03 : f32
    %100 = vector.broadcast %cst_79 : f32 to vector<1x32xf32>
    %101 = arith.mulf %99, %100 : vector<1x32xf32>
    %c0_80 = arith.constant 0 : index
    %c0_81 = arith.constant 0 : index
    %102 = vector.load %arg15[%c0_80, %c0_81] : memref<32x256xf32, #tpu.memory_space<vmem>>, vector<32x256xf32>
    %cst_82 = arith.constant dense<0.000000e+00> : vector<1x256xf32>
    %103 = tpu.matmul %101, %102, %cst_82 {dimension_numbers = #tpu.dot_dimension_numbers<[1], [0], [0], [1], [0, 0, 1, 1], [], []>} : vector<1x32xf32>, vector<32x256xf32>, vector<1x256xf32> -> vector<1x256xf32>
    %104 = vector.broadcast %103 : vector<1x256xf32> to vector<16x256xf32>
    %105 = arith.subf %96, %104 : vector<16x256xf32>
    %106 = arith.mulf %105, %105 : vector<16x256xf32>
    %cst_83 = arith.constant dense<0.000000e+00> : vector<256xf32>
    %107 = vector.multi_reduction <add>, %106, %cst_83 [0] : vector<16x256xf32> to vector<256xf32>
    %108 = vector.shape_cast %107 : vector<256xf32> to vector<1x256xf32>
    %c0_84 = arith.constant 0 : index
    %c0_85 = arith.constant 0 : index
    %109 = vector.load %arg14[%c0_84, %c0_85] : memref<256x32xf32, #tpu.memory_space<vmem>>, vector<256x32xf32>
    %cst_86 = arith.constant dense<0.000000e+00> : vector<1x32xf32>
    %110 = tpu.matmul %108, %109, %cst_86 {dimension_numbers = #tpu.dot_dimension_numbers<[1], [0], [0], [1], [0, 0, 1, 1], [], []>} : vector<1x256xf32>, vector<256x32xf32>, vector<1x32xf32> -> vector<1x32xf32>
    %cst_87 = arith.constant 7.812500e-03 : f32
    %111 = vector.broadcast %cst_87 : f32 to vector<1x32xf32>
    %112 = arith.mulf %110, %111 : vector<1x32xf32>
    %cst_88 = arith.constant 9.99999974E-6 : f32
    %113 = vector.broadcast %cst_88 : f32 to vector<1x32xf32>
    %114 = arith.addf %112, %113 : vector<1x32xf32>
    %115 = math.rsqrt %114 : vector<1x32xf32>
    %c0_89 = arith.constant 0 : index
    %c0_90 = arith.constant 0 : index
    %116 = vector.load %arg15[%c0_89, %c0_90] : memref<32x256xf32, #tpu.memory_space<vmem>>, vector<32x256xf32>
    %cst_91 = arith.constant dense<0.000000e+00> : vector<1x256xf32>
    %117 = tpu.matmul %115, %116, %cst_91 {dimension_numbers = #tpu.dot_dimension_numbers<[1], [0], [0], [1], [0, 0, 1, 1], [], []>} : vector<1x32xf32>, vector<32x256xf32>, vector<1x256xf32> -> vector<1x256xf32>
    %118 = vector.broadcast %117 : vector<1x256xf32> to vector<16x256xf32>
    %119 = arith.mulf %105, %118 : vector<16x256xf32>
    %c0_92 = arith.constant 0 : index
    %c0_93 = arith.constant 0 : index
    %120 = vector.load %arg13[%c0_92, %c0_93] : memref<2x256xf32, #tpu.memory_space<vmem>>, vector<1x256xf32>
    %121 = vector.broadcast %120 : vector<1x256xf32> to vector<16x256xf32>
    %122 = arith.mulf %119, %121 : vector<16x256xf32>
    %c1_94 = arith.constant 1 : index
    %c0_95 = arith.constant 0 : index
    %123 = vector.load %arg13[%c1_94, %c0_95] : memref<2x256xf32, #tpu.memory_space<vmem>>, vector<1x256xf32>
    %124 = vector.broadcast %123 : vector<1x256xf32> to vector<16x256xf32>
    %125 = arith.addf %122, %124 : vector<16x256xf32>
    %cst_96 = arith.constant 2.000000e-01 : f32
    %126 = vector.broadcast %cst_96 : f32 to vector<16x256xf32>
    %127 = arith.mulf %126, %125 : vector<16x256xf32>
    %128 = arith.maximumf %125, %127 : vector<16x256xf32>
    %129 = arith.truncf %128 : vector<16x256xf32> to vector<16x256xbf16>
    %c0_97 = arith.constant 0 : index
    %c0_98 = arith.constant 0 : index
    %c0_99 = arith.constant 0 : index
    %130 = vector.load %arg5[%c0_97, %c0_98, %c0_99] : memref<4x9x16xbf16, #tpu.memory_space<vmem>>, vector<1x9x16xbf16>
    %131 = vector.shape_cast %130 : vector<1x9x16xbf16> to vector<9x16xbf16>
    %cst_100 = arith.constant dense<0.000000e+00> : vector<9x256xf32>
    %132 = tpu.matmul %131, %129, %cst_100 {dimension_numbers = #tpu.dot_dimension_numbers<[1], [0], [0], [1], [0, 0, 1, 1], [], []>} : vector<9x16xbf16>, vector<16x256xbf16>, vector<9x256xf32> -> vector<9x256xf32>
    %133 = arith.truncf %132 : vector<9x256xf32> to vector<9x256xbf16>
    %c1_101 = arith.constant 1 : index
    %c0_102 = arith.constant 0 : index
    %c0_103 = arith.constant 0 : index
    %134 = vector.load %arg5[%c1_101, %c0_102, %c0_103] : memref<4x9x16xbf16, #tpu.memory_space<vmem>>, vector<1x9x16xbf16>
    %135 = vector.shape_cast %134 : vector<1x9x16xbf16> to vector<9x16xbf16>
    %cst_104 = arith.constant dense<0.000000e+00> : vector<9x256xf32>
    %136 = tpu.matmul %135, %129, %cst_104 {dimension_numbers = #tpu.dot_dimension_numbers<[1], [0], [0], [1], [0, 0, 1, 1], [], []>} : vector<9x16xbf16>, vector<16x256xbf16>, vector<9x256xf32> -> vector<9x256xf32>
    %137 = arith.truncf %136 : vector<9x256xf32> to vector<9x256xbf16>
    %c2_105 = arith.constant 2 : index
    %c0_106 = arith.constant 0 : index
    %c0_107 = arith.constant 0 : index
    %138 = vector.load %arg5[%c2_105, %c0_106, %c0_107] : memref<4x9x16xbf16, #tpu.memory_space<vmem>>, vector<1x9x16xbf16>
    %139 = vector.shape_cast %138 : vector<1x9x16xbf16> to vector<9x16xbf16>
    %cst_108 = arith.constant dense<0.000000e+00> : vector<9x256xf32>
    %140 = tpu.matmul %139, %129, %cst_108 {dimension_numbers = #tpu.dot_dimension_numbers<[1], [0], [0], [1], [0, 0, 1, 1], [], []>} : vector<9x16xbf16>, vector<16x256xbf16>, vector<9x256xf32> -> vector<9x256xf32>
    %141 = arith.truncf %140 : vector<9x256xf32> to vector<9x256xbf16>
    %c3_109 = arith.constant 3 : index
    %c0_110 = arith.constant 0 : index
    %c0_111 = arith.constant 0 : index
    %142 = vector.load %arg5[%c3_109, %c0_110, %c0_111] : memref<4x9x16xbf16, #tpu.memory_space<vmem>>, vector<1x9x16xbf16>
    %143 = vector.shape_cast %142 : vector<1x9x16xbf16> to vector<9x16xbf16>
    %cst_112 = arith.constant dense<0.000000e+00> : vector<9x256xf32>
    %144 = tpu.matmul %143, %129, %cst_112 {dimension_numbers = #tpu.dot_dimension_numbers<[1], [0], [0], [1], [0, 0, 1, 1], [], []>} : vector<9x16xbf16>, vector<16x256xbf16>, vector<9x256xf32> -> vector<9x256xf32>
    %145 = arith.truncf %144 : vector<9x256xf32> to vector<9x256xbf16>
    %146 = tpu.concatenate %133, %137, %141, %145 in 1 : vector<9x256xbf16>, vector<9x256xbf16>, vector<9x256xbf16>, vector<9x256xbf16> -> vector<9x1024xbf16>
    %c0_113 = arith.constant 0 : index
    %c0_114 = arith.constant 0 : index
    %147 = vector.load %arg9[%c0_113, %c0_114] : memref<1024x256xbf16, #tpu.memory_space<vmem>>, vector<1024x256xbf16>
    %cst_115 = arith.constant dense<0.000000e+00> : vector<9x256xf32>
    %148 = tpu.matmul %146, %147, %cst_115 {dimension_numbers = #tpu.dot_dimension_numbers<[1], [0], [0], [1], [0, 0, 1, 1], [], []>} : vector<9x1024xbf16>, vector<1024x256xbf16>, vector<9x256xf32> -> vector<9x256xf32>
    %149 = vector.extract_strided_slice %148 {offsets = [0, 0], sizes = [8, 256], strides = [1, 1]} : vector<9x256xf32> to vector<8x256xf32>
    %150 = vector.extract_strided_slice %148 {offsets = [8, 0], sizes = [1, 256], strides = [1, 1]} : vector<9x256xf32> to vector<1x256xf32>
    %c0_116 = arith.constant 0 : index
    %c0_117 = arith.constant 0 : index
    %151 = vector.load %arg17[%c0_116, %c0_117] : memref<256x64xf32, #tpu.memory_space<vmem>>, vector<256x64xf32>
    %cst_118 = arith.constant dense<0.000000e+00> : vector<1x64xf32>
    %152 = tpu.matmul %150, %151, %cst_118 {dimension_numbers = #tpu.dot_dimension_numbers<[1], [0], [0], [1], [0, 0, 1, 1], [], []>} : vector<1x256xf32>, vector<256x64xf32>, vector<1x64xf32> -> vector<1x64xf32>
    %cst_119 = arith.constant 3.125000e-02 : f32
    %153 = vector.broadcast %cst_119 : f32 to vector<1x64xf32>
    %154 = arith.mulf %152, %153 : vector<1x64xf32>
    %c0_120 = arith.constant 0 : index
    %c0_121 = arith.constant 0 : index
    %155 = vector.load %arg18[%c0_120, %c0_121] : memref<64x256xf32, #tpu.memory_space<vmem>>, vector<64x256xf32>
    %cst_122 = arith.constant dense<0.000000e+00> : vector<1x256xf32>
    %156 = tpu.matmul %154, %155, %cst_122 {dimension_numbers = #tpu.dot_dimension_numbers<[1], [0], [0], [1], [0, 0, 1, 1], [], []>} : vector<1x64xf32>, vector<64x256xf32>, vector<1x256xf32> -> vector<1x256xf32>
    %157 = vector.broadcast %156 : vector<1x256xf32> to vector<8x256xf32>
    %158 = arith.subf %149, %157 : vector<8x256xf32>
    %159 = arith.mulf %158, %158 : vector<8x256xf32>
    %cst_123 = arith.constant dense<0.000000e+00> : vector<256xf32>
    %160 = vector.multi_reduction <add>, %159, %cst_123 [0] : vector<8x256xf32> to vector<256xf32>
    %161 = vector.shape_cast %160 : vector<256xf32> to vector<1x256xf32>
    %c0_124 = arith.constant 0 : index
    %c0_125 = arith.constant 0 : index
    %162 = vector.load %arg17[%c0_124, %c0_125] : memref<256x64xf32, #tpu.memory_space<vmem>>, vector<256x64xf32>
    %cst_126 = arith.constant dense<0.000000e+00> : vector<1x64xf32>
    %163 = tpu.matmul %161, %162, %cst_126 {dimension_numbers = #tpu.dot_dimension_numbers<[1], [0], [0], [1], [0, 0, 1, 1], [], []>} : vector<1x256xf32>, vector<256x64xf32>, vector<1x64xf32> -> vector<1x64xf32>
    %cst_127 = arith.constant 3.125000e-02 : f32
    %164 = vector.broadcast %cst_127 : f32 to vector<1x64xf32>
    %165 = arith.mulf %163, %164 : vector<1x64xf32>
    %cst_128 = arith.constant 9.99999974E-6 : f32
    %166 = vector.broadcast %cst_128 : f32 to vector<1x64xf32>
    %167 = arith.addf %165, %166 : vector<1x64xf32>
    %168 = math.rsqrt %167 : vector<1x64xf32>
    %c0_129 = arith.constant 0 : index
    %c0_130 = arith.constant 0 : index
    %169 = vector.load %arg18[%c0_129, %c0_130] : memref<64x256xf32, #tpu.memory_space<vmem>>, vector<64x256xf32>
    %cst_131 = arith.constant dense<0.000000e+00> : vector<1x256xf32>
    %170 = tpu.matmul %168, %169, %cst_131 {dimension_numbers = #tpu.dot_dimension_numbers<[1], [0], [0], [1], [0, 0, 1, 1], [], []>} : vector<1x64xf32>, vector<64x256xf32>, vector<1x256xf32> -> vector<1x256xf32>
    %171 = vector.broadcast %170 : vector<1x256xf32> to vector<8x256xf32>
    %172 = arith.mulf %158, %171 : vector<8x256xf32>
    %c0_132 = arith.constant 0 : index
    %c0_133 = arith.constant 0 : index
    %173 = vector.load %arg16[%c0_132, %c0_133] : memref<2x256xf32, #tpu.memory_space<vmem>>, vector<1x256xf32>
    %174 = vector.broadcast %173 : vector<1x256xf32> to vector<8x256xf32>
    %175 = arith.mulf %172, %174 : vector<8x256xf32>
    %c1_134 = arith.constant 1 : index
    %c0_135 = arith.constant 0 : index
    %176 = vector.load %arg16[%c1_134, %c0_135] : memref<2x256xf32, #tpu.memory_space<vmem>>, vector<1x256xf32>
    %177 = vector.broadcast %176 : vector<1x256xf32> to vector<8x256xf32>
    %178 = arith.addf %175, %177 : vector<8x256xf32>
    %cst_136 = arith.constant 2.000000e-01 : f32
    %179 = vector.broadcast %cst_136 : f32 to vector<8x256xf32>
    %180 = arith.mulf %179, %178 : vector<8x256xf32>
    %181 = arith.maximumf %178, %180 : vector<8x256xf32>
    %c0_137 = arith.constant 0 : index
    %c0_138 = arith.constant 0 : index
    %182 = vector.load %arg19[%c0_137, %c0_138] : memref<8x256xf32, #tpu.memory_space<vmem>>, vector<8x256xf32>
    %183 = arith.mulf %181, %182 : vector<8x256xf32>
    %c0_139 = arith.constant 0 : index
    %c0_140 = arith.constant 0 : index
    %184 = vector.load %arg20[%c0_139, %c0_140] : memref<2x8xf32, #tpu.memory_space<vmem>>, vector<2x8xf32>
    %cst_141 = arith.constant dense<0.000000e+00> : vector<2x256xf32>
    %185 = tpu.matmul %184, %183, %cst_141 {dimension_numbers = #tpu.dot_dimension_numbers<[1], [0], [0], [1], [0, 0, 1, 1], [], []>} : vector<2x8xf32>, vector<8x256xf32>, vector<2x256xf32> -> vector<2x256xf32>
    %cst_142 = arith.constant dense<0.000000e+00> : vector<2xf32>
    %186 = vector.multi_reduction <add>, %185, %cst_142 [1] : vector<2x256xf32> to vector<2xf32>
    %187 = vector.shape_cast %186 : vector<2xf32> to vector<2x1xf32>
    %188 = arith.negf %187 : vector<2x1xf32>
    %189 = math.exp %188 : vector<2x1xf32>
    %cst_143 = arith.constant 1.000000e+00 : f32
    %190 = vector.broadcast %cst_143 : f32 to vector<2x1xf32>
    %191 = arith.addf %190, %189 : vector<2x1xf32>
    %192 = arith.divf %190, %191 : vector<2x1xf32>
    %c0_144 = arith.constant 0 : index
    %c0_145 = arith.constant 0 : index
    %193 = vector.load %arg21[%c0_144, %c0_145] : memref<2x1xf32, #tpu.memory_space<vmem>>, vector<2x1xf32>
    tpu.vector_store %arg21[%c0_144, %c0_145], %192 {strides = array<i32>} : memref<2x1xf32, #tpu.memory_space<vmem>>, vector<2x1xf32>,
    return
  }
  func.func @transform_0(%arg0: i32) -> (i32, i32) {
    %c0_i32 = arith.constant 0 : i32
    %c0_i32_0 = arith.constant 0 : i32
    %c0_i32_1 = arith.constant 0 : i32
    return %c0_i32, %c0_i32_0 : i32, i32
  }
  func.func @transform_1(%arg0: i32) -> (i32, i32, i32) {
    %c0_i32 = arith.constant 0 : i32
    %c0_i32_0 = arith.constant 0 : i32
    %c0_i32_1 = arith.constant 0 : i32
    %c0_i32_2 = arith.constant 0 : i32
    return %c0_i32, %c0_i32_0, %c0_i32_1 : i32, i32, i32
  }
  func.func @transform_2(%arg0: i32) -> (i32, i32, i32) {
    %c0_i32 = arith.constant 0 : i32
    %c0_i32_0 = arith.constant 0 : i32
    %c0_i32_1 = arith.constant 0 : i32
    %c0_i32_2 = arith.constant 0 : i32
    return %c0_i32, %c0_i32_0, %c0_i32_1 : i32, i32, i32
  }
  func.func @transform_3(%arg0: i32) -> (i32, i32, i32) {
    %c0_i32 = arith.constant 0 : i32
    %c0_i32_0 = arith.constant 0 : i32
    %c0_i32_1 = arith.constant 0 : i32
    %c0_i32_2 = arith.constant 0 : i32
    return %c0_i32, %c0_i32_0, %c0_i32_1 : i32, i32, i32
  }
  func.func @transform_4(%arg0: i32) -> (i32, i32, i32) {
    %c0_i32 = arith.constant 0 : i32
    %c0_i32_0 = arith.constant 0 : i32
    %c0_i32_1 = arith.constant 0 : i32
    %c0_i32_2 = arith.constant 0 : i32
    return %c0_i32, %c0_i32_0, %c0_i32_1 : i32, i32, i32
  }
  func.func @transform_5(%arg0: i32) -> (i32, i32) {
    %c0_i32 = arith.constant 0 : i32
    %c0_i32_0 = arith.constant 0 : i32
    %c0_i32_1 = arith.constant 0 : i32
    return %c0_i32, %c0_i32_0 : i32, i32
  }
  func.func @transform_6(%arg0: i32) -> (i32, i32) {
    %c0_i32 = arith.constant 0 : i32
    %c0_i32_0 = arith.constant 0 : i32
    %c0_i32_1 = arith.constant 0 : i32
    return %c0_i32, %c0_i32_0 : i32, i32
  }
  func.func @transform_7(%arg0: i32) -> (i32, i32) {
    %c0_i32 = arith.constant 0 : i32
    %c0_i32_0 = arith.constant 0 : i32
    %c0_i32_1 = arith.constant 0 : i32
    return %c0_i32, %c0_i32_0 : i32, i32
  }
  func.func @transform_8(%arg0: i32) -> (i32, i32) {
    %c0_i32 = arith.constant 0 : i32
    %c0_i32_0 = arith.constant 0 : i32
    %c0_i32_1 = arith.constant 0 : i32
    return %c0_i32, %c0_i32_0 : i32, i32
  }
  func.func @transform_9(%arg0: i32) -> (i32, i32) {
    %c0_i32 = arith.constant 0 : i32
    %c0_i32_0 = arith.constant 0 : i32
    %c0_i32_1 = arith.constant 0 : i32
    return %c0_i32, %c0_i32_0 : i32, i32
  }
  func.func @transform_10(%arg0: i32) -> (i32, i32) {
    %c0_i32 = arith.constant 0 : i32
    %c0_i32_0 = arith.constant 0 : i32
    %c0_i32_1 = arith.constant 0 : i32
    return %c0_i32, %c0_i32_0 : i32, i32
  }
  func.func @transform_11(%arg0: i32) -> (i32, i32) {
    %c0_i32 = arith.constant 0 : i32
    %c0_i32_0 = arith.constant 0 : i32
    %c0_i32_1 = arith.constant 0 : i32
    return %c0_i32, %c0_i32_0 : i32, i32
  }
  func.func @transform_12(%arg0: i32) -> (i32, i32) {
    %c0_i32 = arith.constant 0 : i32
    %c0_i32_0 = arith.constant 0 : i32
    %c0_i32_1 = arith.constant 0 : i32
    return %c0_i32, %c0_i32_0 : i32, i32
  }
  func.func @transform_13(%arg0: i32) -> (i32, i32) {
    %c0_i32 = arith.constant 0 : i32
    %c0_i32_0 = arith.constant 0 : i32
    %c0_i32_1 = arith.constant 0 : i32
    return %c0_i32, %c0_i32_0 : i32, i32
  }
  func.func @transform_14(%arg0: i32) -> (i32, i32) {
    %c0_i32 = arith.constant 0 : i32
    %c0_i32_0 = arith.constant 0 : i32
    %c0_i32_1 = arith.constant 0 : i32
    return %c0_i32, %c0_i32_0 : i32, i32
  }
  func.func @transform_15(%arg0: i32) -> (i32, i32) {
    %c0_i32 = arith.constant 0 : i32
    %c0_i32_0 = arith.constant 0 : i32
    %c0_i32_1 = arith.constant 0 : i32
    return %c0_i32, %c0_i32_0 : i32, i32
  }
  func.func @transform_16(%arg0: i32) -> (i32, i32) {
    %c0_i32 = arith.constant 0 : i32
    %c0_i32_0 = arith.constant 0 : i32
    %c0_i32_1 = arith.constant 0 : i32
    return %c0_i32, %c0_i32_0 : i32, i32
  }
  func.func @transform_17(%arg0: i32) -> (i32, i32) {
    %c0_i32 = arith.constant 0 : i32
    %c0_i32_0 = arith.constant 0 : i32
    %c0_i32_1 = arith.constant 0 : i32
    return %c0_i32, %c0_i32_0 : i32, i32
  }
  func.func @transform_18(%arg0: i32) -> (i32, i32) {
    %c0_i32 = arith.constant 0 : i32
    %c0_i32_0 = arith.constant 0 : i32
    %c0_i32_1 = arith.constant 0 : i32
    return %c0_i32, %c0_i32_0 : i32, i32
  }
  func.func @transform_19(%arg0: i32) -> (i32, i32) {
    %c0_i32 = arith.constant 0 : i32
    %c0_i32_0 = arith.constant 0 : i32
    %c0_i32_1 = arith.constant 0 : i32
    return %c0_i32, %c0_i32_0 : i32, i32
  }
  func.func @transform_20(%arg0: i32) -> (i32, i32) {
    %c0_i32 = arith.constant 0 : i32
    %c0_i32_0 = arith.constant 0 : i32
    %c0_i32_1 = arith.constant 0 : i32
    return %c0_i32, %c0_i32_0 : i32, i32
  }
}

</mosaic_0001>

<bundles_post_ra>
// kernel: discriminator_forward.1
= control target key start
LH: loop header
LB: loop body
LE: loop exit
PB: predicated region body
PF: predicated region fallthrough
CT: control target
= control target key end

     0   :  { %s11355_s0 = inlined_call_operand.vmem [shape: bf16[128,256], index: 0, kind: input, shape index: {}]   ;;  %s11356_s1 = inlined_call_operand.hbm [shape: bf16[4,64,128], index: 1, kind: input, shape index: {}]   ;;  %s11357_s2 = inlined_call_operand.vmem [shape: bf16[4,33,64], index: 2, kind: input, shape index: {}]   ;;  %s11358_s3 = inlined_call_operand.vmem [shape: bf16[4,17,32], index: 3, kind: input, shape index: {}]   ;;  %s11359_s4 = inlined_call_operand.vmem [shape: bf16[4,9,16], index: 4, kind: input, shape index: {}]   ;;  %s11360_s5 = inlined_call_operand.vmem [shape: bf16[1024,256], index: 5, kind: input, shape index: {}]   ;;  %s11361_s6 = inlined_call_operand.vmem [shape: bf16[1024,256], index: 6, kind: input, shape index: {}]   ;;  %s11362_s7 = inlined_call_operand.vmem [shape: bf16[1024,256], index: 7, kind: input, shape index: {}]   ;;  %s11363_s8 = inlined_call_operand.hbm [shape: bf16[1024,256], index: 8, kind: input, shape index: {}]   ;;  %s11364_s9 = inlined_call_operand.vmem [shape: f32[2,256], index: 9, kind: input, shape index: {}]   ;;  %s11365_s10 = inlined_call_operand.vmem [shape: f32[256,16], index: 10, kind: input, shape index: {}]   ;;  %s11366_s11 = inlined_call_operand.hbm [shape: f32[16,256], index: 11, kind: input, shape index: {}]   ;;  %s11367_s12 = inlined_call_operand.hbm [shape: f32[2,256], index: 12, kind: input, shape index: {}]   ;;  %s11368_s13 = inlined_call_operand.vmem [shape: f32[256,32], index: 13, kind: input, shape index: {}]   ;;  %s11369_s14 = inlined_call_operand.hbm [shape: f32[32,256], index: 14, kind: input, shape index: {}]   ;;  %s11370_s15 = inlined_call_operand.hbm [shape: f32[2,256], index: 15, kind: input, shape index: {}]   ;;  %s11371_s16 = inlined_call_operand.vmem [shape: f32[256,64], index: 16, kind: input, shape index: {}]   ;;  %s11372_s17 = inlined_call_operand.hbm [shape: f32[64,256], index: 17, kind: input, shape index: {}]   ;;  %s11373_s18 = inlined_call_operand.hbm [shape: f32[8,256], index: 18, kind: input, shape index: {}]   ;;  %s11374_s19 = inlined_call_operand.hbm [shape: f32[2,8], index: 19, kind: input, shape index: {}]   ;;  %s11375_s20 = inlined_call_operand.vmem [shape: f32[2,1], index: 20, kind: output, shape index: {}]  }
   0x1   :  { %11386 = sst [smem:[#allocation22_spill]] %s11355_s0 }
   0x2   :  { %11387 = sst [smem:[#allocation23_spill]] %s11356_s1 }
   0x3   :  { %11388 = sst [smem:[#allocation24_spill]] %s11357_s2 }
   0x4   :  { %11389 = sst [smem:[#allocation25_spill]] %s11358_s3 }
   0x5   :  { %11390 = sst [smem:[#allocation26_spill]] %s11359_s4 }
   0x6   :  { %25 = vsyncpa [#allocation3], 0 }
   0x7   :  { %26 = vsyncpa [#allocation5], 0 }
   0x8   :  { %27 = vsyncpa [#allocation8], 0 }
   0x9   :  { %28 = vsyncpa [#allocation11], 0 }
   0xa   :  { %29 = vsyncpa [#allocation14], 0  ;;  %s8915_s1 = smov [#allocation4]  }
   0xb   :  { %s61_s22 = sshll.u32 %s8915_s1, 4  ;;  %s62_s22 = int_to_ptr.vmem [resolvable:$true] %s61_s22 }
   0xc   :  { %s8733_s23 = scalar_lea.vmem %s62_s22, 16384  ;;  %p8738_p1 = scmp.lt.s32.totalorder %s62_s22, %s62_s22 }
   0xd   :  { %p8734_p0 = scmp.ne.s32.totalorder %s62_s22, %s8733_s23  ;;  %p8739_p2 = scmp.lt.s32.totalorder %s8733_s23, %s8733_s23 }
   0xf   :  { %p8740_p3 = por %p8739_p2, %p8738_p1 }
  0x11   :  { %p8741_p4 = pnand %p8740_p3, %p8734_p0 }
  0x13   :  { %8744 = shalt.err (!%p8741_p4)
}
  0x14   :  { %s8916_s24 = smov 128   ;;  %s8917_s2 = smov 8  }
  0x15   :  { %67 = dma.hbm_to_vmem [thread:$0]  %s11363_s8, 16384, %s62_s22, [#allocation5], %s8916_s24, %s8916_s24, %s8917_s2  }
  0x16   :  { %s8918_s26 = smov [#allocation7]   ;;  %s8919_s28 = smov [#allocation10]  }
  0x17   :  { %s90_s27 = sshll.u32 %s8918_s26, 4  ;;  %s114_s4 = sshll.u32 %s8919_s28, 4  ;;  %s91_s27 = int_to_ptr.vmem [resolvable:$true] %s90_s27  ;;  %s115_s4 = int_to_ptr.vmem [resolvable:$true] %s114_s4 }
  0x18   :  { %s8753_s29 = scalar_lea.vmem %s91_s27, 64  ;;  %p8758_p6 = scmp.lt.s32.totalorder %s91_s27, %s91_s27 }
  0x19   :  { %p8754_p5 = scmp.ne.s32.totalorder %s91_s27, %s8753_s29  ;;  %p8759_p7 = scmp.lt.s32.totalorder %s8753_s29, %s8753_s29 }
  0x1b   :  { %p8760_p8 = por %p8759_p7, %p8758_p6 }
  0x1d   :  { %p8761_p9 = pnand %p8760_p8, %p8754_p5 }
  0x1f   :  { %8764 = shalt.err (!%p8761_p9)
}
  0x20   :  { %93 = dma.hbm_to_vmem [thread:$0]  %s11367_s12, 64, %s91_s27, [#allocation8]  }
  0x21   :  { %s8773_s21 = scalar_lea.vmem %s115_s4, 64  ;;  %p8778_p11 = scmp.lt.s32.totalorder %s115_s4, %s115_s4 }
  0x22   :  { %p8774_p10 = scmp.ne.s32.totalorder %s115_s4, %s8773_s21  ;;  %p8779_p12 = scmp.lt.s32.totalorder %s8773_s21, %s8773_s21 }
  0x24   :  { %p8780_p13 = por %p8779_p12, %p8778_p11 }
  0x26   :  { %p8781_p0 = pnand %p8780_p13, %p8774_p10 }
  0x28   :  { %8784 = shalt.err (!%p8781_p0)
}
  0x29   :  { %117 = dma.hbm_to_vmem [thread:$0]  %s11370_s15, 64, %s115_s4, [#allocation11]  }
  0x2a   :  { %s8920_s22 = smov [#allocation13]   ;;  %s8921_s24 = smov [#allocation2]  }
  0x2b   :  { %s138_s23 = sshll.u32 %s8920_s22, 4  ;;  %s37_s2 = sshll.u32 %s8921_s24, 4  ;;  %s139_s23 = int_to_ptr.vmem [resolvable:$true] %s138_s23  ;;  %s38_s2 = int_to_ptr.vmem [resolvable:$true] %s37_s2 }
  0x2c   :  { %s8793_s25 = scalar_lea.vmem %s139_s23, 256  ;;  %p8798_p2 = scmp.lt.s32.totalorder %s139_s23, %s139_s23 }
  0x2d   :  { %p8794_p1 = scmp.ne.s32.totalorder %s139_s23, %s8793_s25  ;;  %p8799_p3 = scmp.lt.s32.totalorder %s8793_s25, %s8793_s25 }
  0x2f   :  { %p8800_p4 = por %p8799_p3, %p8798_p2 }
  0x31   :  { %p8801_p5 = pnand %p8800_p4, %p8794_p1 }
  0x33   :  { %8804 = shalt.err (!%p8801_p5)
}
  0x34   :  { %141 = dma.hbm_to_vmem [thread:$0]  %s11373_s18, 256, %s139_s23, [#allocation14]  }
  0x35   :  { %s8813_s26 = scalar_lea.vmem %s38_s2, 2048  ;;  %p8818_p7 = scmp.lt.s32.totalorder %s38_s2, %s38_s2 }
  0x36   :  { %p8814_p6 = scmp.ne.s32.totalorder %s38_s2, %s8813_s26  ;;  %p8819_p8 = scmp.lt.s32.totalorder %s8813_s26, %s8813_s26 }
  0x38   :  { %p8820_p9 = por %p8819_p8, %p8818_p7 }
  0x3a   :  { %p8821_p10 = pnand %p8820_p9, %p8814_p6 }
  0x3c   :  { %8824 = shalt.err (!%p8821_p10)
}
  0x3d   :  { %s8922_s15 = smov 64   ;;  %s8923_s27 = smov 4  }
  0x3e   :  { %s11391_s29 = sld [smem:[#allocation23_spill]]  ;;  %s8924_s30 = smov [#allocation6]  }
  0x3f   :  { %s77_s0 = sshll.u32 %s8924_s30, 4  ;;  %s78_s0 = int_to_ptr.vmem [resolvable:$true] %s77_s0 }
  0x40   :  { %s8833_s21 = scalar_lea.vmem %s78_s0, 512  ;;  %p8838_p12 = scmp.lt.s32.totalorder %s78_s0, %s78_s0 }
  0x41   :  { %p8834_p11 = scmp.ne.s32.totalorder %s78_s0, %s8833_s21  ;;  %p8839_p13 = scmp.lt.s32.totalorder %s8833_s21, %s8833_s21 }
  0x43   :  { %p8840_p0 = por %p8839_p13, %p8838_p12 }
  0x44   :  { %43 = dma.hbm_to_vmem [thread:$0]  %s11391_s29, 2048, %s38_s2, [#allocation3], %s8922_s15, %s8922_s15, %s8923_s27  }
  0x45   :  { %p8841_p1 = pnand %p8840_p0, %p8834_p11 }
  0x47   :  { %8844 = shalt.err (!%p8841_p1)
}
  0x48   :  { %s8925_s18 = smov 256   ;;  %s8926_s8 = smov 16  }
  0x49   :  { %83 = dma.hbm_to_vmem [thread:$0]  %s11366_s11, 512, %s78_s0, [#allocation5], %s8925_s18, %s8925_s18, %s8926_s8  }
  0x4a   :  { %s8927_s23 = smov [#allocation9]   ;;  %s8928_s25 = smov [#allocation12]  }
  0x4b   :  { %s101_s24 = sshll.u32 %s8927_s23, 4  ;;  %s125_s2 = sshll.u32 %s8928_s25, 4  ;;  %s102_s24 = int_to_ptr.vmem [resolvable:$true] %s101_s24  ;;  %s126_s2 = int_to_ptr.vmem [resolvable:$true] %s125_s2 }
  0x4c   :  { %s8853_s12 = scalar_lea.vmem %s102_s24, 1024  ;;  %p8858_p3 = scmp.lt.s32.totalorder %s102_s24, %s102_s24 }
  0x4d   :  { %p8854_p2 = scmp.ne.s32.totalorder %s102_s24, %s8853_s12  ;;  %p8859_p4 = scmp.lt.s32.totalorder %s8853_s12, %s8853_s12 }
  0x4f   :  { %p8860_p5 = por %p8859_p4, %p8858_p3 }
  0x51   :  { %p8861_p6 = pnand %p8860_p5, %p8854_p2 }
  0x53   :  { %8864 = shalt.err (!%p8861_p6)
}
  0x54   :  { %107 = dma.hbm_to_vmem [thread:$0]  %s11369_s14, 1024, %s102_s24, [#allocation8], %s8925_s18, %s8925_s18, %s8926_s8  }
  0x55   :  { %s8873_s15 = scalar_lea.vmem %s126_s2, 2048  ;;  %p8878_p8 = scmp.lt.s32.totalorder %s126_s2, %s126_s2 }
  0x56   :  { %p8874_p7 = scmp.ne.s32.totalorder %s126_s2, %s8873_s15  ;;  %p8879_p9 = scmp.lt.s32.totalorder %s8873_s15, %s8873_s15 }
  0x58   :  { %p8880_p10 = por %p8879_p9, %p8878_p8 }
  0x5a   :  { %p8881_p11 = pnand %p8880_p10, %p8874_p7 }
  0x5c   :  { %8884 = shalt.err (!%p8881_p11)
}
  0x5d   :  { %131 = dma.hbm_to_vmem [thread:$0]  %s11372_s17, 2048, %s126_s2, [#allocation11], %s8925_s18, %s8925_s18, %s8926_s8  }
  0x5e   :  { %s8929_s28 = smov [#allocation15]  }
  0x5f   :  { %s148_s4 = sshll.u32 %s8929_s28, 4  ;;  %s149_s4 = int_to_ptr.vmem [resolvable:$true] %s148_s4 }
  0x60   :  { %s8893_s29 = scalar_lea.vmem %s149_s4, 32  ;;  %p8898_p13 = scmp.lt.s32.totalorder %s149_s4, %s149_s4 }
  0x61   :  { %p8894_p12 = scmp.ne.s32.totalorder %s149_s4, %s8893_s29  ;;  %p8899_p0 = scmp.lt.s32.totalorder %s8893_s29, %s8893_s29 }
  0x63   :  { %p8900_p1 = por %p8899_p0, %p8898_p13 }
  0x65   :  { %p8901_p2 = pnand %p8900_p1, %p8894_p12 }
  0x67   :  { %8904 = shalt.err (!%p8901_p2)
}
  0x68   :  { %151 = dma.hbm_to_vmem [thread:$0]  %s11374_s19, 32, %s149_s4, [#allocation14]  }
  0x69   :  { %8905 = dma.done.wait [#allocation3], 2048  }
  0x6a   :  { %8906 = vsyncadd [#allocation3], 4294965248 }
  0x6b   :  { %8907 = dma.done.wait [#allocation5], 16896  }
  0x6c   :  { %8908 = vsyncadd [#allocation5], 4294950400 }
  0x6d   :  { %8909 = dma.done.wait [#allocation8], 1088  }
  0x6e   :  { %8910 = vsyncadd [#allocation8], 4294966208 }
  0x6f   :  { %8911 = dma.done.wait [#allocation11], 2112  }
  0x70   :  { %8912 = vsyncadd [#allocation11], 4294965184 }
  0x71   :  { %8913 = dma.done.wait [#allocation14], 288  }
  0x72   :  { %8914 = vsyncadd [#allocation14], 4294967008  ;;  %v11380_v0 = vmov 0   ;;  %s11392_s21 = sld [smem:[#allocation22_spill]]  ;;  %v7907_v17 = vld [vmem:[#allocation2] sm:$0xff]   ;;  %v7909_v19 = vld [vmem:[#allocation2 + $0x8] sm:$0xff]  }
  0x73   :  { %340 = vmatprep.mubr.bf16.mxu0 %v11380_v0  ;;  %454 = vmatprep.mubr.bf16.mxu1 %v11380_v0  ;;  %v7908_v18 = vld [vmem:[#allocation2 + $0x20] sm:$0xff]   ;;  %v7910_v20 = vld [vmem:[#allocation2 + $0x28] sm:$0xff]   ;;  %v7911_v21 = vld [vmem:[#allocation2 + $0x10] sm:$0xff]   ;;  %s11393_s26 = sld [smem:[#allocation24_spill]]  ;;  %vm1849_vm0 = vcmask 523264   ;;  %vm3330_vm1 = vcmask 130048  }
  0x74   :  { %v7912_v22 = vld [vmem:[#allocation2 + $0x30] sm:$0xff]   ;;  %v7913_v23 = vld [vmem:[#allocation2 + $0x18] sm:$0xff]   ;;  %v7915_v27 = vld [vmem:[#allocation2 + $0x40] sm:$0xff]   ;;  %s11396_s18 = sld [smem:[#allocation25_spill]]  ;;  %vm3682_vm2 = vcmask 261120   ;;  %vm6927_vm3 = vcmask 64512  }
  0x75   :  { %v7914_v24 = vld [vmem:[#allocation2 + $0x38] sm:$0xff]   ;;  %v7916_v28 = vld [vmem:[#allocation2 + $0x60] sm:$0xff]   ;;  %v7917_v37 = vld [vmem:[#allocation2 + $0x48] sm:$0xff]   ;;  %s11397_s2 = sld [smem:[#allocation26_spill]]  ;;  %vm7002_vm4 = vcmask 1041408   ;;  %vm7014_vm5 = vcmask 1024  }
  0x76   :  { %v7925_v25 = vld [vmem:[%s11360_s5 + $0x74] ss:$8 sps:$4 sm:$0xff]   ;;  %v7923_v29 = vld [vmem:[%s11360_s5 + $0x70] ss:$8 sps:$4 sm:$0xff]   ;;  %v7931_v31 = vld [vmem:[%s11360_s5 + $0x64] ss:$8 sps:$4 sm:$0xff]  }
  0x77   :  { %v7928_v26 = vld [vmem:[%s11360_s5 + $0x174] ss:$8 sps:$4 sm:$0xff]   ;;  %v7926_v30 = vld [vmem:[%s11360_s5 + $0x170] ss:$8 sps:$4 sm:$0xff]   ;;  %v7934_v32 = vld [vmem:[%s11360_s5 + $0x164] ss:$8 sps:$4 sm:$0xff]  }
  0x78   :  { %v7883_v1 = vld [vmem:[%s11392_s21 + $0x74] ss:$8 sps:$4 sm:$0xff]   ;;  %v7885_v2 = vld [vmem:[%s11392_s21 + $0x70] ss:$8 sps:$4 sm:$0xff]   ;;  %v7886_v3 = vld [vmem:[%s11392_s21 + $0x64] ss:$8 sps:$4 sm:$0xff]  }
  0x79   :  { %308 = vmatprep.subr.bf16.mxu0 %v7883_v1  ;;  %422 = vmatprep.subr.bf16.mxu1 %v7883_v1  ;;  %v7888_v4 = vld [vmem:[%s11392_s21 + $0x60] ss:$8 sps:$4 sm:$0xff]   ;;  %v7889_v5 = vld [vmem:[%s11392_s21 + $0x54] ss:$8 sps:$4 sm:$0xff]   ;;  %v7891_v6 = vld [vmem:[%s11392_s21 + $0x50] ss:$8 sps:$4 sm:$0xff]  }
  0x7a   :  { %309 = vmatpush1.bf16.msra.mxu0 %v7885_v2  ;;  %423 = vmatpush1.bf16.msra.mxu1 %v7885_v2  ;;  %v7892_v7 = vld [vmem:[%s11392_s21 + $0x44] ss:$8 sps:$4 sm:$0xff]   ;;  %v7894_v8 = vld [vmem:[%s11392_s21 + $0x40] ss:$8 sps:$4 sm:$0xff]   ;;  %v7895_v9 = vld [vmem:[%s11392_s21 + $0x34] ss:$8 sps:$4 sm:$0xff]  }
  0x7b   :  { %310 = vmatprep.subr.bf16.mxu0 %v7886_v3  ;;  %424 = vmatprep.subr.bf16.mxu1 %v7886_v3  ;;  %v7897_v10 = vld [vmem:[%s11392_s21 + $0x30] ss:$8 sps:$4 sm:$0xff]   ;;  %v7898_v11 = vld [vmem:[%s11392_s21 + $0x24] ss:$8 sps:$4 sm:$0xff]   ;;  %v7900_v12 = vld [vmem:[%s11392_s21 + $0x20] ss:$8 sps:$4 sm:$0xff]  }
  0x7c   :  { %v7901_v13 = vld [vmem:[%s11392_s21 + $0x14] ss:$8 sps:$4 sm:$0xff]   ;;  %v7903_v14 = vld [vmem:[%s11392_s21 + $0x10] ss:$8 sps:$4 sm:$0xff]   ;;  %v7904_v15 = vld [vmem:[%s11392_s21 + $0x4] ss:$8 sps:$4 sm:$0xff]  }
  0x7d   :  { %v9114_v16 = vld [vmem:[%s11392_s21] ss:$8 sps:$4 sm:$0xff]   ;;  %v7937_v35 = vld [vmem:[%s11360_s5 + $0x54] ss:$8 sps:$4 sm:$0xff]   ;;  %v7935_v39 = vld [vmem:[%s11360_s5 + $0x50] ss:$8 sps:$4 sm:$0xff]  }
  0x7e   :  { %311 = vmatpush1.bf16.msra.mxu0 %v7888_v4  ;;  %425 = vmatpush1.bf16.msra.mxu1 %v7888_v4  ;;  %v7929_v33 = vld [vmem:[%s11360_s5 + $0x60] ss:$8 sps:$4 sm:$0xff]   ;;  %v7940_v36 = vld [vmem:[%s11360_s5 + $0x154] ss:$8 sps:$4 sm:$0xff]   ;;  %v7938_v40 = vld [vmem:[%s11360_s5 + $0x150] ss:$8 sps:$4 sm:$0xff]  }
  0x7f   :  { %312 = vmatprep.subr.bf16.mxu0 %v7889_v5  ;;  %426 = vmatprep.subr.bf16.mxu1 %v7889_v5  ;;  %v7932_v34 = vld [vmem:[%s11360_s5 + $0x160] ss:$8 sps:$4 sm:$0xff]   ;;  %v7943_v41 = vld [vmem:[%s11360_s5 + $0x44] ss:$8 sps:$4 sm:$0xff]   ;;  %v7949_v45 = vld [vmem:[%s11360_s5 + $0x34] ss:$8 sps:$4 sm:$0xff]  }
  0x80   :  { %v7918_v38 = vld [vmem:[#allocation2 + $0x68] sm:$0xff]   ;;  %v7952_v46 = vld [vmem:[%s11360_s5 + $0x134] ss:$8 sps:$4 sm:$0xff]   ;;  %v7947_v49 = vld [vmem:[%s11360_s5 + $0x30] ss:$8 sps:$4 sm:$0xff]  }
  0x81   :  { %v7946_v42 = vld [vmem:[%s11360_s5 + $0x144] ss:$8 sps:$4 sm:$0xff]   ;;  %v7941_v43 = vld [vmem:[%s11360_s5 + $0x40] ss:$8 sps:$4 sm:$0xff]   ;;  %v7919_v47 = vld [vmem:[#allocation2 + $0x50] sm:$0xff]  }
  0x82   :  { %313 = vmatpush1.bf16.msra.mxu0 %v7891_v6  ;;  %427 = vmatpush1.bf16.msra.mxu1 %v7891_v6  ;;  %v7944_v44 = vld [vmem:[%s11360_s5 + $0x140] ss:$8 sps:$4 sm:$0xff]   ;;  %v7920_v48 = vld [vmem:[#allocation2 + $0x70] sm:$0xff]   ;;  %v7955_v51 = vld [vmem:[%s11360_s5 + $0x24] ss:$8 sps:$4 sm:$0xff]  }
  0x83   :  { %314 = vmatprep.subr.bf16.mxu0 %v7892_v7  ;;  %428 = vmatprep.subr.bf16.mxu1 %v7892_v7  ;;  %v7950_v50 = vld [vmem:[%s11360_s5 + $0x130] ss:$8 sps:$4 sm:$0xff]   ;;  %v7958_v52 = vld [vmem:[%s11360_s5 + $0x124] ss:$8 sps:$4 sm:$0xff]   ;;  %v7953_v53 = vld [vmem:[%s11360_s5 + $0x20] ss:$8 sps:$4 sm:$0xff]  }
  0x84   :  { %v7956_v54 = vld [vmem:[%s11360_s5 + $0x120] ss:$8 sps:$4 sm:$0xff]   ;;  %v7961_v55 = vld [vmem:[%s11360_s5 + $0x14] ss:$8 sps:$4 sm:$0xff]   ;;  %v7959_v59 = vld [vmem:[%s11360_s5 + $0x10] ss:$8 sps:$4 sm:$0xff]  }
  0x85   :  { %v7964_v56 = vld [vmem:[%s11360_s5 + $0x114] ss:$8 sps:$4 sm:$0xff]   ;;  %v7962_v60 = vld [vmem:[%s11360_s5 + $0x110] ss:$8 sps:$4 sm:$0xff]   ;;  %v7967_v61 = vld [vmem:[%s11360_s5 + $0x4] ss:$8 sps:$4 sm:$0xff]  }
  0x86   :  { %315 = vmatpush1.bf16.msra.mxu0 %v7894_v8  ;;  %429 = vmatpush1.bf16.msra.mxu1 %v7894_v8  ;;  %v7921_v57 = vld [vmem:[#allocation2 + $0x58] sm:$0xff]   ;;  %v7970_v62 = vld [vmem:[%s11360_s5 + $0x104] ss:$8 sps:$4 sm:$0xff]   ;;  %v7965_v63 = vld [vmem:[%s11360_s5] ss:$8 sps:$4 sm:$0xff]  }
  0x87   :  { %316 = vmatprep.subr.bf16.mxu0 %v7895_v9  ;;  %430 = vmatprep.subr.bf16.mxu1 %v7895_v9  ;;  %v7922_v58 = vld [vmem:[#allocation2 + $0x78] sm:$0xff]  }
  0x8a   :  { %317 = vmatpush1.bf16.msra.mxu0 %v7897_v10  ;;  %431 = vmatpush1.bf16.msra.mxu1 %v7897_v10 }
  0x8b   :  { %318 = vmatprep.subr.bf16.mxu0 %v7898_v11  ;;  %432 = vmatprep.subr.bf16.mxu1 %v7898_v11 }
  0x8e   :  { %319 = vmatpush1.bf16.msra.mxu0 %v7900_v12  ;;  %433 = vmatpush1.bf16.msra.mxu1 %v7900_v12 }
  0x8f   :  { %320 = vmatprep.subr.bf16.mxu0 %v7901_v13  ;;  %434 = vmatprep.subr.bf16.mxu1 %v7901_v13 }
  0x92   :  { %321 = vmatpush1.bf16.msra.mxu0 %v7903_v14  ;;  %435 = vmatpush1.bf16.msra.mxu1 %v7903_v14 }
  0x93   :  { %322 = vmatprep.subr.bf16.mxu0 %v7904_v15  ;;  %436 = vmatprep.subr.bf16.mxu1 %v7904_v15 }
  0x96   :  { %323 = vmatpush1.bf16.msra.mxu0 %v9114_v16  ;;  %437 = vmatpush1.bf16.msra.mxu1 %v9114_v16 }
  0x97   :  { %536 = vmatprep.subr.bf16.mxu0 %v7883_v1  ;;  %650 = vmatprep.subr.bf16.mxu1 %v7883_v1  ;;  %v7968_v1 = vld [vmem:[%s11360_s5 + $0x100] ss:$8 sps:$4 sm:$0xff]  }
  0x99   :  { %341 = vmatmul.mubr.bf16.vlgmr.msra.gmra.mxu0 %v7907_v17  ;;  %455 = vmatmul.mubr.bf16.vlgmr.msra.gmra.mxu1 %v7908_v18  ;;  %v7992_v17 = vld [vmem:[%s11360_s5 + $0x1c0] ss:$8 sps:$4 sm:$0xff]   ;;  %v7997_v18 = vld [vmem:[%s11360_s5 + $0xb4] ss:$8 sps:$4 sm:$0xff]  }
  0x9a   :  { %350 = vmatprep.mubr.bf16.mxu0 %v11380_v0  ;;  %464 = vmatprep.mubr.bf16.mxu1 %v11380_v0 }
  0x9b   :  { %537 = vmatpush1.bf16.msra.mxu0 %v7885_v2  ;;  %651 = vmatpush1.bf16.msra.mxu1 %v7885_v2  ;;  %v7973_v2 = vld [vmem:[%s11360_s5 + $0xf4] ss:$8 sps:$4 sm:$0xff]  }
  0x9c   :  { %538 = vmatprep.subr.bf16.mxu0 %v7886_v3  ;;  %652 = vmatprep.subr.bf16.mxu1 %v7886_v3  ;;  %v7976_v3 = vld [vmem:[%s11360_s5 + $0x1f4] ss:$8 sps:$4 sm:$0xff]  }
  0x9f   :  { %539 = vmatpush1.bf16.msra.mxu0 %v7888_v4  ;;  %653 = vmatpush1.bf16.msra.mxu1 %v7888_v4  ;;  %v7971_v4 = vld [vmem:[%s11360_s5 + $0xf0] ss:$8 sps:$4 sm:$0xff]  }
  0xa0   :  { %540 = vmatprep.subr.bf16.mxu0 %v7889_v5  ;;  %654 = vmatprep.subr.bf16.mxu1 %v7889_v5  ;;  %v7974_v5 = vld [vmem:[%s11360_s5 + $0x1f0] ss:$8 sps:$4 sm:$0xff]  }
  0xa1   :  { %351 = vmatmul.mubr.bf16.gmra.mxu0 %v7909_v19  ;;  %465 = vmatmul.mubr.bf16.gmra.mxu1 %v7910_v20  ;;  %v8000_v19 = vld [vmem:[%s11360_s5 + $0x1b4] ss:$8 sps:$4 sm:$0xff]   ;;  %v7995_v20 = vld [vmem:[%s11360_s5 + $0xb0] ss:$8 sps:$4 sm:$0xff]  }
  0xa2   :  { %360 = vmatprep.mubr.bf16.mxu0 %v11380_v0  ;;  %474 = vmatprep.mubr.bf16.mxu1 %v11380_v0 }
  0xa3   :  { %541 = vmatpush1.bf16.msra.mxu0 %v7891_v6  ;;  %655 = vmatpush1.bf16.msra.mxu1 %v7891_v6  ;;  %v7979_v6 = vld [vmem:[%s11360_s5 + $0xe4] ss:$8 sps:$4 sm:$0xff]  }
  0xa4   :  { %542 = vmatprep.subr.bf16.mxu0 %v7892_v7  ;;  %656 = vmatprep.subr.bf16.mxu1 %v7892_v7  ;;  %v7982_v7 = vld [vmem:[%s11360_s5 + $0x1e4] ss:$8 sps:$4 sm:$0xff]  }
  0xa7   :  { %543 = vmatpush1.bf16.msra.mxu0 %v7894_v8  ;;  %657 = vmatpush1.bf16.msra.mxu1 %v7894_v8  ;;  %v7977_v8 = vld [vmem:[%s11360_s5 + $0xe0] ss:$8 sps:$4 sm:$0xff]  }
  0xa8   :  { %544 = vmatprep.subr.bf16.mxu0 %v7895_v9  ;;  %658 = vmatprep.subr.bf16.mxu1 %v7895_v9  ;;  %v7980_v9 = vld [vmem:[%s11360_s5 + $0x1e0] ss:$8 sps:$4 sm:$0xff]  }
  0xa9   :  { %361 = vmatmul.mubr.bf16.gmra.mxu0 %v7911_v21  ;;  %475 = vmatmul.mubr.bf16.gmra.mxu1 %v7912_v22  ;;  %v7998_v21 = vld [vmem:[%s11360_s5 + $0x1b0] ss:$8 sps:$4 sm:$0xff]   ;;  %v8003_v22 = vld [vmem:[%s11360_s5 + $0xa4] ss:$8 sps:$4 sm:$0xff]  }
  0xaa   :  { %370 = vmatprep.mubr.bf16.mxu0 %v11380_v0  ;;  %484 = vmatprep.mubr.bf16.mxu1 %v11380_v0 }
  0xab   :  { %545 = vmatpush1.bf16.msra.mxu0 %v7897_v10  ;;  %659 = vmatpush1.bf16.msra.mxu1 %v7897_v10  ;;  %v7985_v10 = vld [vmem:[%s11360_s5 + $0xd4] ss:$8 sps:$4 sm:$0xff]  }
  0xac   :  { %546 = vmatprep.subr.bf16.mxu0 %v7898_v11  ;;  %660 = vmatprep.subr.bf16.mxu1 %v7898_v11  ;;  %v7988_v11 = vld [vmem:[%s11360_s5 + $0x1d4] ss:$8 sps:$4 sm:$0xff]  }
  0xaf   :  { %547 = vmatpush1.bf16.msra.mxu0 %v7900_v12  ;;  %661 = vmatpush1.bf16.msra.mxu1 %v7900_v12  ;;  %v7983_v12 = vld [vmem:[%s11360_s5 + $0xd0] ss:$8 sps:$4 sm:$0xff]  }
  0xb0   :  { %548 = vmatprep.subr.bf16.mxu0 %v7901_v13  ;;  %662 = vmatprep.subr.bf16.mxu1 %v7901_v13  ;;  %v7986_v13 = vld [vmem:[%s11360_s5 + $0x1d0] ss:$8 sps:$4 sm:$0xff]  }
  0xb1   :  { %371 = vmatmul.mubr.bf16.gmra.mxu0 %v7913_v23  ;;  %485 = vmatmul.mubr.bf16.gmra.mxu1 %v7914_v24  ;;  %v8006_v23 = vld [vmem:[%s11360_s5 + $0x1a4] ss:$8 sps:$4 sm:$0xff]   ;;  %v8001_v24 = vld [vmem:[%s11360_s5 + $0xa0] ss:$8 sps:$4 sm:$0xff]  }
  0xb2   :  { %568 = vmatprep.mubr.bf16.mxu0 %v11380_v0  ;;  %682 = vmatprep.mubr.bf16.mxu1 %v11380_v0 }
  0xb3   :  { %549 = vmatpush1.bf16.msra.mxu0 %v7903_v14  ;;  %663 = vmatpush1.bf16.msra.mxu1 %v7903_v14  ;;  %v7991_v14 = vld [vmem:[%s11360_s5 + $0xc4] ss:$8 sps:$4 sm:$0xff]  }
  0xb4   :  { %550 = vmatprep.subr.bf16.mxu0 %v7904_v15  ;;  %664 = vmatprep.subr.bf16.mxu1 %v7904_v15  ;;  %v7994_v15 = vld [vmem:[%s11360_s5 + $0x1c4] ss:$8 sps:$4 sm:$0xff]  }
  0xb7   :  { %551 = vmatpush1.bf16.msra.mxu0 %v9114_v16  ;;  %665 = vmatpush1.bf16.msra.mxu1 %v9114_v16  ;;  %v7989_v16 = vld [vmem:[%s11360_s5 + $0xc0] ss:$8 sps:$4 sm:$0xff]  }
  0xb8   :  { %1499 = vmatprep.subr.bf16.mxu0 %v7925_v25  ;;  %1572 = vmatprep.subr.bf16.mxu1 %v7928_v26  ;;  %v8004_v25 = vld [vmem:[%s11360_s5 + $0x1a0] ss:$8 sps:$4 sm:$0xff]   ;;  %v8009_v26 = vld [vmem:[%s11360_s5 + $0x94] ss:$8 sps:$4 sm:$0xff]  }
  0xba   :  { %569 = vmatmul.mubr.bf16.vlgmr.msra.gmra.mxu0 %v7915_v27  ;;  %683 = vmatmul.mubr.bf16.vlgmr.msra.gmra.mxu1 %v7916_v28  ;;  %v8012_v27 = vld [vmem:[%s11360_s5 + $0x194] ss:$8 sps:$4 sm:$0xff]   ;;  %v8007_v28 = vld [vmem:[%s11360_s5 + $0x90] ss:$8 sps:$4 sm:$0xff]  }
  0xbb   :  { %578 = vmatprep.mubr.bf16.mxu0 %v11380_v0  ;;  %692 = vmatprep.mubr.bf16.mxu1 %v11380_v0 }
  0xbc   :  { %1500 = vmatpush1.bf16.msra.mxu0 %v7923_v29  ;;  %1573 = vmatpush1.bf16.msra.mxu1 %v7926_v30  ;;  %v8010_v29 = vld [vmem:[%s11360_s5 + $0x190] ss:$8 sps:$4 sm:$0xff]   ;;  %v8015_v30 = vld [vmem:[%s11360_s5 + $0x84] ss:$8 sps:$4 sm:$0xff]  }
  0xbd   :  { %1501 = vmatprep.subr.bf16.mxu0 %v7931_v31  ;;  %1574 = vmatprep.subr.bf16.mxu1 %v7934_v32  ;;  %v8018_v31 = vld [vmem:[%s11360_s5 + $0x184] ss:$8 sps:$4 sm:$0xff]   ;;  %v8013_v32 = vld [vmem:[%s11360_s5 + $0x80] ss:$8 sps:$4 sm:$0xff]  }
  0xc0   :  { %1502 = vmatpush1.bf16.msra.mxu0 %v7929_v33  ;;  %1575 = vmatpush1.bf16.msra.mxu1 %v7932_v34  ;;  %v8016_v33 = vld [vmem:[%s11360_s5 + $0x180] ss:$8 sps:$4 sm:$0xff]   ;;  %v8021_v34 = vld [vmem:[%s11360_s5 + $0x274] ss:$8 sps:$4 sm:$0xff]  }
  0xc1   :  { %1503 = vmatprep.subr.bf16.mxu0 %v7937_v35  ;;  %1576 = vmatprep.subr.bf16.mxu1 %v7940_v36  ;;  %v8024_v35 = vld [vmem:[%s11360_s5 + $0x374] ss:$8 sps:$4 sm:$0xff]  }
  0xc2   :  { %579 = vmatmul.mubr.bf16.gmra.mxu0 %v7917_v37  ;;  %693 = vmatmul.mubr.bf16.gmra.mxu1 %v7918_v38 }
  0xc3   :  { %588 = vmatprep.mubr.bf16.mxu0 %v11380_v0  ;;  %702 = vmatprep.mubr.bf16.mxu1 %v11380_v0 }
  0xc4   :  { %1504 = vmatpush1.bf16.msra.mxu0 %v7935_v39  ;;  %1577 = vmatpush1.bf16.msra.mxu1 %v7938_v40 }
  0xc5   :  { %1505 = vmatprep.subr.bf16.mxu0 %v7943_v41  ;;  %1578 = vmatprep.subr.bf16.mxu1 %v7946_v42  ;;  %v8019_v42 = vld [vmem:[%s11360_s5 + $0x270] ss:$8 sps:$4 sm:$0xff]  }
  0xc8   :  { %1506 = vmatpush1.bf16.msra.mxu0 %v7941_v43  ;;  %1579 = vmatpush1.bf16.msra.mxu1 %v7944_v44  ;;  %v8022_v43 = vld [vmem:[%s11360_s5 + $0x370] ss:$8 sps:$4 sm:$0xff]  }
  0xc9   :  { %1507 = vmatprep.subr.bf16.mxu0 %v7949_v45  ;;  %1580 = vmatprep.subr.bf16.mxu1 %v7952_v46  ;;  %v8027_v46 = vld [vmem:[%s11360_s5 + $0x264] ss:$8 sps:$4 sm:$0xff]  }
  0xca   :  { %589 = vmatmul.mubr.bf16.gmra.mxu0 %v7919_v47  ;;  %703 = vmatmul.mubr.bf16.gmra.mxu1 %v7920_v48  ;;  %v8030_v47 = vld [vmem:[%s11360_s5 + $0x364] ss:$8 sps:$4 sm:$0xff]  }
  0xcb   :  { %598 = vmatprep.mubr.bf16.mxu0 %v11380_v0  ;;  %712 = vmatprep.mubr.bf16.mxu1 %v11380_v0 }
  0xcc   :  { %1508 = vmatpush1.bf16.msra.mxu0 %v7947_v49  ;;  %1581 = vmatpush1.bf16.msra.mxu1 %v7950_v50 }
  0xcd   :  { %1509 = vmatprep.subr.bf16.mxu0 %v7955_v51  ;;  %1582 = vmatprep.subr.bf16.mxu1 %v7958_v52 }
  0xd0   :  { %1510 = vmatpush1.bf16.msra.mxu0 %v7953_v53  ;;  %1583 = vmatpush1.bf16.msra.mxu1 %v7956_v54  ;;  %v8025_v54 = vld [vmem:[%s11360_s5 + $0x260] ss:$8 sps:$4 sm:$0xff]  }
  0xd1   :  { %1511 = vmatprep.subr.bf16.mxu0 %v7961_v55  ;;  %1584 = vmatprep.subr.bf16.mxu1 %v7964_v56  ;;  %v8028_v55 = vld [vmem:[%s11360_s5 + $0x360] ss:$8 sps:$4 sm:$0xff]   ;;  %v8033_v56 = vld [vmem:[%s11360_s5 + $0x254] ss:$8 sps:$4 sm:$0xff]  }
  0xd2   :  { %599 = vmatmul.mubr.bf16.gmra.mxu0 %v7921_v57  ;;  %713 = vmatmul.mubr.bf16.gmra.mxu1 %v7922_v58  ;;  %v8036_v57 = vld [vmem:[%s11360_s5 + $0x354] ss:$8 sps:$4 sm:$0xff]  }
  0xd4   :  { %1512 = vmatpush1.bf16.msra.mxu0 %v7959_v59  ;;  %1585 = vmatpush1.bf16.msra.mxu1 %v7962_v60 }
  0xd5   :  { %1513 = vmatprep.subr.bf16.mxu0 %v7967_v61  ;;  %1586 = vmatprep.subr.bf16.mxu1 %v7970_v62  ;;  %v8031_v62 = vld [vmem:[%s11360_s5 + $0x250] ss:$8 sps:$4 sm:$0xff]  }
  0xd8   :  { %1514 = vmatpush1.bf16.msra.mxu0 %v7965_v63  ;;  %1587 = vmatpush1.bf16.msra.mxu1 %v7968_v1  ;;  %v8034_v63 = vld [vmem:[%s11360_s5 + $0x350] ss:$8 sps:$4 sm:$0xff]   ;;  %v8039_v1 = vld [vmem:[%s11360_s5 + $0x244] ss:$8 sps:$4 sm:$0xff]  }
  0xd9   :  { %1515 = vmatprep.subr.bf16.mxu0 %v7973_v2  ;;  %1588 = vmatprep.subr.bf16.mxu1 %v7976_v3  ;;  %v8042_v2 = vld [vmem:[%s11360_s5 + $0x344] ss:$8 sps:$4 sm:$0xff]  }
  0xdc   :  { %1516 = vmatpush2.bf16.msra.mxu0 %v7971_v4  ;;  %1589 = vmatpush2.bf16.msra.mxu1 %v7974_v5 }
  0xdd   :  { %1517 = vmatprep.subr.bf16.mxu0 %v7979_v6  ;;  %1590 = vmatprep.subr.bf16.mxu1 %v7982_v7 }
  0xe0   :  { %1518 = vmatpush2.bf16.msra.mxu0 %v7977_v8  ;;  %1591 = vmatpush2.bf16.msra.mxu1 %v7980_v9 }
  0xe1   :  { %1519 = vmatprep.subr.bf16.mxu0 %v7985_v10  ;;  %1592 = vmatprep.subr.bf16.mxu1 %v7988_v11  ;;  %v8037_v11 = vld [vmem:[%s11360_s5 + $0x240] ss:$8 sps:$4 sm:$0xff]  }
  0xe4   :  { %1520 = vmatpush2.bf16.msra.mxu0 %v7983_v12  ;;  %1593 = vmatpush2.bf16.msra.mxu1 %v7986_v13  ;;  %v8040_v12 = vld [vmem:[%s11360_s5 + $0x340] ss:$8 sps:$4 sm:$0xff]   ;;  %v8045_v13 = vld [vmem:[%s11360_s5 + $0x234] ss:$8 sps:$4 sm:$0xff]  }
  0xe5   :  { %1521 = vmatprep.subr.bf16.mxu0 %v7991_v14  ;;  %1594 = vmatprep.subr.bf16.mxu1 %v7994_v15  ;;  %v8048_v14 = vld [vmem:[%s11360_s5 + $0x334] ss:$8 sps:$4 sm:$0xff]  }
  0xe8   :  { %1522 = vmatpush2.bf16.msra.mxu0 %v7989_v16  ;;  %1595 = vmatpush2.bf16.msra.mxu1 %v7992_v17 }
  0xe9   :  { %1523 = vmatprep.subr.bf16.mxu0 %v7997_v18  ;;  %1596 = vmatprep.subr.bf16.mxu1 %v8000_v19  ;;  %v8043_v19 = vld [vmem:[%s11360_s5 + $0x230] ss:$8 sps:$4 sm:$0xff]  }
  0xec   :  { %1524 = vmatpush2.bf16.msra.mxu0 %v7995_v20  ;;  %1597 = vmatpush2.bf16.msra.mxu1 %v7998_v21  ;;  %v8046_v20 = vld [vmem:[%s11360_s5 + $0x330] ss:$8 sps:$4 sm:$0xff]   ;;  %v8051_v21 = vld [vmem:[%s11360_s5 + $0x224] ss:$8 sps:$4 sm:$0xff]  }
  0xed   :  { %1525 = vmatprep.subr.bf16.mxu0 %v8003_v22  ;;  %1598 = vmatprep.subr.bf16.mxu1 %v8006_v23  ;;  %v8054_v22 = vld [vmem:[%s11360_s5 + $0x324] ss:$8 sps:$4 sm:$0xff]  }
  0xf0   :  { %1526 = vmatpush2.bf16.msra.mxu0 %v8001_v24  ;;  %1599 = vmatpush2.bf16.msra.mxu1 %v8004_v25 }
  0xf1   :  { %1527 = vmatprep.subr.bf16.mxu0 %v8009_v26  ;;  %1600 = vmatprep.subr.bf16.mxu1 %v8012_v27 }
  0xf4   :  { %1528 = vmatpush2.bf16.msra.mxu0 %v8007_v28  ;;  %1601 = vmatpush2.bf16.msra.mxu1 %v8010_v29 }
  0xf5   :  { %1529 = vmatprep.subr.bf16.mxu0 %v8015_v30  ;;  %1602 = vmatprep.subr.bf16.mxu1 %v8018_v31 }
  0xf8   :  { %1530 = vmatpush2.bf16.msra.mxu0 %v8013_v32  ;;  %1603 = vmatpush2.bf16.msra.mxu1 %v8016_v33  ;;  %v8049_v33 = vld [vmem:[%s11360_s5 + $0x220] ss:$8 sps:$4 sm:$0xff]  }
  0xf9   :  { %1645 = vmatprep.subr.bf16.mxu0 %v8021_v34  ;;  %1718 = vmatprep.subr.bf16.mxu1 %v8024_v35  ;;  %v8052_v34 = vld [vmem:[%s11360_s5 + $0x320] ss:$8 sps:$4 sm:$0xff]   ;;  %v8057_v35 = vld [vmem:[%s11360_s5 + $0x214] ss:$8 sps:$4 sm:$0xff]  }
 0x159   :  { %v342_v36 = vpop.f32.mrf.mxu0  ;;  %v456_v37 = vpop.f32.mrf.mxu1 }
 0x15b   :  { %v344_v38 = vpop.f32.mrf.mxu0  ;;  %v458_v39 = vpop.f32.mrf.mxu1 }
 0x15d   :  { %v346_v40 = vpop.f32.mrf.mxu0  ;;  %v460_v41 = vpop.f32.mrf.mxu1 }
 0x15e   :  { %v381_v50 = vpack.c.bf16 %v346_v40, %v342_v36  ;;  %v495_v51 = vpack.c.bf16 %v460_v41, %v456_v37  ;;  %v8060_v36 = vld [vmem:[%s11360_s5 + $0x314] ss:$8 sps:$4 sm:$0xff]  }
 0x15f   :  { %v348_v44 = vpop.f32.mrf.mxu0  ;;  %v462_v45 = vpop.f32.mrf.mxu1 }
 0x160   :  { %v382_v48 = vpack.c.bf16 %v348_v44, %v344_v38  ;;  %v496_v49 = vpack.c.bf16 %v462_v45, %v458_v39  ;;  %v8058_v44 = vld [vmem:[%s11360_s5 + $0x310] ss:$8 sps:$4 sm:$0xff]  }
 0x161   :  { %v352_v52 = vpop.f32.mrf.mxu0  ;;  %v466_v53 = vpop.f32.mrf.mxu1 }
 0x162   :  { %1531 = vmatprep.mubr.bf16.mxu0 %v382_v48  ;;  %1604 = vmatprep.mubr.bf16.mxu1 %v496_v49  ;;  %v8066_v48 = vld [vmem:[%s11360_s5 + $0x304] ss:$8 sps:$4 sm:$0xff]  }
 0x163   :  { %1532 = vmatmul.mubr.bf16.vlgmr.msra.gmra.mxu0 %v381_v50  ;;  %1605 = vmatmul.mubr.bf16.vlgmr.msra.gmra.mxu1 %v495_v51  ;;  %v354_v58 = vpop.f32.mrf.mxu0  ;;  %v468_v59 = vpop.f32.mrf.mxu1  ;;  %v8061_v51 = vld [vmem:[%s11360_s5 + $0x200] ss:$8 sps:$4 sm:$0xff]  }
 0x164   :  { %1646 = vmatpush1.bf16.msra.mxu0 %v8019_v42  ;;  %1719 = vmatpush1.bf16.msra.mxu1 %v8022_v43  ;;  %v8055_v43 = vld [vmem:[%s11360_s5 + $0x210] ss:$8 sps:$4 sm:$0xff]  }
 0x165   :  { %1647 = vmatprep.subr.bf16.mxu0 %v8027_v46  ;;  %1720 = vmatprep.subr.bf16.mxu1 %v8030_v47  ;;  %v356_v60 = vpop.f32.mrf.mxu0  ;;  %v470_v61 = vpop.f32.mrf.mxu1  ;;  %v8063_v47 = vld [vmem:[%s11360_s5 + $0x204] ss:$8 sps:$4 sm:$0xff]  }
 0x166   :  { %v383_v3 = vpack.c.bf16 %v356_v60, %v352_v52  ;;  %v497_v4 = vpack.c.bf16 %v470_v61, %v466_v53  ;;  %v8064_v52 = vld [vmem:[%s11360_s5 + $0x300] ss:$8 sps:$4 sm:$0xff]   ;;  %v8070_v60 = vld [vmem:[%s11360_s5 + $0x3f0] ss:$8 sps:$4 sm:$0xff]  }
 0x167   :  { %v358_v5 = vpop.f32.mrf.mxu0  ;;  %v472_v6 = vpop.f32.mrf.mxu1 }
 0x168   :  { %1648 = vmatpush1.bf16.msra.mxu0 %v8025_v54  ;;  %1721 = vmatpush1.bf16.msra.mxu1 %v8028_v55  ;;  %v384_v7 = vpack.c.bf16 %v358_v5, %v354_v58  ;;  %v498_v8 = vpack.c.bf16 %v472_v6, %v468_v59  ;;  %v8069_v55 = vld [vmem:[%s11360_s5 + $0x2f4] ss:$8 sps:$4 sm:$0xff]   ;;  %v8067_v59 = vld [vmem:[%s11360_s5 + $0x2f0] ss:$8 sps:$4 sm:$0xff]   ;;  %v8073_v6 = vld [vmem:[%s11360_s5 + $0x2e0] ss:$8 sps:$4 sm:$0xff]  }
 0x169   :  { %1649 = vmatprep.subr.bf16.mxu0 %v8033_v56  ;;  %1722 = vmatprep.subr.bf16.mxu1 %v8036_v57  ;;  %v362_v9 = vpop.f32.mrf.mxu0  ;;  %v476_v10 = vpop.f32.mrf.mxu1  ;;  %v8072_v56 = vld [vmem:[%s11360_s5 + $0x3f4] ss:$8 sps:$4 sm:$0xff]  }
 0x16a   :  { %1541 = vmatprep.mubr.bf16.mxu0 %v384_v7  ;;  %1614 = vmatprep.mubr.bf16.mxu1 %v498_v8  ;;  %v8076_v7 = vld [vmem:[%s11360_s5 + $0x3e0] ss:$8 sps:$4 sm:$0xff]   ;;  %v8081_v8 = vld [vmem:[%s11360_s5 + $0x2d4] ss:$8 sps:$4 sm:$0xff]  }
 0x16b   :  { %v364_v15 = vpop.f32.mrf.mxu0  ;;  %v478_v16 = vpop.f32.mrf.mxu1  ;;  %1542 = vmatmul.mubr.bf16.gmra.mxu0 %v383_v3  ;;  %1615 = vmatmul.mubr.bf16.gmra.mxu1 %v497_v4 }
 0x16c   :  { %1650 = vmatpush1.bf16.msra.mxu0 %v8031_v62  ;;  %1723 = vmatpush1.bf16.msra.mxu1 %v8034_v63  ;;  %v8075_v63 = vld [vmem:[%s11360_s5 + $0x2e4] ss:$8 sps:$4 sm:$0xff]  }
 0x16d   :  { %1651 = vmatprep.subr.bf16.mxu0 %v8039_v1  ;;  %1724 = vmatprep.subr.bf16.mxu1 %v8042_v2  ;;  %v366_v17 = vpop.f32.mrf.mxu0  ;;  %v480_v18 = vpop.f32.mrf.mxu1  ;;  %v8078_v1 = vld [vmem:[%s11360_s5 + $0x3e4] ss:$8 sps:$4 sm:$0xff]  }
 0x16e   :  { %v385_v23 = vpack.c.bf16 %v366_v17, %v362_v9  ;;  %v499_v24 = vpack.c.bf16 %v480_v18, %v476_v10  ;;  %v8084_v9 = vld [vmem:[%s11360_s5 + $0x3d4] ss:$8 sps:$4 sm:$0xff]   ;;  %v8085_v18 = vld [vmem:[%s11360_s5 + $0x2c0] ss:$8 sps:$4 sm:$0xff]  }
 0x16f   :  { %v368_v25 = vpop.f32.mrf.mxu0  ;;  %v482_v26 = vpop.f32.mrf.mxu1 }
 0x170   :  { %1652 = vmatpush1.bf16.msra.mxu0 %v8037_v11  ;;  %1725 = vmatpush1.bf16.msra.mxu1 %v8040_v12  ;;  %v386_v27 = vpack.c.bf16 %v368_v25, %v364_v15  ;;  %v500_v28 = vpack.c.bf16 %v482_v26, %v478_v16  ;;  %v8079_v12 = vld [vmem:[%s11360_s5 + $0x2d0] ss:$8 sps:$4 sm:$0xff]   ;;  %v8090_v15 = vld [vmem:[%s11360_s5 + $0x3c4] ss:$8 sps:$4 sm:$0xff]  }
 0x171   :  { %1653 = vmatprep.subr.bf16.mxu0 %v8045_v13  ;;  %1726 = vmatprep.subr.bf16.mxu1 %v8048_v14  ;;  %v372_v29 = vpop.f32.mrf.mxu0  ;;  %v486_v30 = vpop.f32.mrf.mxu1  ;;  %v8082_v13 = vld [vmem:[%s11360_s5 + $0x3d0] ss:$8 sps:$4 sm:$0xff]   ;;  %v8087_v14 = vld [vmem:[%s11360_s5 + $0x2c4] ss:$8 sps:$4 sm:$0xff]  }
 0x172   :  { %1551 = vmatprep.mubr.bf16.mxu0 %v386_v27  ;;  %1624 = vmatprep.mubr.bf16.mxu1 %v500_v28  ;;  %v8094_v25 = vld [vmem:[%s11360_s5 + $0x3b0] ss:$8 sps:$4 sm:$0xff]   ;;  %v8099_v26 = vld [vmem:[%s11360_s5 + $0x2a4] ss:$8 sps:$4 sm:$0xff]  }
 0x173   :  { %v374_v31 = vpop.f32.mrf.mxu0  ;;  %v488_v32 = vpop.f32.mrf.mxu1  ;;  %1552 = vmatmul.mubr.bf16.gmra.mxu0 %v385_v23  ;;  %1625 = vmatmul.mubr.bf16.gmra.mxu1 %v499_v24  ;;  %v8091_v24 = vld [vmem:[%s11360_s5 + $0x2b0] ss:$8 sps:$4 sm:$0xff]   ;;  %v8102_v27 = vld [vmem:[%s11360_s5 + $0x3a4] ss:$8 sps:$4 sm:$0xff]  }
 0x174   :  { %1654 = vmatpush1.bf16.msra.mxu0 %v8043_v19  ;;  %1727 = vmatpush1.bf16.msra.mxu1 %v8046_v20  ;;  %v8088_v19 = vld [vmem:[%s11360_s5 + $0x3c0] ss:$8 sps:$4 sm:$0xff]   ;;  %v8093_v20 = vld [vmem:[%s11360_s5 + $0x2b4] ss:$8 sps:$4 sm:$0xff]  }
 0x175   :  { %1655 = vmatprep.subr.bf16.mxu0 %v8051_v21  ;;  %1728 = vmatprep.subr.bf16.mxu1 %v8054_v22  ;;  %v376_v37 = vpop.f32.mrf.mxu0  ;;  %v490_v38 = vpop.f32.mrf.mxu1  ;;  %v8096_v21 = vld [vmem:[%s11360_s5 + $0x3b4] ss:$8 sps:$4 sm:$0xff]  }
 0x176   :  { %v387_v39 = vpack.c.bf16 %v376_v37, %v372_v29  ;;  %v501_v40 = vpack.c.bf16 %v490_v38, %v486_v30  ;;  %v8097_v30 = vld [vmem:[%s11360_s5 + $0x2a0] ss:$8 sps:$4 sm:$0xff]   ;;  %v8106_v37 = vld [vmem:[%s11360_s5 + $0x390] ss:$8 sps:$4 sm:$0xff]   ;;  %v8111_v38 = vld [vmem:[%s11360_s5 + $0x284] ss:$8 sps:$4 sm:$0xff]  }
 0x177   :  { %v378_v41 = vpop.f32.mrf.mxu0  ;;  %v492_v42 = vpop.f32.mrf.mxu1 }
 0x178   :  { %1656 = vmatpush1.bf16.msra.mxu0 %v8049_v33  ;;  %1729 = vmatpush1.bf16.msra.mxu1 %v8052_v34  ;;  %v388_v45 = vpack.c.bf16 %v378_v41, %v374_v31  ;;  %v502_v46 = vpack.c.bf16 %v492_v42, %v488_v32  ;;  %v8100_v31 = vld [vmem:[%s11360_s5 + $0x3a0] ss:$8 sps:$4 sm:$0xff]   ;;  %v8105_v32 = vld [vmem:[%s11360_s5 + $0x294] ss:$8 sps:$4 sm:$0xff]  }
 0x179   :  { %1657 = vmatprep.subr.bf16.mxu0 %v8057_v35  ;;  %1730 = vmatprep.subr.bf16.mxu1 %v8060_v36  ;;  %v8108_v33 = vld [vmem:[%s11360_s5 + $0x394] ss:$8 sps:$4 sm:$0xff]   ;;  %v8103_v36 = vld [vmem:[%s11360_s5 + $0x290] ss:$8 sps:$4 sm:$0xff]   ;;  %v8109_v42 = vld [vmem:[%s11360_s5 + $0x280] ss:$8 sps:$4 sm:$0xff]  }
 0x17a   :  { %1561 = vmatprep.mubr.bf16.mxu0 %v388_v45  ;;  %1634 = vmatprep.mubr.bf16.mxu1 %v502_v46  ;;  %v9416_v49 = vpop.f32.mrf.mxu0  ;;  %v9418_v50 = vpop.f32.mrf.mxu1 }
 0x17b   :  { %1562 = vmatmul.mubr.bf16.gmra.mxu0 %v387_v39  ;;  %1635 = vmatmul.mubr.bf16.gmra.mxu1 %v501_v40  ;;  %v8114_v39 = vld [vmem:[%s11360_s5 + $0x384] ss:$8 sps:$4 sm:$0xff]  }
 0x17c   :  { %1658 = vmatpush1.bf16.msra.mxu0 %v8055_v43  ;;  %1731 = vmatpush1.bf16.msra.mxu1 %v8058_v44  ;;  %v572_v53 = vpop.f32.mrf.mxu0  ;;  %v686_v54 = vpop.f32.mrf.mxu1  ;;  %v8112_v43 = vld [vmem:[%s11360_s5 + $0x380] ss:$8 sps:$4 sm:$0xff]  }
 0x17d   :  { %1659 = vmatprep.subr.bf16.mxu0 %v8063_v47  ;;  %1732 = vmatprep.subr.bf16.mxu1 %v8066_v48 }
 0x17e   :  { %v9432_v57 = vpop.f32.mrf.mxu0  ;;  %v9434_v58 = vpop.f32.mrf.mxu1 }
 0x17f   :  { %v609_v48 = vpack.c.bf16 %v9432_v57, %v9416_v49 }
 0x180   :  { %1660 = vmatpush1.bf16.msra.mxu0 %v8061_v51  ;;  %1733 = vmatpush1.bf16.msra.mxu1 %v8064_v52  ;;  %v576_v61 = vpop.f32.mrf.mxu0  ;;  %v690_v62 = vpop.f32.mrf.mxu1  ;;  %v723_v51 = vpack.c.bf16 %v9434_v58, %v9418_v50 }
 0x181   :  { %1661 = vmatprep.subr.bf16.mxu0 %v8069_v55  ;;  %1734 = vmatprep.subr.bf16.mxu1 %v8072_v56  ;;  %v610_v2 = vpack.c.bf16 %v576_v61, %v572_v53  ;;  %v724_v3 = vpack.c.bf16 %v690_v62, %v686_v54 }
 0x182   :  { %v9448_v4 = vpop.f32.mrf.mxu0  ;;  %v9450_v5 = vpop.f32.mrf.mxu1 }
 0x183   :  { %1677 = vmatprep.mubr.bf16.mxu0 %v610_v2  ;;  %1750 = vmatprep.mubr.bf16.mxu1 %v724_v3 }
 0x184   :  { %1662 = vmatpush2.bf16.msra.mxu0 %v8067_v59  ;;  %1735 = vmatpush2.bf16.msra.mxu1 %v8070_v60  ;;  %v9464_v10 = vpop.f32.mrf.mxu0  ;;  %v9466_v11 = vpop.f32.mrf.mxu1 }
 0x185   :  { %1663 = vmatprep.subr.bf16.mxu0 %v8075_v63  ;;  %1736 = vmatprep.subr.bf16.mxu1 %v8078_v1 }
 0x186   :  { %v9480_v16 = vpop.f32.mrf.mxu0  ;;  %v9482_v17 = vpop.f32.mrf.mxu1 }
 0x187   :  { %v611_v60 = vpack.c.bf16 %v9480_v16, %v9448_v4  ;;  %v725_v61 = vpack.c.bf16 %v9482_v17, %v9450_v5 }
 0x188   :  { %1664 = vmatpush2.bf16.msra.mxu0 %v8073_v6  ;;  %1737 = vmatpush2.bf16.msra.mxu1 %v8076_v7  ;;  %v586_v22 = vpop.f32.mrf.mxu0  ;;  %v700_v23 = vpop.f32.mrf.mxu1 }
 0x189   :  { %1665 = vmatprep.subr.bf16.mxu0 %v8081_v8  ;;  %1738 = vmatprep.subr.bf16.mxu1 %v8084_v9  ;;  %v612_v46 = vpack.c.bf16 %v586_v22, %v9464_v10  ;;  %v726_v47 = vpack.c.bf16 %v700_v23, %v9466_v11 }
 0x18a   :  { %v590_v28 = vpop.f32.mrf.mxu0  ;;  %v704_v29 = vpop.f32.mrf.mxu1 }
 0x18c   :  { %1666 = vmatpush2.bf16.msra.mxu0 %v8079_v12  ;;  %1739 = vmatpush2.bf16.msra.mxu1 %v8082_v13  ;;  %v592_v34 = vpop.f32.mrf.mxu0  ;;  %v706_v35 = vpop.f32.mrf.mxu1 }
 0x18d   :  { %1667 = vmatprep.subr.bf16.mxu0 %v8087_v14  ;;  %1740 = vmatprep.subr.bf16.mxu1 %v8090_v15 }
 0x18e   :  { %v594_v40 = vpop.f32.mrf.mxu0  ;;  %v708_v41 = vpop.f32.mrf.mxu1 }
 0x18f   :  { %v613_v1 = vpack.c.bf16 %v594_v40, %v590_v28  ;;  %v727_v2 = vpack.c.bf16 %v708_v41, %v704_v29 }
 0x190   :  { %1668 = vmatpush2.bf16.msra.mxu0 %v8085_v18  ;;  %1741 = vmatpush2.bf16.msra.mxu1 %v8088_v19  ;;  %v596_v44 = vpop.f32.mrf.mxu0  ;;  %v710_v45 = vpop.f32.mrf.mxu1 }
 0x191   :  { %1669 = vmatprep.subr.bf16.mxu0 %v8093_v20  ;;  %1742 = vmatprep.subr.bf16.mxu1 %v8096_v21  ;;  %v614_v56 = vpack.c.bf16 %v596_v44, %v592_v34  ;;  %v728_v59 = vpack.c.bf16 %v710_v45, %v706_v35 }
 0x192   :  { %v600_v52 = vpop.f32.mrf.mxu0  ;;  %v714_v53 = vpop.f32.mrf.mxu1 }
 0x194   :  { %1670 = vmatpush2.bf16.msra.mxu0 %v8091_v24  ;;  %1743 = vmatpush2.bf16.msra.mxu1 %v8094_v25  ;;  %v602_v54 = vpop.f32.mrf.mxu0  ;;  %v716_v55 = vpop.f32.mrf.mxu1 }
 0x195   :  { %1671 = vmatprep.subr.bf16.mxu0 %v8099_v26  ;;  %1744 = vmatprep.subr.bf16.mxu1 %v8102_v27 }
 0x196   :  { %v604_v49 = vpop.f32.mrf.mxu0  ;;  %v718_v57 = vpop.f32.mrf.mxu1 }
 0x197   :  { %v615_v3 = vpack.c.bf16 %v604_v49, %v600_v52  ;;  %v729_v4 = vpack.c.bf16 %v718_v57, %v714_v53 }
 0x198   :  { %1672 = vmatpush2.bf16.msra.mxu0 %v8097_v30  ;;  %1745 = vmatpush2.bf16.msra.mxu1 %v8100_v31  ;;  %v606_v50 = vpop.f32.mrf.mxu0  ;;  %v720_v58 = vpop.f32.mrf.mxu1 }
 0x199   :  { %1673 = vmatprep.subr.bf16.mxu0 %v8105_v32  ;;  %1746 = vmatprep.subr.bf16.mxu1 %v8108_v33  ;;  %v616_v62 = vpack.c.bf16 %v606_v50, %v602_v54  ;;  %v730_v63 = vpack.c.bf16 %v720_v58, %v716_v55 }
 0x19c   :  { %1674 = vmatpush2.bf16.msra.mxu0 %v8103_v36  ;;  %1747 = vmatpush2.bf16.msra.mxu1 %v8106_v37 }
 0x19d   :  { %1675 = vmatprep.subr.bf16.mxu0 %v8111_v38  ;;  %1748 = vmatprep.subr.bf16.mxu1 %v8114_v39 }
 0x1a0   :  { %1676 = vmatpush2.bf16.msra.mxu0 %v8109_v42  ;;  %1749 = vmatpush2.bf16.msra.mxu1 %v8112_v43 }
 0x1a3   :  { %1678 = vmatmul.mubr.bf16.vlgmr.msra.gmra.mxu0 %v609_v48  ;;  %1751 = vmatmul.mubr.bf16.vlgmr.msra.gmra.mxu1 %v723_v51 }
 0x1a4   :  { %1687 = vmatprep.mubr.bf16.mxu0 %v612_v46  ;;  %1760 = vmatprep.mubr.bf16.mxu1 %v726_v47 }
 0x1ab   :  { %1688 = vmatmul.mubr.bf16.gmra.mxu0 %v611_v60  ;;  %1761 = vmatmul.mubr.bf16.gmra.mxu1 %v725_v61 }
 0x1ac   :  { %1697 = vmatprep.mubr.bf16.mxu0 %v614_v56  ;;  %1770 = vmatprep.mubr.bf16.mxu1 %v728_v59 }
 0x1b3   :  { %1698 = vmatmul.mubr.bf16.gmra.mxu0 %v613_v1  ;;  %1771 = vmatmul.mubr.bf16.gmra.mxu1 %v727_v2 }
 0x1b4   :  { %1707 = vmatprep.mubr.bf16.mxu0 %v616_v62  ;;  %1780 = vmatprep.mubr.bf16.mxu1 %v730_v63 }
 0x1bb   :  { %1708 = vmatmul.mubr.bf16.gmra.mxu0 %v615_v3  ;;  %1781 = vmatmul.mubr.bf16.gmra.mxu1 %v729_v4 }
 0x1bc   :  { %1891 = vmatprep.mubr.bf16.mxu0 %v11380_v0  ;;  %1986 = vmatprep.mubr.bf16.mxu1 %v11380_v0 }
 0x223   :  { %v1533_v5 = vpop.f32.mrf.mxu0  ;;  %v1606_v6 = vpop.f32.mrf.mxu1 }
 0x224   :  { %v1607_v7 = vadd.f32 %v1606_v6, %v1533_v5 }
 0x225   :  { %v1535_v8 = vpop.f32.mrf.mxu0  ;;  %v1608_v9 = vpop.f32.mrf.mxu1 }
 0x226   :  { %v9550_v10 = vadd.f32 %v1608_v9, %v1535_v8 }
 0x227   :  { %v1537_v11 = vpop.f32.mrf.mxu0  ;;  %v1610_v12 = vpop.f32.mrf.mxu1 }
 0x228   :  { %v1611_v13 = vadd.f32 %v1610_v12, %v1537_v11 }
 0x229   :  { %v9552_v14 = vpop.f32.mrf.mxu0  ;;  %v9554_v15 = vpop.f32.mrf.mxu1 }
 0x22b   :  { %v9556_v16 = vpop.f32.mrf.mxu0  ;;  %v9558_v17 = vpop.f32.mrf.mxu1 }
 0x22d   :  { %v9560_v18 = vpop.f32.mrf.mxu0  ;;  %v9562_v19 = vpop.f32.mrf.mxu1 }
 0x22f   :  { %v9564_v20 = vpop.f32.mrf.mxu0  ;;  %v9566_v21 = vpop.f32.mrf.mxu1 }
 0x231   :  { %v1549_v22 = vpop.f32.mrf.mxu0  ;;  %v1622_v23 = vpop.f32.mrf.mxu1 }
 0x233   :  { %v9568_v24 = vpop.f32.mrf.mxu0  ;;  %v9570_v25 = vpop.f32.mrf.mxu1 }
 0x235   :  { %v1555_v26 = vpop.f32.mrf.mxu0  ;;  %v1628_v27 = vpop.f32.mrf.mxu1 }
 0x237   :  { %v1557_v28 = vpop.f32.mrf.mxu0  ;;  %v1630_v29 = vpop.f32.mrf.mxu1 }
 0x239   :  { %v1559_v30 = vpop.f32.mrf.mxu0  ;;  %v1632_v31 = vpop.f32.mrf.mxu1 }
 0x23a   :  { %v1633_v11 = vadd.f32 %v1632_v31, %v1559_v30  ;;  %v1619_v30 = vadd.f32 %v9562_v19, %v9560_v18  ;;  %v1627_v31 = vadd.f32 %v9570_v25, %v9568_v24 }
 0x23b   :  { %v1563_v32 = vpop.f32.mrf.mxu0  ;;  %v1636_v33 = vpop.f32.mrf.mxu1 }
 0x23c   :  { %v1637_v12 = vadd.f32 %v1636_v33, %v1563_v32 }
 0x23d   :  { %v1565_v34 = vpop.f32.mrf.mxu0  ;;  %v1638_v35 = vpop.f32.mrf.mxu1 }
 0x23f   :  { %v1567_v36 = vpop.f32.mrf.mxu0  ;;  %v1640_v37 = vpop.f32.mrf.mxu1 }
 0x241   :  { %v1569_v38 = vpop.f32.mrf.mxu0  ;;  %v1642_v39 = vpop.f32.mrf.mxu1 }
 0x263   :  { %v1679_v40 = vpop.f32.mrf.mxu0  ;;  %v1752_v41 = vpop.f32.mrf.mxu1 }
 0x264   :  { %v1680_v42 = vadd.f32 %v1679_v40, %v1607_v7 }
 0x265   :  { %v9572_v43 = vpop.f32.mrf.mxu0  ;;  %v9574_v44 = vpop.f32.mrf.mxu1 }
 0x266   :  { %v1753_v45 = vadd.f32 %v1752_v41, %v1680_v42  ;;  %v1629_v41 = vadd.f32 %v1628_v27, %v1555_v26  ;;  %v1639_v42 = vadd.f32 %v1638_v35, %v1565_v34 }
 0x267   :  { %v1683_v46 = vpop.f32.mrf.mxu0  ;;  %v1756_v47 = vpop.f32.mrf.mxu1 }
 0x268   :  { %v1684_v48 = vadd.f32 %v1683_v46, %v1611_v13  ;;  %v1791_v53 = vmul.f32 0.2, %v1753_v45  ;;  %v1623_v46 = vadd.f32 %v1622_v23, %v1549_v22  ;;  %v1643_v23 = vadd.f32 %v1642_v39, %v1569_v38 }
 0x269   :  { %v1685_v51 = vpop.f32.mrf.mxu0  ;;  %v9576_v52 = vpop.f32.mrf.mxu1 }
 0x26a   :  { %v1757_v54 = vadd.f32 %v1756_v47, %v1684_v48  ;;  %v1807_v49 = vmax.f32 %v1753_v45, %v1791_v53  ;;  %v1631_v47 = vadd.f32 %v1630_v29, %v1557_v28 }
 0x26b   :  { %v9578_v55 = vpop.f32.mrf.mxu0  ;;  %v9580_v56 = vpop.f32.mrf.mxu1 }
 0x26c   :  { %v1793_v59 = vmul.f32 0.2, %v1757_v54 }
 0x26d   :  { %v1691_v60 = vpop.f32.mrf.mxu0  ;;  %v9582_v61 = vpop.f32.mrf.mxu1 }
 0x26e   :  { %v1809_v57 = vmax.f32 %v1757_v54, %v1793_v59  ;;  %v1613_v59 = vadd.f32 %v9554_v15, %v9552_v14  ;;  %v1617_v14 = vadd.f32 %v9558_v17, %v9556_v16  ;;  %v1621_v15 = vadd.f32 %v9566_v21, %v9564_v20 }
 0x26f   :  { %v1693_v50 = vpop.f32.mrf.mxu0  ;;  %v9584_v58 = vpop.f32.mrf.mxu1  ;;  %v1692_v19 = vadd.f32 %v1691_v60, %v1619_v30  ;;  %v1682_v21 = vadd.f32 %v9572_v43, %v9550_v10 }
 0x270   :  { %v9586_v62 = vpack.c.bf16 %v1809_v57, %v1807_v49  ;;  %v1641_v49 = vadd.f32 %v1640_v37, %v1567_v36  ;;  %v1686_v37 = vadd.f32 %v1685_v51, %v1613_v59  ;;  %v1690_v16 = vadd.f32 %v9578_v55, %v1617_v14  ;;  %v8129_v14 = vld [vmem:[%s11361_s6 + $0x74] ss:$8 sps:$4 sm:$0xff]  }
 0x271   :  { %v1695_v63 = vpop.f32.mrf.mxu0  ;;  %v1768_v1 = vpop.f32.mrf.mxu1  ;;  %v1765_v60 = vadd.f32 %v9582_v61, %v1692_v19  ;;  %v1755_v10 = vadd.f32 %v9574_v44, %v1682_v21  ;;  %v8122_v19 = vld [vmem:[%s11393_s26 + $0x3c] sm:$0xff]  }
 0x272   :  { %v1696_v26 = vadd.f32 %v1695_v63, %v1623_v46  ;;  %v1694_v63 = vadd.f32 %v1693_v50, %v1621_v15  ;;  %v1759_v51 = vadd.f32 %v9576_v52, %v1686_v37  ;;  %v1763_v55 = vadd.f32 %v9580_v56, %v1690_v16  ;;  %v8132_v15 = vld [vmem:[%s11361_s6 + $0x174] ss:$8 sps:$4 sm:$0xff]   ;;  %v8133_v37 = vld [vmem:[%s11361_s6 + $0x60] ss:$8 sps:$4 sm:$0xff]   ;;  %v8150_v16 = vld [vmem:[%s11361_s6 + $0x144] ss:$8 sps:$4 sm:$0xff]  }
 0x273   :  { %v1699_v2 = vpop.f32.mrf.mxu0  ;;  %v1772_v3 = vpop.f32.mrf.mxu1  ;;  %v1796_v43 = vmul.f32 0.2, %v1765_v60  ;;  %v1792_v56 = vmul.f32 0.2, %v1755_v10  ;;  %v8153_v21 = vld [vmem:[%s11361_s6 + $0x34] ss:$8 sps:$4 sm:$0xff]  }
 0x274   :  { %v1700_v34 = vadd.f32 %v1699_v2, %v1627_v31  ;;  %v1767_v50 = vadd.f32 %v9584_v58, %v1694_v63  ;;  %v8136_v63 = vld [vmem:[%s11361_s6 + $0x160] ss:$8 sps:$4 sm:$0xff]  }
 0x275   :  { %v1701_v4 = vpop.f32.mrf.mxu0  ;;  %v1774_v5 = vpop.f32.mrf.mxu1  ;;  %v1812_v59 = vmax.f32 %v1765_v60, %v1796_v43  ;;  %v8156_v60 = vld [vmem:[%s11361_s6 + $0x134] ss:$8 sps:$4 sm:$0xff]   ;;  %v8169_v43 = vld [vmem:[%s11361_s6] ss:$8 sps:$4 sm:$0xff]  }
 0x276   :  { %v1702_v57 = vadd.f32 %v1701_v4, %v1629_v41  ;;  %v1769_v4 = vadd.f32 %v1768_v1, %v1696_v26  ;;  %v1773_v17 = vadd.f32 %v1772_v3, %v1700_v34  ;;  %v1808_v26 = vmax.f32 %v1755_v10, %v1792_v56  ;;  %v8119_v34 = vld [vmem:[%s11393_s26 + $0x10] ss:$0 sps:$4 sm:$0x11]   ;;  %v8174_v10 = vld [vmem:[%s11361_s6 + $0x104] ss:$8 sps:$4 sm:$0xff]  }
 0x277   :  { %v1703_v6 = vpop.f32.mrf.mxu0  ;;  %v1776_v7 = vpop.f32.mrf.mxu1  ;;  %v8192_v56 = vld [vmem:[%s11361_s6 + $0x1d4] ss:$8 sps:$4 sm:$0xff]  }
 0x278   :  { %v1704_v27 = vadd.f32 %v1703_v6, %v1631_v47  ;;  %v1775_v36 = vadd.f32 %v1774_v5, %v1702_v57  ;;  %v1799_v3 = vmul.f32 0.2, %v1773_v17  ;;  %v1794_v47 = vmul.f32 0.2, %v1759_v51 }
 0x279   :  { %v1705_v8 = vpop.f32.mrf.mxu0  ;;  %v1778_v9 = vpop.f32.mrf.mxu1 }
 0x27a   :  { %v1706_v45 = vadd.f32 %v1705_v8, %v1633_v11  ;;  %v1777_v38 = vadd.f32 %v1776_v7, %v1704_v27  ;;  %v1800_v2 = vmul.f32 0.2, %v1775_v36  ;;  %v1798_v11 = vmul.f32 0.2, %v1769_v4 }
 0x27b   :  { %v1709_v13 = vpop.f32.mrf.mxu0  ;;  %v1782_v40 = vpop.f32.mrf.mxu1  ;;  %v1810_v57 = vmax.f32 %v1759_v51, %v1794_v47  ;;  %v8151_v51 = vld [vmem:[%s11361_s6 + $0x30] ss:$8 sps:$4 sm:$0xff]   ;;  %v8183_v47 = vld [vmem:[%s11361_s6 + $0xe4] ss:$8 sps:$4 sm:$0xff]  }
 0x27c   :  { %v1710_v48 = vadd.f32 %v1709_v13, %v1637_v12  ;;  %v1779_v28 = vadd.f32 %v1778_v9, %v1706_v45  ;;  %v1801_v1 = vmul.f32 0.2, %v1777_v38  ;;  %v1816_v61 = vmax.f32 %v1775_v36, %v1800_v2  ;;  %v8130_v36 = vld [vmem:[%s11361_s6 + $0x170] ss:$8 sps:$4 sm:$0xff]  }
 0x27d   :  { %v1711_v53 = vpop.f32.mrf.mxu0  ;;  %v1784_v54 = vpop.f32.mrf.mxu1  ;;  %v1797_v45 = vmul.f32 0.2, %v1767_v50  ;;  %v1814_v58 = vmax.f32 %v1769_v4, %v1798_v11  ;;  %v8141_v4 = vld [vmem:[%s11361_s6 + $0x54] ss:$8 sps:$4 sm:$0xff]   ;;  %v8157_v11 = vld [vmem:[%s11361_s6 + $0x20] ss:$8 sps:$4 sm:$0xff]  }
 0x27e   :  { %v1712_v0 = vadd.f32 %v1711_v53, %v1639_v42  ;;  %v1783_v35 = vadd.f32 %v1782_v40, %v1710_v48  ;;  %v1817_v46 = vmax.f32 %v1777_v38, %v1801_v1  ;;  %v1795_v53 = vmul.f32 0.2, %v1763_v55  ;;  %v8144_v38 = vld [vmem:[%s11361_s6 + $0x154] ss:$8 sps:$4 sm:$0xff]   ;;  %v8159_v1 = vld [vmem:[%s11361_s6 + $0x24] ss:$8 sps:$4 sm:$0xff]  }
 0x27f   :  { %v1713_v32 = vpop.f32.mrf.mxu0  ;;  %v1786_v22 = vpop.f32.mrf.mxu1  ;;  %v1813_v44 = vmax.f32 %v1767_v50, %v1797_v45  ;;  %v1826_v30 = vpack.c.bf16 %v1814_v58, %v1812_v59  ;;  %v8125_v2 = vld [vmem:[%s11393_s26 + $0x38] ss:$0 sps:$4 sm:$0x11]   ;;  %v8180_v45 = vld [vmem:[%s11361_s6 + $0x1f4] ss:$8 sps:$4 sm:$0xff]  }
 0x280   :  { %v1785_v29 = vadd.f32 %v1784_v54, %v1712_v0  ;;  %v1714_v33 = vadd.f32 %v1713_v32, %v1641_v49  ;;  %v1802_v0 = vmul.f32 0.2, %v1779_v28  ;;  %v1803_v20 = vmul.f32 0.2, %v1783_v35  ;;  %v8154_v50 = vld [vmem:[%s11361_s6 + $0x130] ss:$8 sps:$4 sm:$0xff]  }
 0x281   :  { %v1715_v18 = vpop.f32.mrf.mxu0  ;;  %v1788_v39 = vpop.f32.mrf.mxu1  ;;  %v1815_v54 = vmax.f32 %v1773_v17, %v1799_v3  ;;  %v1811_v31 = vmax.f32 %v1763_v55, %v1795_v53  ;;  %v1824_v32 = vpack.c.bf16 %v1810_v57, %v1808_v26  ;;  %v8145_v17 = vld [vmem:[%s11361_s6 + $0x40] ss:$8 sps:$4 sm:$0xff]   ;;  %v8163_v55 = vld [vmem:[%s11361_s6 + $0x10] ss:$8 sps:$4 sm:$0xff]   ;;  %v8186_v58 = vld [vmem:[%s11361_s6 + $0x1e4] ss:$8 sps:$4 sm:$0xff]  }
 0x282   :  { %v1787_v24 = vadd.f32 %v1786_v22, %v1714_v33  ;;  %v1716_v25 = vadd.f32 %v1715_v18, %v1643_v23  ;;  %v1804_v6 = vmul.f32 0.2, %v1785_v29  ;;  %v1818_v12 = vmax.f32 %v1779_v28, %v1802_v0  ;;  %v8115_v22 = vld [vmem:[%s11393_s26] sm:$0xff]   ;;  %v8116_v23 = vld [vmem:[%s11393_s26 + $0x14] sm:$0xff]   ;;  %v8121_v18 = vld [vmem:[%s11393_s26 + $0x28] sm:$0xff]  }
 0x283   :  { %v1819_v41 = vmax.f32 %v1783_v35, %v1803_v20  ;;  %v1827_v49 = vpack.c.bf16 %v1817_v46, %v1815_v54  ;;  %v1825_v27 = vpack.c.bf16 %v1813_v44, %v1811_v31  ;;  %v11394_v28 = vmov 0   ;;  %v8118_v33 = vld [vmem:[%s11393_s26 + $0x1c] sm:$0xff]   ;;  %v8120_v35 = vld [vmem:[%s11393_s26 + $0x24] ss:$0 sps:$4 sm:$0x11]  }
 0x284   :  { %v1805_v8 = vmul.f32 0.2, %v1787_v24  ;;  %v1789_v9 = vadd.f32 %v1788_v39, %v1716_v25  ;;  %v1820_v13 = vmax.f32 %v1785_v29, %v1804_v6  ;;  %v1828_v48 = vpack.c.bf16 %v1818_v12, %v1816_v61  ;;  %v8117_v29 = vld [vmem:[%s11393_s26 + $0x8] sm:$0xff]   ;;  %v8123_v39 = vld [vmem:[%s11393_s26 + $0x30] sm:$0xff]  }
 0x285   :  { %v8138_v25 = vld [vmem:[%s11361_s6 + $0x164] ss:$8 sps:$4 sm:$0xff]   ;;  %v8139_v6 = vld [vmem:[%s11361_s6 + $0x50] ss:$8 sps:$4 sm:$0xff]   ;;  %v8148_v20 = vld [vmem:[%s11361_s6 + $0x140] ss:$8 sps:$4 sm:$0xff]  }
 0x286   :  { %v1806_v5 = vmul.f32 0.2, %v1789_v9  ;;  %v1821_v7 = vmax.f32 %v1787_v24, %v1805_v8  ;;  %v8135_v24 = vld [vmem:[%s11361_s6 + $0x64] ss:$8 sps:$4 sm:$0xff]   ;;  %v8142_v8 = vld [vmem:[%s11361_s6 + $0x150] ss:$8 sps:$4 sm:$0xff]  }
 0x287   :  { %v8124_v0 = vld [vmem:[%s11393_s26 + $0x44] sm:$0xff]   ;;  %v8166_v3 = vld [vmem:[%s11361_s6 + $0x110] ss:$8 sps:$4 sm:$0xff]   ;;  %v8189_v54 = vld [vmem:[%s11361_s6 + $0xd4] ss:$8 sps:$4 sm:$0xff]  }
 0x288   :  { %v1822_v40 = vmax.f32 %v1789_v9, %v1806_v5  ;;  %v1829_v52 = vpack.c.bf16 %v1821_v7, %v1819_v41  ;;  %v8147_v9 = vld [vmem:[%s11361_s6 + $0x44] ss:$8 sps:$4 sm:$0xff]   ;;  %v8160_v12 = vld [vmem:[%s11361_s6 + $0x120] ss:$8 sps:$4 sm:$0xff]   ;;  %v8175_v46 = vld [vmem:[%s11361_s6 + $0xf0] ss:$8 sps:$4 sm:$0xff]  }
 0x289   :  { %v8126_v5 = vld [vmem:[%s11393_s26 + $0x4c] ss:$0 sps:$4 sm:$0x11]   ;;  %v8172_v61 = vld [vmem:[%s11361_s6 + $0x100] ss:$8 sps:$4 sm:$0xff]  }
 0x28a   :  { %v1830_v42 = vpack.c.bf16 %v1822_v40, %v1820_v13  ;;  %v8162_v7 = vld [vmem:[%s11361_s6 + $0x124] ss:$8 sps:$4 sm:$0xff]   ;;  %v8165_v13 = vld [vmem:[%s11361_s6 + $0x14] ss:$8 sps:$4 sm:$0xff]   ;;  %v8184_v53 = vld [vmem:[%s11361_s6 + $0x1e0] ss:$8 sps:$4 sm:$0xff]  }
 0x28b   :  { %v8168_v40 = vld [vmem:[%s11361_s6 + $0x114] ss:$8 sps:$4 sm:$0xff]   ;;  %v8171_v41 = vld [vmem:[%s11361_s6 + $0x4] ss:$8 sps:$4 sm:$0xff]   ;;  %v8187_v59 = vld [vmem:[%s11361_s6 + $0xd0] ss:$8 sps:$4 sm:$0xff]  }
 0x28c   :  { %1867 = vmatprep.subr.bf16.mxu0 %v1830_v42  ;;  %1962 = vmatprep.subr.bf16.mxu1 %v1830_v42  ;;  %v8190_v44 = vld [vmem:[%s11361_s6 + $0x1d0] ss:$8 sps:$4 sm:$0xff]   ;;  %v8198_v57 = vld [vmem:[%s11361_s6 + $0x1c4] ss:$8 sps:$4 sm:$0xff]   ;;  %v8196_v31 = vld [vmem:[%s11361_s6 + $0x1c0] ss:$8 sps:$4 sm:$0xff]  }
 0x28d   :  { %1868 = vmatpush1.bf16.msra.mxu0 %v1829_v52  ;;  %1963 = vmatpush1.bf16.msra.mxu1 %v1829_v52  ;;  %v8201_v26 = vld [vmem:[%s11361_s6 + $0xb4] ss:$8 sps:$4 sm:$0xff]  }
 0x28e   :  { %1869 = vmatprep.subr.bf16.mxu0 %v1828_v48  ;;  %1964 = vmatprep.subr.bf16.mxu1 %v1828_v48 }
 0x291   :  { %1870 = vmatpush1.bf16.msra.mxu0 %v1827_v49  ;;  %1965 = vmatpush1.bf16.msra.mxu1 %v1827_v49 }
 0x292   :  { %1871 = vmatprep.subr.bf16.mxu0 %v1826_v30  ;;  %1966 = vmatprep.subr.bf16.mxu1 %v1826_v30 }
 0x295   :  { %1872 = vmatpush1.bf16.msra.mxu0 %v1825_v27  ;;  %1967 = vmatpush1.bf16.msra.mxu1 %v1825_v27 }
 0x296   :  { %1873 = vmatprep.subr.bf16.mxu0 %v1824_v32  ;;  %1968 = vmatprep.subr.bf16.mxu1 %v1824_v32 }
 0x299   :  { %1874 = vmatpush1.bf16.msra.mxu0 %v9586_v62  ;;  %1969 = vmatpush1.bf16.msra.mxu1 %v9586_v62 }
 0x29a   :  { %2057 = vmatprep.subr.bf16.mxu0 %v1830_v42  ;;  %2152 = vmatprep.subr.bf16.mxu1 %v1830_v42  ;;  %v8177_v42 = vld [vmem:[%s11361_s6 + $0xf4] ss:$8 sps:$4 sm:$0xff]  }
 0x29c   :  { %7188 = vmatmul.mubr.msk.bf16.vlgmr.msra.gmra.mxu0 %vm1849_vm0, %v8115_v22  ;;  %7199 = vmatmul.mubr.msk.bf16.vlgmr.msra.gmra.mxu1 %vm1849_vm0, %v8116_v23  ;;  %v8202_v22 = vld [vmem:[%s11361_s6 + $0x1b0] ss:$8 sps:$4 sm:$0xff]   ;;  %v8207_v23 = vld [vmem:[%s11361_s6 + $0xa4] ss:$8 sps:$4 sm:$0xff]  }
 0x29d   :  { %2058 = vmatpush1.bf16.msra.mxu0 %v1829_v52  ;;  %2153 = vmatpush1.bf16.msra.mxu1 %v1829_v52  ;;  %v8178_v52 = vld [vmem:[%s11361_s6 + $0x1f0] ss:$8 sps:$4 sm:$0xff]  }
 0x29e   :  { %2059 = vmatprep.subr.bf16.mxu0 %v1828_v48  ;;  %2154 = vmatprep.subr.bf16.mxu1 %v1828_v48  ;;  %v8181_v48 = vld [vmem:[%s11361_s6 + $0xe0] ss:$8 sps:$4 sm:$0xff]  }
 0x29f   :  { %1901 = vmatprep.mubr.bf16.mxu0 %v11394_v28  ;;  %1996 = vmatprep.mubr.bf16.mxu1 %v11394_v28 }
 0x2a1   :  { %2060 = vmatpush1.bf16.msra.mxu0 %v1827_v49  ;;  %2155 = vmatpush1.bf16.msra.mxu1 %v1827_v49  ;;  %v8195_v49 = vld [vmem:[%s11361_s6 + $0xc4] ss:$8 sps:$4 sm:$0xff]  }
 0x2a2   :  { %2061 = vmatprep.subr.bf16.mxu0 %v1826_v30  ;;  %2156 = vmatprep.subr.bf16.mxu1 %v1826_v30  ;;  %v8193_v30 = vld [vmem:[%s11361_s6 + $0xc0] ss:$8 sps:$4 sm:$0xff]  }
 0x2a4   :  { %7189 = vmatmul.mubr.msk.bf16.gmra.mxu0 %vm1849_vm0, %v8117_v29  ;;  %7200 = vmatmul.mubr.msk.bf16.gmra.mxu1 %vm1849_vm0, %v8118_v33  ;;  %v8210_v29 = vld [vmem:[%s11361_s6 + $0x1a4] ss:$8 sps:$4 sm:$0xff]   ;;  %v8205_v33 = vld [vmem:[%s11361_s6 + $0xa0] ss:$8 sps:$4 sm:$0xff]  }
 0x2a5   :  { %2062 = vmatpush1.bf16.msra.mxu0 %v1825_v27  ;;  %2157 = vmatpush1.bf16.msra.mxu1 %v1825_v27  ;;  %v8204_v27 = vld [vmem:[%s11361_s6 + $0x1b4] ss:$8 sps:$4 sm:$0xff]  }
 0x2a6   :  { %2063 = vmatprep.subr.bf16.mxu0 %v1824_v32  ;;  %2158 = vmatprep.subr.bf16.mxu1 %v1824_v32  ;;  %v8199_v32 = vld [vmem:[%s11361_s6 + $0xb0] ss:$8 sps:$4 sm:$0xff]  }
 0x2a7   :  { %1911 = vmatprep.mubr.bf16.mxu0 %v11394_v28  ;;  %2006 = vmatprep.mubr.bf16.mxu1 %v11394_v28 }
 0x2a9   :  { %2064 = vmatpush1.bf16.msra.mxu0 %v9586_v62  ;;  %2159 = vmatpush1.bf16.msra.mxu1 %v9586_v62  ;;  %v8127_v62 = vld [vmem:[%s11361_s6 + $0x70] ss:$8 sps:$4 sm:$0xff]  }
 0x2aa   :  { %2979 = vmatprep.subr.bf16.mxu0 %v8129_v14  ;;  %3040 = vmatprep.subr.bf16.mxu1 %v8132_v15  ;;  %v8208_v14 = vld [vmem:[%s11361_s6 + $0x1a0] ss:$8 sps:$4 sm:$0xff]   ;;  %v8213_v15 = vld [vmem:[%s11361_s6 + $0x94] ss:$8 sps:$4 sm:$0xff]  }
 0x2ac   :  { %7190 = vmatmul.mubr.msk.bf16.gmra.mxu0 %vm1849_vm0, %v8119_v34  ;;  %7201 = vmatmul.mubr.msk.bf16.gmra.mxu1 %vm1849_vm0, %v8120_v35  ;;  %v8216_v34 = vld [vmem:[%s11361_s6 + $0x194] ss:$8 sps:$4 sm:$0xff]   ;;  %v8211_v35 = vld [vmem:[%s11361_s6 + $0x90] ss:$8 sps:$4 sm:$0xff]  }
 0x2ad   :  { %2081 = vmatprep.mubr.bf16.mxu0 %v11394_v28  ;;  %2176 = vmatprep.mubr.bf16.mxu1 %v11394_v28 }
 0x2b4   :  { %7210 = vmatmul.mubr.msk.bf16.vlgmr.msra.gmra.mxu0 %vm1849_vm0, %v8121_v18  ;;  %7221 = vmatmul.mubr.msk.bf16.vlgmr.msra.gmra.mxu1 %vm1849_vm0, %v8122_v19  ;;  %v8214_v18 = vld [vmem:[%s11361_s6 + $0x190] ss:$8 sps:$4 sm:$0xff]   ;;  %v8219_v19 = vld [vmem:[%s11361_s6 + $0x84] ss:$8 sps:$4 sm:$0xff]  }
 0x2b5   :  { %2091 = vmatprep.mubr.bf16.mxu0 %v11394_v28  ;;  %2186 = vmatprep.mubr.bf16.mxu1 %v11394_v28 }
 0x2b6   :  { %2980 = vmatpush1.bf16.msra.mxu0 %v8127_v62  ;;  %3041 = vmatpush1.bf16.msra.mxu1 %v8130_v36  ;;  %v8222_v62 = vld [vmem:[%s11361_s6 + $0x184] ss:$8 sps:$4 sm:$0xff]   ;;  %v8217_v36 = vld [vmem:[%s11361_s6 + $0x80] ss:$8 sps:$4 sm:$0xff]  }
 0x2b7   :  { %2981 = vmatprep.subr.bf16.mxu0 %v8135_v24  ;;  %3042 = vmatprep.subr.bf16.mxu1 %v8138_v25  ;;  %v8220_v24 = vld [vmem:[%s11361_s6 + $0x180] ss:$8 sps:$4 sm:$0xff]   ;;  %v8225_v25 = vld [vmem:[%s11361_s6 + $0x274] ss:$8 sps:$4 sm:$0xff]  }
 0x2ba   :  { %2982 = vmatpush1.bf16.msra.mxu0 %v8133_v37  ;;  %3043 = vmatpush1.bf16.msra.mxu1 %v8136_v63  ;;  %v8228_v37 = vld [vmem:[%s11361_s6 + $0x374] ss:$8 sps:$4 sm:$0xff]  }
 0x2bb   :  { %2983 = vmatprep.subr.bf16.mxu0 %v8141_v4  ;;  %3044 = vmatprep.subr.bf16.mxu1 %v8144_v38 }
 0x2bc   :  { %7211 = vmatmul.mubr.msk.bf16.gmra.mxu0 %vm1849_vm0, %v8123_v39  ;;  %7222 = vmatmul.mubr.msk.bf16.gmra.mxu1 %vm1849_vm0, %v8124_v0 }
 0x2bd   :  { %2101 = vmatprep.mubr.bf16.mxu0 %v11394_v28  ;;  %2196 = vmatprep.mubr.bf16.mxu1 %v11394_v28 }
 0x2be   :  { %2984 = vmatpush1.bf16.msra.mxu0 %v8139_v6  ;;  %3045 = vmatpush1.bf16.msra.mxu1 %v8142_v8 }
 0x2bf   :  { %2985 = vmatprep.subr.bf16.mxu0 %v8147_v9  ;;  %3046 = vmatprep.subr.bf16.mxu1 %v8150_v16 }
 0x2c2   :  { %2986 = vmatpush1.bf16.msra.mxu0 %v8145_v17  ;;  %3047 = vmatpush1.bf16.msra.mxu1 %v8148_v20  ;;  %v8223_v20 = vld [vmem:[%s11361_s6 + $0x270] ss:$8 sps:$4 sm:$0xff]  }
 0x2c3   :  { %2987 = vmatprep.subr.bf16.mxu0 %v8153_v21  ;;  %3048 = vmatprep.subr.bf16.mxu1 %v8156_v60  ;;  %v8226_v21 = vld [vmem:[%s11361_s6 + $0x370] ss:$8 sps:$4 sm:$0xff]  }
 0x2c4   :  { %7212 = vmatmul.mubr.msk.bf16.gmra.mxu0 %vm1849_vm0, %v8125_v2  ;;  %7223 = vmatmul.mubr.msk.bf16.gmra.mxu1 %vm1849_vm0, %v8126_v5  ;;  %v8231_v5 = vld [vmem:[%s11361_s6 + $0x264] ss:$8 sps:$4 sm:$0xff]  }
 0x2c6   :  { %2988 = vmatpush1.bf16.msra.mxu0 %v8151_v51  ;;  %3049 = vmatpush1.bf16.msra.mxu1 %v8154_v50  ;;  %v8234_v51 = vld [vmem:[%s11361_s6 + $0x364] ss:$8 sps:$4 sm:$0xff]  }
 0x2c7   :  { %2989 = vmatprep.subr.bf16.mxu0 %v8159_v1  ;;  %3050 = vmatprep.subr.bf16.mxu1 %v8162_v7 }
 0x2ca   :  { %2990 = vmatpush1.bf16.msra.mxu0 %v8157_v11  ;;  %3051 = vmatpush1.bf16.msra.mxu1 %v8160_v12  ;;  %v8229_v12 = vld [vmem:[%s11361_s6 + $0x260] ss:$8 sps:$4 sm:$0xff]  }
 0x2cb   :  { %2991 = vmatprep.subr.bf16.mxu0 %v8165_v13  ;;  %3052 = vmatprep.subr.bf16.mxu1 %v8168_v40  ;;  %v8232_v13 = vld [vmem:[%s11361_s6 + $0x360] ss:$8 sps:$4 sm:$0xff]   ;;  %v8237_v40 = vld [vmem:[%s11361_s6 + $0x254] ss:$8 sps:$4 sm:$0xff]  }
 0x2ce   :  { %2992 = vmatpush1.bf16.msra.mxu0 %v8163_v55  ;;  %3053 = vmatpush1.bf16.msra.mxu1 %v8166_v3  ;;  %v8240_v55 = vld [vmem:[%s11361_s6 + $0x354] ss:$8 sps:$4 sm:$0xff]  }
 0x2cf   :  { %2993 = vmatprep.subr.bf16.mxu0 %v8171_v41  ;;  %3054 = vmatprep.subr.bf16.mxu1 %v8174_v10 }
 0x2d2   :  { %2994 = vmatpush1.bf16.msra.mxu0 %v8169_v43  ;;  %3055 = vmatpush1.bf16.msra.mxu1 %v8172_v61 }
 0x2d3   :  { %2995 = vmatprep.subr.bf16.mxu0 %v8177_v42  ;;  %3056 = vmatprep.subr.bf16.mxu1 %v8180_v45  ;;  %v8235_v45 = vld [vmem:[%s11361_s6 + $0x250] ss:$8 sps:$4 sm:$0xff]  }
 0x2d6   :  { %2996 = vmatpush2.bf16.msra.mxu0 %v8175_v46  ;;  %3057 = vmatpush2.bf16.msra.mxu1 %v8178_v52  ;;  %v8238_v46 = vld [vmem:[%s11361_s6 + $0x350] ss:$8 sps:$4 sm:$0xff]  }
 0x2d7   :  { %2997 = vmatprep.subr.bf16.mxu0 %v8183_v47  ;;  %3058 = vmatprep.subr.bf16.mxu1 %v8186_v58  ;;  %v8243_v58 = vld [vmem:[%s11361_s6 + $0x244] ss:$8 sps:$4 sm:$0xff]  }
 0x2da   :  { %2998 = vmatpush2.bf16.msra.mxu0 %v8181_v48  ;;  %3059 = vmatpush2.bf16.msra.mxu1 %v8184_v53  ;;  %v8246_v48 = vld [vmem:[%s11361_s6 + $0x344] ss:$8 sps:$4 sm:$0xff]  }
 0x2db   :  { %2999 = vmatprep.subr.bf16.mxu0 %v8189_v54  ;;  %3060 = vmatprep.subr.bf16.mxu1 %v8192_v56 }
 0x2de   :  { %3000 = vmatpush2.bf16.msra.mxu0 %v8187_v59  ;;  %3061 = vmatpush2.bf16.msra.mxu1 %v8190_v44  ;;  %v8241_v44 = vld [vmem:[%s11361_s6 + $0x240] ss:$8 sps:$4 sm:$0xff]  }
 0x2df   :  { %3001 = vmatprep.subr.bf16.mxu0 %v8195_v49  ;;  %3062 = vmatprep.subr.bf16.mxu1 %v8198_v57  ;;  %v8244_v49 = vld [vmem:[%s11361_s6 + $0x340] ss:$8 sps:$4 sm:$0xff]  }
 0x2e2   :  { %3002 = vmatpush2.bf16.msra.mxu0 %v8193_v30  ;;  %3063 = vmatpush2.bf16.msra.mxu1 %v8196_v31  ;;  %v8249_v31 = vld [vmem:[%s11361_s6 + $0x234] ss:$8 sps:$4 sm:$0xff]  }
 0x2e3   :  { %3003 = vmatprep.subr.bf16.mxu0 %v8201_v26  ;;  %3064 = vmatprep.subr.bf16.mxu1 %v8204_v27  ;;  %v8252_v26 = vld [vmem:[%s11361_s6 + $0x334] ss:$8 sps:$4 sm:$0xff]  }
 0x2e6   :  { %3004 = vmatpush2.bf16.msra.mxu0 %v8199_v32  ;;  %3065 = vmatpush2.bf16.msra.mxu1 %v8202_v22 }
 0x2e7   :  { %3005 = vmatprep.subr.bf16.mxu0 %v8207_v23  ;;  %3066 = vmatprep.subr.bf16.mxu1 %v8210_v29 }
 0x2ea   :  { %3006 = vmatpush2.bf16.msra.mxu0 %v8205_v33  ;;  %3067 = vmatpush2.bf16.msra.mxu1 %v8208_v14  ;;  %v8247_v14 = vld [vmem:[%s11361_s6 + $0x230] ss:$8 sps:$4 sm:$0xff]  }
 0x2eb   :  { %3007 = vmatprep.subr.bf16.mxu0 %v8213_v15  ;;  %3068 = vmatprep.subr.bf16.mxu1 %v8216_v34  ;;  %v8250_v15 = vld [vmem:[%s11361_s6 + $0x330] ss:$8 sps:$4 sm:$0xff]   ;;  %v8255_v34 = vld [vmem:[%s11361_s6 + $0x224] ss:$8 sps:$4 sm:$0xff]  }
 0x2ee   :  { %3008 = vmatpush2.bf16.msra.mxu0 %v8211_v35  ;;  %3069 = vmatpush2.bf16.msra.mxu1 %v8214_v18  ;;  %v8258_v35 = vld [vmem:[%s11361_s6 + $0x324] ss:$8 sps:$4 sm:$0xff]  }
 0x2ef   :  { %3009 = vmatprep.subr.bf16.mxu0 %v8219_v19  ;;  %3070 = vmatprep.subr.bf16.mxu1 %v8222_v62 }
 0x2f2   :  { %3010 = vmatpush2.bf16.msra.mxu0 %v8217_v36  ;;  %3071 = vmatpush2.bf16.msra.mxu1 %v8220_v24  ;;  %v8253_v24 = vld [vmem:[%s11361_s6 + $0x220] ss:$8 sps:$4 sm:$0xff]  }
 0x2f3   :  { %3101 = vmatprep.subr.bf16.mxu0 %v8225_v25  ;;  %3162 = vmatprep.subr.bf16.mxu1 %v8228_v37  ;;  %v8256_v25 = vld [vmem:[%s11361_s6 + $0x320] ss:$8 sps:$4 sm:$0xff]   ;;  %v8261_v37 = vld [vmem:[%s11361_s6 + $0x214] ss:$8 sps:$4 sm:$0xff]  }
 0x35c   :  { %v1893_v63 = vpop.f32.mrf.mxu0  ;;  %v1988_v4 = vpop.f32.mrf.mxu1 }
 0x35e   :  { %v1895_v38 = vpop.f32.mrf.mxu0  ;;  %v1990_v39 = vpop.f32.mrf.mxu1 }
 0x360   :  { %v1897_v0 = vpop.f32.mrf.mxu0  ;;  %v1992_v6 = vpop.f32.mrf.mxu1 }
 0x361   :  { %v1920_v60 = vpack.c.bf16 %v1897_v0, %v1893_v63  ;;  %v2015_v2 = vpack.c.bf16 %v1992_v6, %v1988_v4  ;;  %v8264_v63 = vld [vmem:[%s11361_s6 + $0x314] ss:$8 sps:$4 sm:$0xff]   ;;  %v8259_v6 = vld [vmem:[%s11361_s6 + $0x210] ss:$8 sps:$4 sm:$0xff]  }
 0x362   :  { %v1899_v8 = vpop.f32.mrf.mxu0  ;;  %v1994_v9 = vpop.f32.mrf.mxu1 }
 0x363   :  { %v1921_v16 = vpack.c.bf16 %v1899_v8, %v1895_v38  ;;  %v2016_v17 = vpack.c.bf16 %v1994_v9, %v1990_v39  ;;  %v8262_v8 = vld [vmem:[%s11361_s6 + $0x310] ss:$8 sps:$4 sm:$0xff]  }
 0x364   :  { %v1903_v50 = vpop.f32.mrf.mxu0  ;;  %v1998_v1 = vpop.f32.mrf.mxu1 }
 0x365   :  { %3011 = vmatprep.mubr.bf16.mxu0 %v1921_v16  ;;  %3072 = vmatprep.mubr.bf16.mxu1 %v2016_v17  ;;  %v8267_v17 = vld [vmem:[%s11361_s6 + $0x204] ss:$8 sps:$4 sm:$0xff]  }
 0x366   :  { %3012 = vmatmul.mubr.bf16.vlgmr.msra.gmra.mxu0 %v1920_v60  ;;  %3073 = vmatmul.mubr.bf16.vlgmr.msra.gmra.mxu1 %v2015_v2  ;;  %v1905_v7 = vpop.f32.mrf.mxu0  ;;  %v2000_v11 = vpop.f32.mrf.mxu1 }
 0x367   :  { %3102 = vmatpush1.bf16.msra.mxu0 %v8223_v20  ;;  %3163 = vmatpush1.bf16.msra.mxu1 %v8226_v21  ;;  %v8270_v20 = vld [vmem:[%s11361_s6 + $0x304] ss:$8 sps:$4 sm:$0xff]  }
 0x368   :  { %3103 = vmatprep.subr.bf16.mxu0 %v8231_v5  ;;  %3164 = vmatprep.subr.bf16.mxu1 %v8234_v51  ;;  %v1907_v3 = vpop.f32.mrf.mxu0  ;;  %v2002_v41 = vpop.f32.mrf.mxu1  ;;  %v8265_v51 = vld [vmem:[%s11361_s6 + $0x200] ss:$8 sps:$4 sm:$0xff]  }
 0x369   :  { %v1922_v10 = vpack.c.bf16 %v1907_v3, %v1903_v50  ;;  %v2017_v43 = vpack.c.bf16 %v2002_v41, %v1998_v1  ;;  %v8268_v50 = vld [vmem:[%s11361_s6 + $0x300] ss:$8 sps:$4 sm:$0xff]   ;;  %v8273_v1 = vld [vmem:[%s11361_s6 + $0x2f4] ss:$8 sps:$4 sm:$0xff]   ;;  %v8274_v3 = vld [vmem:[%s11361_s6 + $0x3f0] ss:$8 sps:$4 sm:$0xff]  }
 0x36a   :  { %v1909_v61 = vpop.f32.mrf.mxu0  ;;  %v2004_v42 = vpop.f32.mrf.mxu1  ;;  %v8279_v41 = vld [vmem:[%s11361_s6 + $0x2e4] ss:$8 sps:$4 sm:$0xff]  }
 0x36b   :  { %3104 = vmatpush1.bf16.msra.mxu0 %v8229_v12  ;;  %3165 = vmatpush1.bf16.msra.mxu1 %v8232_v13  ;;  %v1923_v52 = vpack.c.bf16 %v1909_v61, %v1905_v7  ;;  %v2018_v47 = vpack.c.bf16 %v2004_v42, %v2000_v11  ;;  %v8276_v7 = vld [vmem:[%s11361_s6 + $0x3f4] ss:$8 sps:$4 sm:$0xff]  }
 0x36c   :  { %3105 = vmatprep.subr.bf16.mxu0 %v8237_v40  ;;  %3166 = vmatprep.subr.bf16.mxu1 %v8240_v55  ;;  %v1913_v53 = vpop.f32.mrf.mxu0  ;;  %v2008_v54 = vpop.f32.mrf.mxu1  ;;  %v8271_v55 = vld [vmem:[%s11361_s6 + $0x2f0] ss:$8 sps:$4 sm:$0xff]  }
 0x36d   :  { %3021 = vmatprep.mubr.bf16.mxu0 %v1923_v52  ;;  %3082 = vmatprep.mubr.bf16.mxu1 %v2018_v47  ;;  %v1924_v22 = vpack.c.bf16 %v1913_v53, %v1913_v53  ;;  %v2019_v23 = vpack.c.bf16 %v2008_v54, %v2008_v54  ;;  %v8280_v52 = vld [vmem:[%s11361_s6 + $0x3e0] ss:$8 sps:$4 sm:$0xff]   ;;  %v8285_v47 = vld [vmem:[%s11361_s6 + $0x2d4] ss:$8 sps:$4 sm:$0xff]  }
 0x36e   :  { %v1915_v56 = vpop.f32.mrf.mxu0  ;;  %3022 = vmatmul.mubr.bf16.gmra.mxu0 %v1922_v10  ;;  %3083 = vmatmul.mubr.bf16.gmra.mxu1 %v2017_v43  ;;  %v2010_v59 = vpop.f32.mrf.mxu1  ;;  %v8282_v10 = vld [vmem:[%s11361_s6 + $0x3e4] ss:$8 sps:$4 sm:$0xff]  }
 0x36f   :  { %3106 = vmatpush1.bf16.msra.mxu0 %v8235_v45  ;;  %3167 = vmatpush1.bf16.msra.mxu1 %v8238_v46  ;;  %v1925_v57 = vpack.c.bf16 %v1915_v56, %v1915_v56  ;;  %v2020_v30 = vpack.c.bf16 %v2010_v59, %v2010_v59  ;;  %v8277_v46 = vld [vmem:[%s11361_s6 + $0x2e0] ss:$8 sps:$4 sm:$0xff]   ;;  %v8283_v59 = vld [vmem:[%s11361_s6 + $0x2d0] ss:$8 sps:$4 sm:$0xff]  }
 0x370   :  { %3107 = vmatprep.subr.bf16.mxu0 %v8243_v58  ;;  %3168 = vmatprep.subr.bf16.mxu1 %v8246_v48  ;;  %v1917_v27 = vpop.f32.mrf.mxu0  ;;  %v2012_v32 = vpop.f32.mrf.mxu1  ;;  %v8288_v58 = vld [vmem:[%s11361_s6 + $0x3d4] ss:$8 sps:$4 sm:$0xff]  }
 0x371   :  { %3031 = vmatprep.mubr.bf16.mxu0 %v1925_v57  ;;  %3092 = vmatprep.mubr.bf16.mxu1 %v2020_v30  ;;  %v8294_v57 = vld [vmem:[%s11361_s6 + $0x3c4] ss:$8 sps:$4 sm:$0xff]   ;;  %v8289_v30 = vld [vmem:[%s11361_s6 + $0x2c0] ss:$8 sps:$4 sm:$0xff]   ;;  %v8300_v27 = vld [vmem:[%s11361_s6 + $0x3b4] ss:$8 sps:$4 sm:$0xff]  }
 0x372   :  { %v1918_v29 = vpop.f32.mrf.mxu0  ;;  %v2013_v33 = vpop.f32.mrf.mxu1  ;;  %v8295_v32 = vld [vmem:[%s11361_s6 + $0x2b0] ss:$8 sps:$4 sm:$0xff]  }
 0x373   :  { %3108 = vmatpush1.bf16.msra.mxu0 %v8241_v44  ;;  %3169 = vmatpush1.bf16.msra.mxu1 %v8244_v49  ;;  %v8286_v44 = vld [vmem:[%s11361_s6 + $0x3d0] ss:$8 sps:$4 sm:$0xff]   ;;  %v8291_v49 = vld [vmem:[%s11361_s6 + $0x2c4] ss:$8 sps:$4 sm:$0xff]   ;;  %v8301_v33 = vld [vmem:[%s11361_s6 + $0x2a0] ss:$8 sps:$4 sm:$0xff]  }
 0x374   :  { %3109 = vmatprep.subr.bf16.mxu0 %v8249_v31  ;;  %3170 = vmatprep.subr.bf16.mxu1 %v8252_v26  ;;  %v9926_v18 = vpop.f32.mrf.mxu0  ;;  %v9928_v19 = vpop.f32.mrf.mxu1  ;;  %v8292_v31 = vld [vmem:[%s11361_s6 + $0x3c0] ss:$8 sps:$4 sm:$0xff]   ;;  %v8297_v26 = vld [vmem:[%s11361_s6 + $0x2b4] ss:$8 sps:$4 sm:$0xff]   ;;  %v8306_v29 = vld [vmem:[%s11361_s6 + $0x3a4] ss:$8 sps:$4 sm:$0xff]  }
 0x376   :  { %v2085_v62 = vpop.f32.mrf.mxu0  ;;  %3032 = vmatmul.mubr.bf16.gmra.mxu0 %v1924_v22  ;;  %v2180_v36 = vpop.f32.mrf.mxu1  ;;  %3093 = vmatmul.mubr.bf16.gmra.mxu1 %v2019_v23  ;;  %v8298_v22 = vld [vmem:[%s11361_s6 + $0x3b0] ss:$8 sps:$4 sm:$0xff]   ;;  %v8303_v23 = vld [vmem:[%s11361_s6 + $0x2a4] ss:$8 sps:$4 sm:$0xff]  }
 0x377   :  { %3110 = vmatpush1.bf16.msra.mxu0 %v8247_v14  ;;  %3171 = vmatpush1.bf16.msra.mxu1 %v8250_v15  ;;  %v8304_v14 = vld [vmem:[%s11361_s6 + $0x3a0] ss:$8 sps:$4 sm:$0xff]   ;;  %v8309_v15 = vld [vmem:[%s11361_s6 + $0x294] ss:$8 sps:$4 sm:$0xff]  }
 0x378   :  { %3111 = vmatprep.subr.bf16.mxu0 %v8255_v34  ;;  %3172 = vmatprep.subr.bf16.mxu1 %v8258_v35  ;;  %v9942_v4 = vpop.f32.mrf.mxu0  ;;  %v9944_v38 = vpop.f32.mrf.mxu1  ;;  %v8312_v34 = vld [vmem:[%s11361_s6 + $0x394] ss:$8 sps:$4 sm:$0xff]   ;;  %v8307_v35 = vld [vmem:[%s11361_s6 + $0x290] ss:$8 sps:$4 sm:$0xff]  }
 0x37a   :  { %v2089_v39 = vpop.f32.mrf.mxu0  ;;  %v2184_v0 = vpop.f32.mrf.mxu1 }
 0x37b   :  { %3112 = vmatpush1.bf16.msra.mxu0 %v8253_v24  ;;  %3173 = vmatpush1.bf16.msra.mxu1 %v8256_v25  ;;  %v2111_v9 = vpack.c.bf16 %v2089_v39, %v2085_v62  ;;  %v2206_v16 = vpack.c.bf16 %v2184_v0, %v2180_v36  ;;  %v8310_v62 = vld [vmem:[%s11361_s6 + $0x390] ss:$8 sps:$4 sm:$0xff]   ;;  %v8315_v36 = vld [vmem:[%s11361_s6 + $0x284] ss:$8 sps:$4 sm:$0xff]   ;;  %v8313_v25 = vld [vmem:[%s11361_s6 + $0x280] ss:$8 sps:$4 sm:$0xff]   ;;  %v2110_v0 = vpack.c.bf16 %v9942_v4, %v9926_v18 }
 0x37c   :  { %3113 = vmatprep.subr.bf16.mxu0 %v8261_v37  ;;  %3174 = vmatprep.subr.bf16.mxu1 %v8264_v63  ;;  %v9958_v21 = vpop.f32.mrf.mxu0  ;;  %v9960_v60 = vpop.f32.mrf.mxu1  ;;  %v8318_v24 = vld [vmem:[%s11361_s6 + $0x384] ss:$8 sps:$4 sm:$0xff]   ;;  %v8316_v37 = vld [vmem:[%s11361_s6 + $0x380] ss:$8 sps:$4 sm:$0xff]   ;;  %v10107_v4 = vld [vmem:[%s11365_s10 + $0xf8] sm:$0xff] }
 0x37d   :  { %3133 = vmatprep.mubr.bf16.mxu0 %v2111_v9  ;;  %3194 = vmatprep.mubr.bf16.mxu1 %v2206_v16 }
 0x37e   :  { %v9962_v2 = vpop.f32.mrf.mxu0  ;;  %v9964_v5 = vpop.f32.mrf.mxu1 }
 0x37f   :  { %3114 = vmatpush1.bf16.msra.mxu0 %v8259_v6  ;;  %3175 = vmatpush1.bf16.msra.mxu1 %v8262_v8  ;;  %v2205_v6 = vpack.c.bf16 %v9944_v38, %v9928_v19  ;;  %v10112_v38 = vld [vmem:[%s11365_s10 + $0x78] sm:$0xff] }
 0x380   :  { %3115 = vmatprep.subr.bf16.mxu0 %v8267_v17  ;;  %3176 = vmatprep.subr.bf16.mxu1 %v8270_v20  ;;  %v9978_v11 = vpop.f32.mrf.mxu0  ;;  %v9980_v12 = vpop.f32.mrf.mxu1  ;;  %v10119_v20 = vld [vmem:[%s11365_s10 + $0xf0] sm:$0xff] }
 0x381   :  { %v2112_v16 = vpack.c.bf16 %v9978_v11, %v9958_v21  ;;  %v2207_v17 = vpack.c.bf16 %v9980_v12, %v9960_v60  ;;  %v10124_v21 = vld [vmem:[%s11365_s10 + $0x70] sm:$0xff]  ;;  %v10131_v60 = vld [vmem:[%s11365_s10 + $0xe8] sm:$0xff] }
 0x382   :  { %v9982_v13 = vpop.f32.mrf.mxu0  ;;  %v9984_v40 = vpop.f32.mrf.mxu1  ;;  %v10173_v11 = vld [vmem:[%s11365_s10 + $0x50] sm:$0xff]  ;;  %v10179_v12 = vld [vmem:[%s11365_s10 + $0xc8] sm:$0xff] }
 0x383   :  { %3116 = vmatpush1.bf16.msra.mxu0 %v8265_v51  ;;  %3177 = vmatpush1.bf16.msra.mxu1 %v8268_v50  ;;  %v2113_v63 = vpack.c.bf16 %v9982_v13, %v9962_v2  ;;  %v2208_v39 = vpack.c.bf16 %v9984_v40, %v9964_v5  ;;  %v10136_v2 = vld [vmem:[%s11365_s10 + $0x68] sm:$0xff]  ;;  %v10143_v5 = vld [vmem:[%s11365_s10 + $0xe0] sm:$0xff]  ;;  %v10155_v50 = vld [vmem:[%s11365_s10 + $0xd8] sm:$0xff] }
 0x384   :  { %3117 = vmatprep.subr.bf16.mxu0 %v8273_v1  ;;  %3178 = vmatprep.subr.bf16.mxu1 %v8276_v7  ;;  %v9998_v43 = vpop.f32.mrf.mxu0  ;;  %v10000_v61 = vpop.f32.mrf.mxu1  ;;  %v10148_v51 = vld [vmem:[%s11365_s10 + $0x60] sm:$0xff]  ;;  %v10161_v1 = vld [vmem:[%s11365_s10 + $0x58] sm:$0xff]  ;;  %v10167_v7 = vld [vmem:[%s11365_s10 + $0xd0] sm:$0xff] }
 0x385   :  { %v2209_v18 = vpack.c.bf16 %v10000_v61, %v10000_v61  ;;  %v2114_v19 = vpack.c.bf16 %v9998_v43, %v9998_v43  ;;  %v10185_v13 = vld [vmem:[%s11365_s10 + $0x48] sm:$0xff]  ;;  %v10191_v40 = vld [vmem:[%s11365_s10 + $0xc0] sm:$0xff]  ;;  %v10221_v43 = vld [vmem:[%s11365_s10 + $0x30] sm:$0xff] }
 0x386   :  { %v10002_v42 = vpop.f32.mrf.mxu0  ;;  %v10004_v45 = vpop.f32.mrf.mxu1  ;;  %v10227_v61 = vld [vmem:[%s11365_s10 + $0xa8] sm:$0xff] }
 0x387   :  { %3118 = vmatpush2.bf16.msra.mxu0 %v8271_v55  ;;  %3179 = vmatpush2.bf16.msra.mxu1 %v8274_v3  ;;  %v2115_v8 = vpack.c.bf16 %v10002_v42, %v10002_v42  ;;  %v2210_v9 = vpack.c.bf16 %v10004_v45, %v10004_v45  ;;  %v10197_v55 = vld [vmem:[%s11365_s10 + $0x40] sm:$0xff]  ;;  %v10203_v3 = vld [vmem:[%s11365_s10 + $0xb8] sm:$0xff]  ;;  %v10233_v42 = vld [vmem:[%s11365_s10 + $0x28] sm:$0xff] }
 0x388   :  { %3119 = vmatprep.subr.bf16.mxu0 %v8279_v41  ;;  %3180 = vmatprep.subr.bf16.mxu1 %v8282_v10  ;;  %v2107_v48 = vpop.f32.mrf.mxu0  ;;  %v2202_v53 = vpop.f32.mrf.mxu1  ;;  %v10209_v41 = vld [vmem:[%s11365_s10 + $0x38] sm:$0xff]  ;;  %v10215_v10 = vld [vmem:[%s11365_s10 + $0xb0] sm:$0xff]  ;;  %v10239_v45 = vld [vmem:[%s11365_s10 + $0xa0] sm:$0xff] }
 0x389   :  { %v10269_v48 = vld [vmem:[%s11365_s10 + $0x10] sm:$0xff]  ;;  %v10275_v53 = vld [vmem:[%s11365_s10 + $0x88] sm:$0xff] }
 0x38a   :  { %v2108_v54 = vpop.f32.mrf.mxu0  ;;  %v2203_v56 = vpop.f32.mrf.mxu1 }
 0x38b   :  { %3120 = vmatpush2.bf16.msra.mxu0 %v8277_v46  ;;  %3181 = vmatpush2.bf16.msra.mxu1 %v8280_v52  ;;  %v10245_v46 = vld [vmem:[%s11365_s10 + $0x20] sm:$0xff]  ;;  %v10251_v52 = vld [vmem:[%s11365_s10 + $0x98] sm:$0xff]  ;;  %v10281_v54 = vld [vmem:[%s11365_s10 + $0x8] sm:$0xff] }
 0x38c   :  { %3121 = vmatprep.subr.bf16.mxu0 %v8285_v47  ;;  %3182 = vmatprep.subr.bf16.mxu1 %v8288_v58  ;;  %v10257_v47 = vld [vmem:[%s11365_s10 + $0x18] sm:$0xff]  ;;  %v10263_v58 = vld [vmem:[%s11365_s10 + $0x90] sm:$0xff]  ;;  %v10287_v56 = vld [vmem:[%s11365_s10 + $0x80] sm:$0xff] }
 0x38f   :  { %3122 = vmatpush2.bf16.msra.mxu0 %v8283_v59  ;;  %3183 = vmatpush2.bf16.msra.mxu1 %v8286_v44  ;;  %v10292_v59 = vld [vmem:[%s11365_s10] sm:$0xff]  ;;  %v3329_v44 = vld [vmem:[#allocation6 + $0x18] sm:$0xff] }
 0x390   :  { %3123 = vmatprep.subr.bf16.mxu0 %v8291_v49  ;;  %3184 = vmatprep.subr.bf16.mxu1 %v8294_v57 }
 0x393   :  { %3124 = vmatpush2.bf16.msra.mxu0 %v8289_v30  ;;  %3185 = vmatpush2.bf16.msra.mxu1 %v8292_v31 }
 0x394   :  { %3125 = vmatprep.subr.bf16.mxu0 %v8297_v26  ;;  %3186 = vmatprep.subr.bf16.mxu1 %v8300_v27 }
 0x397   :  { %3126 = vmatpush2.bf16.msra.mxu0 %v8295_v32  ;;  %3187 = vmatpush2.bf16.msra.mxu1 %v8298_v22 }
 0x398   :  { %3127 = vmatprep.subr.bf16.mxu0 %v8303_v23  ;;  %3188 = vmatprep.subr.bf16.mxu1 %v8306_v29 }
 0x39b   :  { %3128 = vmatpush2.bf16.msra.mxu0 %v8301_v33  ;;  %3189 = vmatpush2.bf16.msra.mxu1 %v8304_v14 }
 0x39c   :  { %3129 = vmatprep.subr.bf16.mxu0 %v8309_v15  ;;  %3190 = vmatprep.subr.bf16.mxu1 %v8312_v34 }
 0x39f   :  { %3130 = vmatpush2.bf16.msra.mxu0 %v8307_v35  ;;  %3191 = vmatpush2.bf16.msra.mxu1 %v8310_v62 }
 0x3a0   :  { %3131 = vmatprep.subr.bf16.mxu0 %v8315_v36  ;;  %3192 = vmatprep.subr.bf16.mxu1 %v8318_v24 }
 0x3a3   :  { %3132 = vmatpush2.bf16.msra.mxu0 %v8313_v25  ;;  %3193 = vmatpush2.bf16.msra.mxu1 %v8316_v37 }
 0x3a4   :  { %7656 = vmatprep.subr.mxu0 %v10107_v4  ;;  %3362 = vmatprep.subr.mxu1 %v3329_v44 }
 0x3a6   :  { %3134 = vmatmul.mubr.bf16.vlgmr.msra.gmra.mxu0 %v2110_v0  ;;  %3195 = vmatmul.mubr.bf16.vlgmr.msra.gmra.mxu1 %v2205_v6 }
 0x3a7   :  { %3143 = vmatprep.mubr.bf16.mxu0 %v2113_v63  ;;  %3204 = vmatprep.mubr.bf16.mxu1 %v2208_v39 }
 0x3a8   :  { %7657 = vmatpush3.msra.mxu0 %v10112_v38 }
 0x3a9   :  { %7658 = vmatprep.subr.mxu0 %v10119_v20 }
 0x3aa   :  { %7659 = vmatpush3.msra.mxu0 %v10124_v21 }
 0x3ab   :  { %7660 = vmatprep.subr.mxu0 %v10131_v60 }
 0x3ac   :  { %7661 = vmatpush3.msra.mxu0 %v10136_v2 }
 0x3ad   :  { %7662 = vmatprep.subr.mxu0 %v10143_v5 }
 0x3ae   :  { %3144 = vmatmul.mubr.bf16.gmra.mxu0 %v2112_v16  ;;  %3205 = vmatmul.mubr.bf16.gmra.mxu1 %v2207_v17 }
 0x3af   :  { %3153 = vmatprep.mubr.bf16.mxu0 %v2115_v8  ;;  %3214 = vmatprep.mubr.bf16.mxu1 %v2210_v9 }
 0x3b0   :  { %7663 = vmatpush3.msra.mxu0 %v10148_v51 }
 0x3b1   :  { %7664 = vmatprep.subr.mxu0 %v10155_v50 }
 0x3b2   :  { %7665 = vmatpush3.msra.mxu0 %v10161_v1 }
 0x3b3   :  { %7666 = vmatprep.subr.mxu0 %v10167_v7 }
 0x3b4   :  { %7667 = vmatpush3.msra.mxu0 %v10173_v11 }
 0x3b5   :  { %7668 = vmatprep.subr.mxu0 %v10179_v12 }
 0x3b6   :  { %3154 = vmatmul.mubr.bf16.gmra.mxu0 %v2114_v19  ;;  %3215 = vmatmul.mubr.bf16.gmra.mxu1 %v2209_v18 }
 0x3b7   :  { %7669 = vmatpush3.msra.mxu0 %v10185_v13 }
 0x3b8   :  { %7670 = vmatprep.subr.mxu0 %v10191_v40 }
 0x3b9   :  { %7671 = vmatpush3.msra.mxu0 %v10197_v55 }
 0x3ba   :  { %7672 = vmatprep.subr.mxu0 %v10203_v3 }
 0x3bb   :  { %7673 = vmatpush3.msra.mxu0 %v10209_v41 }
 0x3bc   :  { %7674 = vmatprep.subr.mxu0 %v10215_v10 }
 0x3bd   :  { %7675 = vmatpush3.msra.mxu0 %v10221_v43 }
 0x3be   :  { %7676 = vmatprep.subr.mxu0 %v10227_v61 }
 0x3bf   :  { %7677 = vmatpush3.msra.mxu0 %v10233_v42 }
 0x3c0   :  { %7678 = vmatprep.subr.mxu0 %v10239_v45 }
 0x3c1   :  { %7679 = vmatpush3.msra.mxu0 %v10245_v46 }
 0x3c2   :  { %7680 = vmatprep.subr.mxu0 %v10251_v52 }
 0x3c3   :  { %7681 = vmatpush3.msra.mxu0 %v10257_v47 }
 0x3c4   :  { %7682 = vmatprep.subr.mxu0 %v10263_v58 }
 0x3c5   :  { %7683 = vmatpush3.msra.mxu0 %v10269_v48 }
 0x3c6   :  { %7684 = vmatprep.subr.mxu0 %v10275_v53 }
 0x3c7   :  { %7685 = vmatpush3.msra.mxu0 %v10281_v54 }
 0x3c8   :  { %7686 = vmatprep.subr.mxu0 %v10287_v56 }
 0x3c9   :  { %7687 = vmatpush3.msra.mxu0 %v10292_v59 }
 0x3ca   :  { %3551 = vmatprep.subr.mxu0 %v3329_v44 }
 0x426   :  { %v3013_v49 = vpop.f32.mrf.mxu0  ;;  %v3074_v57 = vpop.f32.mrf.mxu1 }
 0x427   :  { %v3075_v30 = vadd.f32 %v3074_v57, %v3013_v49 }
 0x428   :  { %v3015_v31 = vpop.f32.mrf.mxu0  ;;  %v3076_v26 = vpop.f32.mrf.mxu1 }
 0x429   :  { %v3077_v27 = vadd.f32 %v3076_v26, %v3015_v31 }
 0x42a   :  { %v3017_v32 = vpop.f32.mrf.mxu0  ;;  %v3078_v22 = vpop.f32.mrf.mxu1 }
 0x42b   :  { %v3079_v23 = vadd.f32 %v3078_v22, %v3017_v32 }
 0x42c   :  { %v3019_v29 = vpop.f32.mrf.mxu0  ;;  %v3080_v33 = vpop.f32.mrf.mxu1 }
 0x42d   :  { %v3081_v14 = vadd.f32 %v3080_v33, %v3019_v29 }
 0x42e   :  { %v3023_v15 = vpop.f32.mrf.mxu0  ;;  %v3084_v34 = vpop.f32.mrf.mxu1 }
 0x42f   :  { %v3085_v35 = vadd.f32 %v3084_v34, %v3023_v15 }
 0x430   :  { %v3025_v62 = vpop.f32.mrf.mxu0  ;;  %v3086_v36 = vpop.f32.mrf.mxu1 }
 0x431   :  { %v3087_v24 = vadd.f32 %v3086_v36, %v3025_v62 }
 0x432   :  { %v3027_v25 = vpop.f32.mrf.mxu0  ;;  %v3088_v37 = vpop.f32.mrf.mxu1 }
 0x433   :  { %v3089_v63 = vadd.f32 %v3088_v37, %v3027_v25 }
 0x434   :  { %v3029_v39 = vpop.f32.mrf.mxu0  ;;  %v3090_v0 = vpop.f32.mrf.mxu1 }
 0x435   :  { %v3091_v6 = vadd.f32 %v3090_v0, %v3029_v39 }
 0x436   :  { %v3033_v8 = vpop.f32.mrf.mxu0  ;;  %v3094_v9 = vpop.f32.mrf.mxu1 }
 0x437   :  { %v3095_v16 = vadd.f32 %v3094_v9, %v3033_v8 }
 0x438   :  { %v3035_v17 = vpop.f32.mrf.mxu0  ;;  %v3096_v18 = vpop.f32.mrf.mxu1 }
 0x43a   :  { %v3037_v19 = vpop.f32.mrf.mxu0  ;;  %v3098_v44 = vpop.f32.mrf.mxu1 }
 0x43c   :  { %v3038_v49 = vpop.f32.mrf.mxu0  ;;  %v3099_v57 = vpop.f32.mrf.mxu1 }
 0x466   :  { %v3135_v31 = vpop.f32.mrf.mxu0  ;;  %v3196_v26 = vpop.f32.mrf.mxu1 }
 0x467   :  { %v3136_v32 = vadd.f32 %v3135_v31, %v3075_v30 }
 0x468   :  { %v3137_v22 = vpop.f32.mrf.mxu0  ;;  %v3198_v29 = vpop.f32.mrf.mxu1 }
 0x469   :  { %v3138_v33 = vadd.f32 %v3137_v22, %v3077_v27  ;;  %v10296_v15 = vadd.f32 %v3196_v26, %v3136_v32 }
 0x46a   :  { %v3139_v34 = vpop.f32.mrf.mxu0  ;;  %v3200_v62 = vpop.f32.mrf.mxu1 }
 0x46b   :  { %v3140_v36 = vadd.f32 %v3139_v34, %v3079_v23  ;;  %v10298_v25 = vadd.f32 %v3198_v29, %v3138_v33 }
 0x46c   :  { %v3141_v37 = vpop.f32.mrf.mxu0  ;;  %v3202_v39 = vpop.f32.mrf.mxu1 }
 0x46d   :  { %v3142_v0 = vadd.f32 %v3141_v37, %v3081_v14  ;;  %v10300_v8 = vadd.f32 %v3200_v62, %v3140_v36 }
 0x46e   :  { %v3145_v9 = vpop.f32.mrf.mxu0  ;;  %v3206_v19 = vpop.f32.mrf.mxu1 }
 0x46f   :  { %v3146_v44 = vadd.f32 %v3145_v9, %v3085_v35  ;;  %v10302_v49 = vadd.f32 %v3202_v39, %v3142_v0  ;;  %v3097_v35 = vadd.f32 %v3096_v18, %v3035_v17  ;;  %v3326_v17 = vld [vmem:[#allocation6] sm:$0xff] }
 0x470   :  { %v3147_v30 = vpop.f32.mrf.mxu0  ;;  %v3208_v57 = vpop.f32.mrf.mxu1 }
 0x471   :  { %v3148_v27 = vadd.f32 %v3147_v30, %v3087_v24  ;;  %v10304_v31 = vadd.f32 %v3206_v19, %v3146_v44 }
 0x472   :  { %v3149_v26 = vpop.f32.mrf.mxu0  ;;  %v3210_v32 = vpop.f32.mrf.mxu1 }
 0x473   :  { %v3150_v23 = vadd.f32 %v3149_v26, %v3089_v63  ;;  %v10306_v22 = vadd.f32 %v3208_v57, %v3148_v27  ;;  %v3327_v26 = vld [vmem:[#allocation6 + $0x8] sm:$0xff] }
 0x474   :  { %v3151_v29 = vpop.f32.mrf.mxu0  ;;  %v3212_v33 = vpop.f32.mrf.mxu1 }
 0x475   :  { %v3152_v14 = vadd.f32 %v3151_v29, %v3091_v6  ;;  %v10308_v34 = vadd.f32 %v3210_v32, %v3150_v23  ;;  %v3328_v6 = vld [vmem:[#allocation6 + $0x10] sm:$0xff] }
 0x476   :  { %v3155_v62 = vpop.f32.mrf.mxu0  ;;  %v3216_v36 = vpop.f32.mrf.mxu1  ;;  %3363 = vmatpush1.msra.mxu1 %v3328_v6 }
 0x477   :  { %v10310_v37 = vadd.f32 %v3212_v33, %v3152_v14  ;;  %v3156_v39 = vadd.f32 %v3155_v62, %v3095_v16  ;;  %3364 = vmatprep.subr.mxu1 %v3327_v26  ;;  %v11382_v16 = vmov 0.0  }
 0x478   :  { %v3157_v0 = vpop.f32.mrf.mxu0  ;;  %v3218_v24 = vpop.f32.mrf.mxu1  ;;  %3365 = vmatpush1.msra.mxu1 %v3326_v17  ;;  %3398 = vmatprep.mubr.f32.mxu1 %v11382_v16 }
 0x479   :  { %v3158_v9 = vadd.f32 %v3157_v0, %v3097_v35  ;;  %v3217_v63 = vadd.f32 %v3216_v36, %v3156_v39  ;;  %7691 = vmatprep.subr.mxu1 %v10107_v4  ;;  %v3405_v4 = vlaneseq }
 0x47a   :  { %v3159_v19 = vpop.f32.mrf.mxu0  ;;  %v3220_v44 = vpop.f32.mrf.mxu1 }
 0x47b   :  { %v3219_v30 = vadd.f32 %v3218_v24, %v3158_v9  ;;  %v3610_v24 = vld [vmem:[%s11364_s9] ss:$2 sm:$0x3]  ;;  %v7354_v9 = vld [vmem:[%s11364_s9 + $0x1] ss:$2 sm:$0x3] }
 0x47c   :  { %v3160_v57 = vpop.f32.mrf.mxu0  ;;  %v3221_v27 = vpop.f32.mrf.mxu1 }
 0x47d   :  { %3319 = vmatprep.mubr.f32.mxu0 %v3219_v30 }
 0x47e   :  { %3320 = vmatmul.mubr.f32.vlgmr.msra.gmra.mxu0 %v3217_v63 }
 0x47f   :  { %3552 = vmatpush1.msra.mxu0 %v3328_v6  ;;  %3587 = vmatprep.mubr.f32.mxu0 %v11382_v16 }
 0x480   :  { %3553 = vmatprep.subr.mxu0 %v3327_v26 }
 0x481   :  { %3554 = vmatpush1.msra.mxu0 %v3326_v17 }
 0x53e   :  { %v7688_v18 = vpop.f32.mrf.mxu0 }
 0x540   :  { %v7689_v32 = vpop.f32.mrf.mxu0 }
 0x541   :  { %v7690_v23 = vadd.f32 %v7689_v32, %v7688_v18 }
 0x543   :  { %v3325_v29 = vmul.f32 0.001953125, %v7690_v23 }
 0x545   :  { %7352 = vmatmul.mubr.msk.f32.vlgmr.msra.gmra.mxu1 %vm3330_vm1, %v3325_v29 }
 0x546   :  { %7692 = vmatpush3.msra.mxu1 %v10112_v38  ;;  %v3406_v38 = vshrl.u32 %v3405_v4, 7 }
 0x547   :  { %7693 = vmatprep.subr.mxu1 %v10119_v20 }
 0x548   :  { %7694 = vmatpush3.msra.mxu1 %v10124_v21  ;;  %v10347_v20 = vsub.s32 0, %v3406_v38  ;;  %v10368_v44 = vsub.s32 1, %v3406_v38 }
 0x549   :  { %7695 = vmatprep.subr.mxu1 %v10131_v60 }
 0x54a   :  { %7696 = vmatpush3.msra.mxu1 %v10136_v2  ;;  %11395 = vst [vmem:[#allocation21_spill] sm:$0xff] %v10368_v44  ;;  %v3615_v63 = vrot.slane %v3610_v24, %v10347_v20  ;;  %v3636_v27 = vrot.slane %v7354_v9, %v10347_v20  ;;  %v3619_v23 = vrot.slane %v3610_v24, %v10368_v44  ;;  %v8320_v24 = vld [vmem:[%s11396_s18 + $0x8] ss:$0 sps:$4 sm:$0x11]  }
 0x54b   :  { %7697 = vmatprep.subr.mxu1 %v10143_v5  ;;  %v3640_v29 = vrot.slane %v7354_v9, %v10368_v44  ;;  %v8324_v9 = vld [vmem:[%s11396_s18 + $0x20] ss:$0 sps:$4 sm:$0x11]  }
 0x54c   :  { %7698 = vmatpush3.msra.mxu1 %v10148_v51 }
 0x54d   :  { %7699 = vmatprep.subr.mxu1 %v10155_v50 }
 0x54e   :  { %7700 = vmatpush3.msra.mxu1 %v10161_v1 }
 0x54f   :  { %7701 = vmatprep.subr.mxu1 %v10167_v7 }
 0x550   :  { %7702 = vmatpush3.msra.mxu1 %v10173_v11 }
 0x551   :  { %7703 = vmatprep.subr.mxu1 %v10179_v12 }
 0x552   :  { %7704 = vmatpush3.msra.mxu1 %v10185_v13 }
 0x553   :  { %7705 = vmatprep.subr.mxu1 %v10191_v40 }
 0x554   :  { %7706 = vmatpush3.msra.mxu1 %v10197_v55 }
 0x555   :  { %7707 = vmatprep.subr.mxu1 %v10203_v3 }
 0x556   :  { %7708 = vmatpush3.msra.mxu1 %v10209_v41 }
 0x557   :  { %7709 = vmatprep.subr.mxu1 %v10215_v10 }
 0x558   :  { %7710 = vmatpush3.msra.mxu1 %v10221_v43 }
 0x559   :  { %7711 = vmatprep.subr.mxu1 %v10227_v61 }
 0x55a   :  { %7712 = vmatpush3.msra.mxu1 %v10233_v42 }
 0x55b   :  { %7713 = vmatprep.subr.mxu1 %v10239_v45 }
 0x55c   :  { %7714 = vmatpush3.msra.mxu1 %v10245_v46 }
 0x55d   :  { %7715 = vmatprep.subr.mxu1 %v10251_v52 }
 0x55e   :  { %7716 = vmatpush3.msra.mxu1 %v10257_v47 }
 0x55f   :  { %7717 = vmatprep.subr.mxu1 %v10263_v58 }
 0x560   :  { %7718 = vmatpush3.msra.mxu1 %v10269_v48 }
 0x561   :  { %7719 = vmatprep.subr.mxu1 %v10275_v53 }
 0x562   :  { %7720 = vmatpush3.msra.mxu1 %v10281_v54 }
 0x563   :  { %7721 = vmatprep.subr.mxu1 %v10287_v56 }
 0x564   :  { %7722 = vmatpush3.msra.mxu1 %v10292_v59 }
 0x605   :  { %v3400_v21 = vpop.f32.mrf.mxu1 }
 0x606   :  { %v3408_v60 = vrot.slane %v3400_v21, %v10347_v20 }
 0x607   :  { %v3402_v2 = vpop.f32.mrf.mxu1 }
 0x608   :  { %v3413_v5 = vsub.f32 %v10296_v15, %v3408_v60  ;;  %v3415_v51 = vsub.f32 %v10300_v8, %v3408_v60  ;;  %v3417_v50 = vsub.f32 %v10304_v31, %v3408_v60  ;;  %v3412_v1 = vrot.slane %v3402_v2, %v10347_v20 }
 0x609   :  { %v3419_v7 = vsub.f32 %v10308_v34, %v3408_v60 }
 0x60a   :  { %v3421_v11 = vmul.f32 %v3413_v5, %v3413_v5  ;;  %v3423_v12 = vmul.f32 %v3415_v51, %v3415_v51  ;;  %v3414_v13 = vsub.f32 %v10298_v25, %v3412_v1  ;;  %v3416_v40 = vsub.f32 %v10302_v49, %v3412_v1 }
 0x60b   :  { %v3418_v55 = vsub.f32 %v10306_v22, %v3412_v1  ;;  %v3425_v3 = vmul.f32 %v3417_v50, %v3417_v50  ;;  %v3420_v10 = vsub.f32 %v10310_v37, %v3412_v1  ;;  %v3427_v42 = vmul.f32 %v3419_v7, %v3419_v7 }
 0x60c   :  { %v3429_v41 = vadd.f32 %v3423_v12, %v3421_v11  ;;  %v3422_v43 = vmul.f32 %v3414_v13, %v3414_v13  ;;  %v3424_v61 = vmul.f32 %v3416_v40, %v3416_v40 }
 0x60d   :  { %v3426_v46 = vmul.f32 %v3418_v55, %v3418_v55  ;;  %v3428_v58 = vmul.f32 %v3420_v10, %v3420_v10 }
 0x60e   :  { %v3430_v45 = vadd.f32 %v3429_v41, %v3425_v3  ;;  %v3438_v52 = vadd.f32 %v3424_v61, %v3422_v43 }
 0x610   :  { %v3431_v47 = vadd.f32 %v3430_v45, %v3427_v42  ;;  %v3439_v48 = vadd.f32 %v3438_v52, %v3426_v46 }
 0x612   :  { %v3432_v53 = vrot.slane %v3431_v47, 4  ;;  %v3440_v54 = vadd.f32 %v3439_v48, %v3428_v58 }
 0x614   :  { %v3433_v56 = vadd.f32 %v3432_v53, %v3431_v47  ;;  %v3441_v59 = vrot.slane %v3440_v54, 4 }
 0x616   :  { %v3434_v15 = vrot.slane %v3433_v56, 2  ;;  %v3442_v25 = vadd.f32 %v3441_v59, %v3440_v54 }
 0x618   :  { %v3435_v8 = vadd.f32 %v3434_v15, %v3433_v56  ;;  %v3443_v49 = vrot.slane %v3442_v25, 2 }
 0x61a   :  { %v3444_v31 = vadd.f32 %v3443_v49, %v3442_v25  ;;  %v3436_v22 = vrot.slane %v3435_v8, 1 }
 0x61c   :  { %v3445_v33 = vrot.slane %v3444_v31, 1  ;;  %v3437_v34 = vadd.f32 %v3436_v22, %v3435_v8 }
 0x61e   :  { %v3446_v14 = vadd.f32 %v3445_v33, %v3444_v31 }
 0x620   :  { %3511 = vmatprep.mubr.f32.mxu1 %v3446_v14 }
 0x621   :  { %3512 = vmatmul.mubr.f32.vlgmr.msra.gmra.mxu1 %v3437_v34  ;;  %v8329_v34 = vld [vmem:[%s11362_s7 + $0x74] ss:$8 sps:$4 sm:$0xff]  }
 0x622   :  { %3867 = vmatprep.mubr.bf16.mxu1 %v11394_v28 }
 0x6e1   :  { %v7723_v62 = vpop.f32.mrf.mxu1 }
 0x6e3   :  { %v7724_v36 = vpop.f32.mrf.mxu1 }
 0x6e4   :  { %v7725_v35 = vadd.f32 %v7724_v36, %v7723_v62  ;;  %v8319_v36 = vld [vmem:[%s11396_s18] sm:$0xff]  }
 0x6e6   :  { %v3517_v37 = vmul.f32 0.001953125, %v7725_v35  ;;  %v8323_v35 = vld [vmem:[%s11396_s18 + $0x18] sm:$0xff]  }
 0x6e8   :  { %v3518_v39 = vadd.f32 1e-05, %v3517_v37  ;;  %v8327_v37 = vld [vmem:[%s11362_s7 + $0x70] ss:$8 sps:$4 sm:$0xff]  }
 0x6ea   :  { %8715 = vrsqrt.f32 %v3518_v39  ;;  %v8332_v39 = vld [vmem:[%s11362_s7 + $0x64] ss:$8 sps:$4 sm:$0xff]  }
 0x6f7   :  { %v8716_v0 = vpop.eup %8715 }
 0x6f8   :  { %7353 = vmatmul.mubr.msk.f32.vlgmr.msra.gmra.mxu0 %vm3330_vm1, %v8716_v0  ;;  %v8330_v0 = vld [vmem:[%s11362_s7 + $0x60] ss:$8 sps:$4 sm:$0xff]  }
 0x6f9   :  { %3721 = vmatprep.mubr.bf16.mxu0 %v11394_v28 }
 0x7b8   :  { %v3589_v19 = vpop.f32.mrf.mxu0 }
 0x7b9   :  { %v3597_v30 = vrot.slane %v3589_v19, %v10347_v20  ;;  %v8335_v19 = vld [vmem:[%s11362_s7 + $0x54] ss:$8 sps:$4 sm:$0xff]  }
 0x7ba   :  { %v3591_v57 = vpop.f32.mrf.mxu0 }
 0x7bb   :  { %v3602_v6 = vmul.f32 %v3597_v30, %v3413_v5  ;;  %v3604_v26 = vmul.f32 %v3597_v30, %v3415_v51  ;;  %v3606_v17 = vmul.f32 %v3597_v30, %v3417_v50  ;;  %v3608_v18 = vmul.f32 %v3597_v30, %v3419_v7  ;;  %v8333_v30 = vld [vmem:[%s11362_s7 + $0x50] ss:$8 sps:$4 sm:$0xff]  }
 0x7bc   :  { %v3601_v32 = vrot.slane %v3591_v57, %v10347_v20  ;;  %v8336_v57 = vld [vmem:[%s11362_s7 + $0x40] ss:$8 sps:$4 sm:$0xff]  }
 0x7bd   :  { %v3622_v4 = vmul.f32 %v3615_v63, %v3602_v6  ;;  %v3624_v38 = vmul.f32 %v3615_v63, %v3604_v26  ;;  %v3626_v21 = vmul.f32 %v3615_v63, %v3606_v17  ;;  %v3628_v60 = vmul.f32 %v3615_v63, %v3608_v18  ;;  %v8338_v63 = vld [vmem:[%s11362_s7 + $0x44] ss:$8 sps:$4 sm:$0xff]   ;;  %v8341_v6 = vld [vmem:[%s11362_s7 + $0x34] ss:$8 sps:$4 sm:$0xff]   ;;  %v8339_v26 = vld [vmem:[%s11362_s7 + $0x30] ss:$8 sps:$4 sm:$0xff]  }
 0x7be   :  { %v3603_v2 = vmul.f32 %v3601_v32, %v3414_v13  ;;  %v3605_v1 = vmul.f32 %v3601_v32, %v3416_v40  ;;  %v3607_v11 = vmul.f32 %v3601_v32, %v3418_v55  ;;  %v3609_v12 = vmul.f32 %v3601_v32, %v3420_v10  ;;  %v8347_v17 = vld [vmem:[%s11362_s7 + $0x24] ss:$8 sps:$4 sm:$0xff]   ;;  %v8344_v18 = vld [vmem:[%s11362_s7 + $0x174] ss:$8 sps:$4 sm:$0xff]   ;;  %v8345_v32 = vld [vmem:[%s11362_s7 + $0x20] ss:$8 sps:$4 sm:$0xff]  }
 0x7bf   :  { %v3647_v3 = vadd.f32 %v3636_v27, %v3626_v21  ;;  %v3649_v41 = vadd.f32 %v3636_v27, %v3628_v60  ;;  %v3643_v5 = vadd.f32 %v3636_v27, %v3622_v4  ;;  %v3645_v45 = vadd.f32 %v3636_v27, %v3624_v38  ;;  %v8321_v27 = vld [vmem:[%s11396_s18 + $0xc] sm:$0xff]   ;;  %v8357_v21 = vld [vmem:[%s11362_s7] ss:$8 sps:$4 sm:$0xff]  }
 0x7c0   :  { %v3623_v51 = vmul.f32 %v3619_v23, %v3603_v2  ;;  %v3625_v50 = vmul.f32 %v3619_v23, %v3605_v1  ;;  %v3627_v7 = vmul.f32 %v3619_v23, %v3607_v11  ;;  %v3629_v43 = vmul.f32 %v3619_v23, %v3609_v12  ;;  %v8322_v23 = vld [vmem:[%s11396_s18 + $0x14] ss:$0 sps:$4 sm:$0x11]   ;;  %v8351_v4 = vld [vmem:[%s11362_s7 + $0x10] ss:$8 sps:$4 sm:$0xff]   ;;  %v8325_v60 = vld [vmem:[%s11396_s18 + $0x24] sm:$0xff]  }
 0x7c1   :  { %v3655_v61 = vmul.f32 0.2, %v3647_v3  ;;  %v3657_v42 = vmul.f32 0.2, %v3649_v41  ;;  %v3651_v48 = vmul.f32 0.2, %v3643_v5 }
 0x7c2   :  { %v3648_v46 = vadd.f32 %v3640_v29, %v3627_v7  ;;  %v3650_v52 = vadd.f32 %v3640_v29, %v3629_v43  ;;  %v3644_v47 = vadd.f32 %v3640_v29, %v3623_v51  ;;  %v3646_v58 = vadd.f32 %v3640_v29, %v3625_v50  ;;  %v8353_v29 = vld [vmem:[%s11362_s7 + $0x14] ss:$8 sps:$4 sm:$0xff]   ;;  %v8359_v38 = vld [vmem:[%s11362_s7 + $0x4] ss:$8 sps:$4 sm:$0xff]   ;;  %v8342_v1 = vld [vmem:[%s11362_s7 + $0x170] ss:$8 sps:$4 sm:$0xff]  }
 0x7c3   :  { %v3663_v55 = vmax.f32 %v3647_v3, %v3655_v61  ;;  %v3665_v10 = vmax.f32 %v3649_v41, %v3657_v42  ;;  %v3653_v56 = vmul.f32 0.2, %v3645_v45  ;;  %v3659_v22 = vmax.f32 %v3643_v5, %v3651_v48  ;;  %v8365_v2 = vld [vmem:[%s11362_s7 + $0xf4] ss:$8 sps:$4 sm:$0xff]   ;;  %v8350_v11 = vld [vmem:[%s11362_s7 + $0x164] ss:$8 sps:$4 sm:$0xff]  }
 0x7c4   :  { %v3656_v53 = vmul.f32 0.2, %v3648_v46  ;;  %v3658_v13 = vmul.f32 0.2, %v3650_v52  ;;  %v3652_v40 = vmul.f32 0.2, %v3644_v47 }
 0x7c5   :  { %v3654_v54 = vmul.f32 0.2, %v3646_v58  ;;  %v3669_v31 = vpack.c.bf16 %v3665_v10, %v3663_v55  ;;  %v3661_v33 = vmax.f32 %v3645_v45, %v3653_v56  ;;  %v8363_v12 = vld [vmem:[%s11362_s7 + $0xf0] ss:$8 sps:$4 sm:$0xff]   ;;  %v8371_v3 = vld [vmem:[%s11362_s7 + $0xe4] ss:$8 sps:$4 sm:$0xff]  }
 0x7c6   :  { %v3664_v59 = vmax.f32 %v3648_v46, %v3656_v53  ;;  %v3666_v15 = vmax.f32 %v3650_v52, %v3658_v13  ;;  %v3660_v25 = vmax.f32 %v3644_v47, %v3652_v40  ;;  %v8348_v41 = vld [vmem:[%s11362_s7 + $0x160] ss:$8 sps:$4 sm:$0xff]   ;;  %v8356_v5 = vld [vmem:[%s11362_s7 + $0x154] ss:$8 sps:$4 sm:$0xff]   ;;  %v8354_v43 = vld [vmem:[%s11362_s7 + $0x150] ss:$8 sps:$4 sm:$0xff]  }
 0x7c7   :  { %v3662_v8 = vmax.f32 %v3646_v58, %v3654_v54  ;;  %v3667_v62 = vpack.c.bf16 %v3661_v33, %v3659_v22  ;;  %v8369_v51 = vld [vmem:[%s11362_s7 + $0xe0] ss:$8 sps:$4 sm:$0xff]   ;;  %v8326_v50 = vld [vmem:[%s11396_s18 + $0x2c] ss:$0 sps:$4 sm:$0x11]  }
 0x7c8   :  { %v3670_v49 = vpack.c.bf16 %v3666_v15, %v3664_v59  ;;  %v8377_v7 = vld [vmem:[%s11362_s7 + $0xd4] ss:$8 sps:$4 sm:$0xff]   ;;  %v8362_v61 = vld [vmem:[%s11362_s7 + $0x144] ss:$8 sps:$4 sm:$0xff]   ;;  %v8375_v42 = vld [vmem:[%s11362_s7 + $0xd0] ss:$8 sps:$4 sm:$0xff]  }
 0x7c9   :  { %v3668_v14 = vpack.c.bf16 %v3662_v8, %v3660_v25  ;;  %v8383_v45 = vld [vmem:[%s11362_s7 + $0xc4] ss:$8 sps:$4 sm:$0xff]   ;;  %v8360_v46 = vld [vmem:[%s11362_s7 + $0x140] ss:$8 sps:$4 sm:$0xff]   ;;  %v8368_v52 = vld [vmem:[%s11362_s7 + $0x134] ss:$8 sps:$4 sm:$0xff]  }
 0x7ca   :  { %3701 = vmatprep.subr.bf16.mxu0 %v3670_v49  ;;  %3847 = vmatprep.subr.bf16.mxu1 %v3670_v49  ;;  %v8381_v47 = vld [vmem:[%s11362_s7 + $0xc0] ss:$8 sps:$4 sm:$0xff]   ;;  %v8389_v58 = vld [vmem:[%s11362_s7 + $0xb4] ss:$8 sps:$4 sm:$0xff]   ;;  %v8366_v48 = vld [vmem:[%s11362_s7 + $0x130] ss:$8 sps:$4 sm:$0xff]  }
 0x7cb   :  { %3702 = vmatpush1.bf16.msra.mxu0 %v3669_v31  ;;  %3848 = vmatpush1.bf16.msra.mxu1 %v3669_v31  ;;  %v8374_v53 = vld [vmem:[%s11362_s7 + $0x124] ss:$8 sps:$4 sm:$0xff]   ;;  %v8387_v13 = vld [vmem:[%s11362_s7 + $0xb0] ss:$8 sps:$4 sm:$0xff]   ;;  %v8372_v55 = vld [vmem:[%s11362_s7 + $0x120] ss:$8 sps:$4 sm:$0xff]  }
 0x7cc   :  { %3703 = vmatprep.subr.bf16.mxu0 %v3668_v14  ;;  %3849 = vmatprep.subr.bf16.mxu1 %v3668_v14  ;;  %v8395_v40 = vld [vmem:[%s11362_s7 + $0xa4] ss:$8 sps:$4 sm:$0xff]   ;;  %v8380_v10 = vld [vmem:[%s11362_s7 + $0x114] ss:$8 sps:$4 sm:$0xff]   ;;  %v8393_v54 = vld [vmem:[%s11362_s7 + $0xa0] ss:$8 sps:$4 sm:$0xff]  }
 0x7cd   :  { %v8378_v56 = vld [vmem:[%s11362_s7 + $0x110] ss:$8 sps:$4 sm:$0xff]   ;;  %v8386_v59 = vld [vmem:[%s11362_s7 + $0x104] ss:$8 sps:$4 sm:$0xff]   ;;  %v8384_v15 = vld [vmem:[%s11362_s7 + $0x100] ss:$8 sps:$4 sm:$0xff]  }
 0x7ce   :  { %v8392_v25 = vld [vmem:[%s11362_s7 + $0x1f4] ss:$8 sps:$4 sm:$0xff]   ;;  %v8390_v8 = vld [vmem:[%s11362_s7 + $0x1f0] ss:$8 sps:$4 sm:$0xff]   ;;  %v8396_v33 = vld [vmem:[%s11362_s7 + $0x1e0] ss:$8 sps:$4 sm:$0xff]  }
 0x7cf   :  { %3704 = vmatpush1.bf16.msra.mxu0 %v3667_v62  ;;  %3850 = vmatpush1.bf16.msra.mxu1 %v3667_v62  ;;  %v8401_v22 = vld [vmem:[%s11362_s7 + $0x94] ss:$8 sps:$4 sm:$0xff]  }
 0x7d0   :  { %3774 = vmatprep.subr.bf16.mxu0 %v3670_v49  ;;  %4731 = vmatprep.subr.bf16.mxu1 %v8329_v34  ;;  %v8407_v34 = vld [vmem:[%s11362_s7 + $0x84] ss:$8 sps:$4 sm:$0xff]  }
 0x7d2   :  { %7357 = vmatmul.mubr.msk.bf16.vlgmr.msra.gmra.mxu0 %vm3682_vm2, %v8319_v36  ;;  %7371 = vmatmul.mubr.msk.bf16.vlgmr.msra.gmra.mxu1 %vm3682_vm2, %v8323_v35  ;;  %v8405_v36 = vld [vmem:[%s11362_s7 + $0x80] ss:$8 sps:$4 sm:$0xff]   ;;  %v8410_v35 = vld [vmem:[%s11362_s7 + $0x1c4] ss:$8 sps:$4 sm:$0xff]  }
 0x7d3   :  { %3775 = vmatpush1.bf16.msra.mxu0 %v3669_v31  ;;  %3731 = vmatprep.mubr.bf16.mxu0 %v11394_v28 }
 0x7d4   :  { %3776 = vmatprep.subr.bf16.mxu0 %v3668_v14  ;;  %3877 = vmatprep.mubr.bf16.mxu1 %v11394_v28 }
 0x7d5   :  { %4732 = vmatpush1.bf16.msra.mxu1 %v8327_v37  ;;  %v8416_v37 = vld [vmem:[%s11362_s7 + $0x274] ss:$8 sps:$4 sm:$0xff]  }
 0x7d6   :  { %4733 = vmatprep.subr.bf16.mxu1 %v8332_v39  ;;  %v8408_v39 = vld [vmem:[%s11362_s7 + $0x1c0] ss:$8 sps:$4 sm:$0xff]  }
 0x7d7   :  { %3777 = vmatpush1.bf16.msra.mxu0 %v3667_v62 }
 0x7d8   :  { %3920 = vmatprep.subr.bf16.mxu0 %v3670_v49  ;;  %v8398_v49 = vld [vmem:[%s11362_s7 + $0x1e4] ss:$8 sps:$4 sm:$0xff]  }
 0x7d9   :  { %4734 = vmatpush1.bf16.msra.mxu1 %v8330_v0  ;;  %v8413_v0 = vld [vmem:[%s11362_s7 + $0x1b4] ss:$8 sps:$4 sm:$0xff]  }
 0x7da   :  { %7358 = vmatmul.mubr.msk.bf16.gmra.mxu0 %vm3682_vm2, %v8320_v24  ;;  %7372 = vmatmul.mubr.msk.bf16.gmra.mxu1 %vm3682_vm2, %v8324_v9  ;;  %v8411_v24 = vld [vmem:[%s11362_s7 + $0x1b0] ss:$8 sps:$4 sm:$0xff]   ;;  %v8419_v9 = vld [vmem:[%s11362_s7 + $0x1a4] ss:$8 sps:$4 sm:$0xff]  }
 0x7db   :  { %3794 = vmatprep.mubr.bf16.mxu0 %v11394_v28  ;;  %4735 = vmatprep.subr.bf16.mxu1 %v8335_v19  ;;  %v8417_v19 = vld [vmem:[%s11362_s7 + $0x1a0] ss:$8 sps:$4 sm:$0xff]  }
 0x7dd   :  { %4736 = vmatpush1.bf16.msra.mxu1 %v8333_v30  ;;  %v8425_v30 = vld [vmem:[%s11362_s7 + $0x194] ss:$8 sps:$4 sm:$0xff]  }
 0x7de   :  { %4737 = vmatprep.subr.bf16.mxu1 %v8338_v63  ;;  %v8423_v63 = vld [vmem:[%s11362_s7 + $0x190] ss:$8 sps:$4 sm:$0xff]  }
 0x7e1   :  { %4738 = vmatpush1.bf16.msra.mxu1 %v8336_v57  ;;  %v8431_v57 = vld [vmem:[%s11362_s7 + $0x184] ss:$8 sps:$4 sm:$0xff]  }
 0x7e2   :  { %7364 = vmatmul.mubr.msk.bf16.vlgmr.msra.gmra.mxu0 %vm3682_vm2, %v8321_v27  ;;  %4739 = vmatprep.subr.bf16.mxu1 %v8341_v6  ;;  %v8429_v27 = vld [vmem:[%s11362_s7 + $0x180] ss:$8 sps:$4 sm:$0xff]   ;;  %v8440_v6 = vld [vmem:[%s11362_s7 + $0x374] ss:$8 sps:$4 sm:$0xff]  }
 0x7e3   :  { %3921 = vmatpush1.bf16.msra.mxu0 %v3669_v31  ;;  %3804 = vmatprep.mubr.bf16.mxu0 %v11394_v28  ;;  %v8399_v31 = vld [vmem:[%s11362_s7 + $0x90] ss:$8 sps:$4 sm:$0xff]  }
 0x7e4   :  { %3922 = vmatprep.subr.bf16.mxu0 %v3668_v14  ;;  %v8404_v14 = vld [vmem:[%s11362_s7 + $0x1d4] ss:$8 sps:$4 sm:$0xff]  }
 0x7e5   :  { %4740 = vmatpush1.bf16.msra.mxu1 %v8339_v26 }
 0x7e6   :  { %4741 = vmatprep.subr.bf16.mxu1 %v8347_v17 }
 0x7e7   :  { %3923 = vmatpush1.bf16.msra.mxu0 %v3667_v62  ;;  %v8402_v62 = vld [vmem:[%s11362_s7 + $0x1d0] ss:$8 sps:$4 sm:$0xff]  }
 0x7e8   :  { %4782 = vmatprep.subr.bf16.mxu0 %v8344_v18 }
 0x7e9   :  { %4742 = vmatpush1.bf16.msra.mxu1 %v8345_v32 }
 0x7ea   :  { %7365 = vmatmul.mubr.msk.bf16.gmra.mxu0 %vm3682_vm2, %v8322_v23  ;;  %4743 = vmatprep.subr.bf16.mxu1 %v8353_v29 }
 0x7eb   :  { %3940 = vmatprep.mubr.bf16.mxu0 %v11394_v28 }
 0x7ed   :  { %4744 = vmatpush1.bf16.msra.mxu1 %v8351_v4 }
 0x7ee   :  { %4745 = vmatprep.subr.bf16.mxu1 %v8359_v38 }
 0x7f1   :  { %4746 = vmatpush1.bf16.msra.mxu1 %v8357_v21 }
 0x7f2   :  { %7378 = vmatmul.mubr.msk.bf16.vlgmr.msra.gmra.mxu0 %vm3682_vm2, %v8325_v60  ;;  %4747 = vmatprep.subr.bf16.mxu1 %v8365_v2  ;;  %v8414_v2 = vld [vmem:[%s11362_s7 + $0x270] ss:$8 sps:$4 sm:$0xff]  }
 0x7f3   :  { %3950 = vmatprep.mubr.bf16.mxu0 %v11394_v28  ;;  %4783 = vmatpush1.bf16.msra.mxu0 %v8342_v1 }
 0x7f4   :  { %4784 = vmatprep.subr.bf16.mxu0 %v8350_v11 }
 0x7f5   :  { %4748 = vmatpush2.bf16.msra.mxu1 %v8363_v12  ;;  %v8422_v12 = vld [vmem:[%s11362_s7 + $0x264] ss:$8 sps:$4 sm:$0xff]  }
 0x7f6   :  { %4749 = vmatprep.subr.bf16.mxu1 %v8371_v3 }
 0x7f7   :  { %4785 = vmatpush1.bf16.msra.mxu0 %v8348_v41 }
 0x7f8   :  { %4786 = vmatprep.subr.bf16.mxu0 %v8356_v5 }
 0x7f9   :  { %4750 = vmatpush2.bf16.msra.mxu1 %v8369_v51 }
 0x7fa   :  { %7379 = vmatmul.mubr.msk.bf16.gmra.mxu0 %vm3682_vm2, %v8326_v50  ;;  %4751 = vmatprep.subr.bf16.mxu1 %v8377_v7  ;;  %v8420_v50 = vld [vmem:[%s11362_s7 + $0x260] ss:$8 sps:$4 sm:$0xff]  }
 0x7fb   :  { %4787 = vmatpush1.bf16.msra.mxu0 %v8354_v43  ;;  %v8428_v43 = vld [vmem:[%s11362_s7 + $0x254] ss:$8 sps:$4 sm:$0xff]  }
 0x7fc   :  { %4788 = vmatprep.subr.bf16.mxu0 %v8362_v61 }
 0x7fd   :  { %4752 = vmatpush2.bf16.msra.mxu1 %v8375_v42 }
 0x7fe   :  { %4753 = vmatprep.subr.bf16.mxu1 %v8383_v45 }
 0x7ff   :  { %4789 = vmatpush1.bf16.msra.mxu0 %v8360_v46  ;;  %v8426_v46 = vld [vmem:[%s11362_s7 + $0x250] ss:$8 sps:$4 sm:$0xff]  }
 0x800   :  { %4790 = vmatprep.subr.bf16.mxu0 %v8368_v52 }
 0x801   :  { %4754 = vmatpush2.bf16.msra.mxu1 %v8381_v47 }
 0x802   :  { %4755 = vmatprep.subr.bf16.mxu1 %v8389_v58 }
 0x803   :  { %4791 = vmatpush1.bf16.msra.mxu0 %v8366_v48  ;;  %v8434_v48 = vld [vmem:[%s11362_s7 + $0x244] ss:$8 sps:$4 sm:$0xff]  }
 0x804   :  { %4792 = vmatprep.subr.bf16.mxu0 %v8374_v53 }
 0x805   :  { %4756 = vmatpush2.bf16.msra.mxu1 %v8387_v13  ;;  %v8432_v13 = vld [vmem:[%s11362_s7 + $0x240] ss:$8 sps:$4 sm:$0xff]  }
 0x806   :  { %4757 = vmatprep.subr.bf16.mxu1 %v8395_v40 }
 0x807   :  { %4793 = vmatpush1.bf16.msra.mxu0 %v8372_v55  ;;  %v8437_v55 = vld [vmem:[%s11362_s7 + $0x234] ss:$8 sps:$4 sm:$0xff]  }
 0x808   :  { %4794 = vmatprep.subr.bf16.mxu0 %v8380_v10 }
 0x809   :  { %4758 = vmatpush2.bf16.msra.mxu1 %v8393_v54 }
 0x80a   :  { %4759 = vmatprep.subr.bf16.mxu1 %v8401_v22  ;;  %v8441_v22 = vld [vmem:[%s11362_s7 + $0x220] ss:$8 sps:$4 sm:$0xff]  }
 0x80b   :  { %4795 = vmatpush1.bf16.msra.mxu0 %v8378_v56  ;;  %v8435_v56 = vld [vmem:[%s11362_s7 + $0x230] ss:$8 sps:$4 sm:$0xff]  }
 0x80c   :  { %4796 = vmatprep.subr.bf16.mxu0 %v8386_v59  ;;  %v8438_v59 = vld [vmem:[%s11362_s7 + $0x370] ss:$8 sps:$4 sm:$0xff]  }
 0x80d   :  { %4760 = vmatpush2.bf16.msra.mxu1 %v8399_v31 }
 0x80e   :  { %4761 = vmatprep.subr.bf16.mxu1 %v8407_v34  ;;  %v8449_v34 = vld [vmem:[%s11362_s7 + $0x214] ss:$8 sps:$4 sm:$0xff]  }
 0x80f   :  { %4797 = vmatpush1.bf16.msra.mxu0 %v8384_v15 }
 0x810   :  { %4798 = vmatprep.subr.bf16.mxu0 %v8392_v25 }
 0x811   :  { %4762 = vmatpush2.bf16.msra.mxu1 %v8405_v36 }
 0x812   :  { %4833 = vmatprep.subr.bf16.mxu1 %v8416_v37 }
 0x813   :  { %4799 = vmatpush2.bf16.msra.mxu0 %v8390_v8  ;;  %v8443_v8 = vld [vmem:[%s11362_s7 + $0x224] ss:$8 sps:$4 sm:$0xff]  }
 0x814   :  { %4800 = vmatprep.subr.bf16.mxu0 %v8398_v49  ;;  %v8446_v49 = vld [vmem:[%s11362_s7 + $0x364] ss:$8 sps:$4 sm:$0xff]  }
 0x817   :  { %4801 = vmatpush2.bf16.msra.mxu0 %v8396_v33  ;;  %v8444_v33 = vld [vmem:[%s11362_s7 + $0x360] ss:$8 sps:$4 sm:$0xff]  }
 0x818   :  { %4802 = vmatprep.subr.bf16.mxu0 %v8404_v14 }
 0x81b   :  { %4803 = vmatpush2.bf16.msra.mxu0 %v8402_v62  ;;  %v8452_v62 = vld [vmem:[%s11362_s7 + $0x354] ss:$8 sps:$4 sm:$0xff]  }
 0x81c   :  { %4804 = vmatprep.subr.bf16.mxu0 %v8410_v35 }
 0x81f   :  { %4805 = vmatpush2.bf16.msra.mxu0 %v8408_v39  ;;  %v8447_v39 = vld [vmem:[%s11362_s7 + $0x210] ss:$8 sps:$4 sm:$0xff]  }
 0x820   :  { %4806 = vmatprep.subr.bf16.mxu0 %v8413_v0  ;;  %v8450_v0 = vld [vmem:[%s11362_s7 + $0x350] ss:$8 sps:$4 sm:$0xff]  }
 0x823   :  { %4807 = vmatpush2.bf16.msra.mxu0 %v8411_v24  ;;  %v8455_v24 = vld [vmem:[%s11362_s7 + $0x204] ss:$8 sps:$4 sm:$0xff]  }
 0x824   :  { %4808 = vmatprep.subr.bf16.mxu0 %v8419_v9  ;;  %v8458_v9 = vld [vmem:[%s11362_s7 + $0x344] ss:$8 sps:$4 sm:$0xff]  }
 0x827   :  { %4809 = vmatpush2.bf16.msra.mxu0 %v8417_v19 }
 0x828   :  { %4810 = vmatprep.subr.bf16.mxu0 %v8425_v30 }
 0x82b   :  { %4811 = vmatpush2.bf16.msra.mxu0 %v8423_v63  ;;  %v8453_v63 = vld [vmem:[%s11362_s7 + $0x200] ss:$8 sps:$4 sm:$0xff]  }
 0x82c   :  { %4812 = vmatprep.subr.bf16.mxu0 %v8431_v57  ;;  %v8456_v57 = vld [vmem:[%s11362_s7 + $0x340] ss:$8 sps:$4 sm:$0xff]  }
 0x82f   :  { %4813 = vmatpush2.bf16.msra.mxu0 %v8429_v27  ;;  %v8461_v27 = vld [vmem:[%s11362_s7 + $0x2f4] ss:$8 sps:$4 sm:$0xff]  }
 0x830   :  { %4884 = vmatprep.subr.bf16.mxu0 %v8440_v6  ;;  %v8464_v6 = vld [vmem:[%s11362_s7 + $0x334] ss:$8 sps:$4 sm:$0xff]  }
 0x892   :  { %v3723_v26 = vpop.f32.mrf.mxu0  ;;  %v10612_v17 = vpop.f32.mrf.mxu1 }
 0x894   :  { %v3725_v18 = vpop.f32.mrf.mxu0  ;;  %v3871_v32 = vpop.f32.mrf.mxu1 }
 0x896   :  { %v3727_v23 = vpop.f32.mrf.mxu0  ;;  %v10614_v29 = vpop.f32.mrf.mxu1 }
 0x897   :  { %v3886_v4 = vpack.c.bf16 %v10614_v29, %v10612_v17  ;;  %v3740_v1 = vpack.c.bf16 %v3727_v23, %v3723_v26  ;;  %v8462_v23 = vld [vmem:[%s11362_s7 + $0x330] ss:$8 sps:$4 sm:$0xff]   ;;  %v8518_v29 = vld [vmem:[%s11362_s7 + $0x384] ss:$8 sps:$4 sm:$0xff]  }
 0x898   :  { %v3729_v38 = vpop.f32.mrf.mxu0  ;;  %v3875_v21 = vpop.f32.mrf.mxu1  ;;  %v8513_v17 = vld [vmem:[%s11362_s7 + $0x390] ss:$8 sps:$4 sm:$0xff]  }
 0x899   :  { %v3741_v60 = vpack.c.bf16 %v3729_v38, %v3725_v18  ;;  %v3887_v52 = vpack.c.bf16 %v3875_v21, %v3871_v32  ;;  %v8459_v32 = vld [vmem:[%s11362_s7 + $0x2f0] ss:$8 sps:$4 sm:$0xff]   ;;  %v8467_v21 = vld [vmem:[%s11362_s7 + $0x2e4] ss:$8 sps:$4 sm:$0xff]  }
 0x89a   :  { %v3733_v11 = vpop.f32.mrf.mxu0  ;;  %v10624_v3 = vpop.f32.mrf.mxu1 }
 0x89b   :  { %4763 = vmatprep.mubr.bf16.mxu1 %v3741_v60  ;;  %v3742_v47 = vpack.c.bf16 %v3733_v11, %v3733_v11  ;;  %v8470_v60 = vld [vmem:[%s11362_s7 + $0x324] ss:$8 sps:$4 sm:$0xff]   ;;  %v8465_v11 = vld [vmem:[%s11362_s7 + $0x2e0] ss:$8 sps:$4 sm:$0xff]  }
 0x89c   :  { %v3735_v41 = vpop.f32.mrf.mxu0  ;;  %4764 = vmatmul.mubr.bf16.vlgmr.msra.gmra.mxu1 %v3740_v1  ;;  %v10626_v5 = vpop.f32.mrf.mxu1 }
 0x89d   :  { %v3743_v51 = vpack.c.bf16 %v3735_v41, %v3735_v41  ;;  %4834 = vmatpush1.bf16.msra.mxu1 %v8414_v2  ;;  %v8473_v41 = vld [vmem:[%s11362_s7 + $0x2d4] ss:$8 sps:$4 sm:$0xff]  }
 0x89e   :  { %v3737_v7 = vpop.f32.mrf.mxu0  ;;  %4835 = vmatprep.subr.bf16.mxu1 %v8422_v12  ;;  %v3883_v61 = vpop.f32.mrf.mxu1  ;;  %v8468_v12 = vld [vmem:[%s11362_s7 + $0x320] ss:$8 sps:$4 sm:$0xff]  }
 0x89f   :  { %4773 = vmatprep.mubr.bf16.mxu1 %v3743_v51  ;;  %v8476_v51 = vld [vmem:[%s11362_s7 + $0x314] ss:$8 sps:$4 sm:$0xff]   ;;  %v8474_v61 = vld [vmem:[%s11362_s7 + $0x310] ss:$8 sps:$4 sm:$0xff]  }
 0x8a0   :  { %v3738_v42 = vpop.f32.mrf.mxu0  ;;  %v3884_v45 = vpop.f32.mrf.mxu1 }
 0x8a1   :  { %4836 = vmatpush1.bf16.msra.mxu1 %v8420_v50  ;;  %v8479_v42 = vld [vmem:[%s11362_s7 + $0x2c4] ss:$8 sps:$4 sm:$0xff]  }
 0x8a2   :  { %v3796_v58 = vpop.f32.mrf.mxu0  ;;  %4837 = vmatprep.subr.bf16.mxu1 %v8428_v43  ;;  %v8471_v43 = vld [vmem:[%s11362_s7 + $0x2d0] ss:$8 sps:$4 sm:$0xff]   ;;  %v8482_v45 = vld [vmem:[%s11362_s7 + $0x304] ss:$8 sps:$4 sm:$0xff]  }
 0x8a4   :  { %v3798_v53 = vpop.f32.mrf.mxu0  ;;  %4774 = vmatmul.mubr.bf16.gmra.mxu1 %v3742_v47  ;;  %v8485_v47 = vld [vmem:[%s11362_s7 + $0x2b4] ss:$8 sps:$4 sm:$0xff]  }
 0x8a5   :  { %4838 = vmatpush1.bf16.msra.mxu1 %v8426_v46  ;;  %4865 = vmatprep.mubr.bf16.mxu1 %v3887_v52  ;;  %v8477_v46 = vld [vmem:[%s11362_s7 + $0x2c0] ss:$8 sps:$4 sm:$0xff]  }
 0x8a6   :  { %v3800_v40 = vpop.f32.mrf.mxu0  ;;  %4839 = vmatprep.subr.bf16.mxu1 %v8434_v48  ;;  %v8480_v52 = vld [vmem:[%s11362_s7 + $0x300] ss:$8 sps:$4 sm:$0xff]   ;;  %v8483_v48 = vld [vmem:[%s11362_s7 + $0x2b0] ss:$8 sps:$4 sm:$0xff]  }
 0x8a7   :  { %v3813_v15 = vpack.c.bf16 %v3800_v40, %v3796_v58  ;;  %v8488_v58 = vld [vmem:[%s11362_s7 + $0x3f4] ss:$8 sps:$4 sm:$0xff]   ;;  %v8494_v40 = vld [vmem:[%s11362_s7 + $0x3e4] ss:$8 sps:$4 sm:$0xff]  }
 0x8a8   :  { %v3802_v10 = vpop.f32.mrf.mxu0 }
 0x8a9   :  { %v3814_v54 = vpack.c.bf16 %v3802_v10, %v3798_v53  ;;  %4840 = vmatpush1.bf16.msra.mxu1 %v8432_v13  ;;  %v8486_v53 = vld [vmem:[%s11362_s7 + $0x3f0] ss:$8 sps:$4 sm:$0xff]   ;;  %v8491_v13 = vld [vmem:[%s11362_s7 + $0x2a4] ss:$8 sps:$4 sm:$0xff]   ;;  %v8492_v10 = vld [vmem:[%s11362_s7 + $0x3e0] ss:$8 sps:$4 sm:$0xff]  }
 0x8aa   :  { %4841 = vmatprep.subr.bf16.mxu1 %v8437_v55  ;;  %v3806_v25 = vpop.f32.mrf.mxu0  ;;  %v8489_v55 = vld [vmem:[%s11362_s7 + $0x2a0] ss:$8 sps:$4 sm:$0xff]  }
 0x8ab   :  { %4814 = vmatprep.mubr.bf16.mxu0 %v3814_v54  ;;  %v3815_v35 = vpack.c.bf16 %v3806_v25, %v3806_v25  ;;  %v8497_v54 = vld [vmem:[%s11362_s7 + $0x294] ss:$8 sps:$4 sm:$0xff]   ;;  %v8503_v25 = vld [vmem:[%s11362_s7 + $0x284] ss:$8 sps:$4 sm:$0xff]  }
 0x8ac   :  { %4815 = vmatmul.mubr.bf16.vlgmr.msra.gmra.mxu0 %v3813_v15  ;;  %v3808_v31 = vpop.f32.mrf.mxu0  ;;  %v8498_v15 = vld [vmem:[%s11362_s7 + $0x3d0] ss:$8 sps:$4 sm:$0xff]  }
 0x8ad   :  { %4842 = vmatpush1.bf16.msra.mxu1 %v8435_v56  ;;  %4885 = vmatpush1.bf16.msra.mxu0 %v8438_v59  ;;  %v3816_v14 = vpack.c.bf16 %v3808_v31, %v3808_v31  ;;  %v8500_v56 = vld [vmem:[%s11362_s7 + $0x3d4] ss:$8 sps:$4 sm:$0xff]   ;;  %v8495_v59 = vld [vmem:[%s11362_s7 + $0x290] ss:$8 sps:$4 sm:$0xff]   ;;  %v8504_v31 = vld [vmem:[%s11362_s7 + $0x3c0] ss:$8 sps:$4 sm:$0xff]  }
 0x8ae   :  { %4843 = vmatprep.subr.bf16.mxu1 %v8443_v8  ;;  %4886 = vmatprep.subr.bf16.mxu0 %v8446_v49  ;;  %v3810_v36 = vpop.f32.mrf.mxu0  ;;  %v8506_v8 = vld [vmem:[%s11362_s7 + $0x3c4] ss:$8 sps:$4 sm:$0xff]   ;;  %v8501_v49 = vld [vmem:[%s11362_s7 + $0x280] ss:$8 sps:$4 sm:$0xff]  }
 0x8af   :  { %4824 = vmatprep.mubr.bf16.mxu0 %v3816_v14  ;;  %v3889_v14 = vpack.c.bf16 %v10626_v5, %v10626_v5  ;;  %v8515_v5 = vld [vmem:[%s11362_s7 + $0x394] ss:$8 sps:$4 sm:$0xff]   ;;  %v3888_v36 = vpack.c.bf16 %v10624_v3, %v10624_v3 }
 0x8b0   :  { %v3811_v37 = vpop.f32.mrf.mxu0 }
 0x8b1   :  { %4844 = vmatpush1.bf16.msra.mxu1 %v8441_v22  ;;  %4887 = vmatpush1.bf16.msra.mxu0 %v8444_v33  ;;  %v8509_v22 = vld [vmem:[%s11362_s7 + $0x3b4] ss:$8 sps:$4 sm:$0xff]   ;;  %v8507_v33 = vld [vmem:[%s11362_s7 + $0x3b0] ss:$8 sps:$4 sm:$0xff]  }
 0x8b2   :  { %4845 = vmatprep.subr.bf16.mxu1 %v8449_v34  ;;  %4888 = vmatprep.subr.bf16.mxu0 %v8452_v62  ;;  %v10682_v19 = vpop.f32.mrf.mxu0  ;;  %v8512_v34 = vld [vmem:[%s11362_s7 + $0x3a4] ss:$8 sps:$4 sm:$0xff]   ;;  %v8510_v62 = vld [vmem:[%s11362_s7 + $0x3a0] ss:$8 sps:$4 sm:$0xff]  }
 0x8b4   :  { %4825 = vmatmul.mubr.bf16.gmra.mxu0 %v3815_v35  ;;  %v3944_v30 = vpop.f32.mrf.mxu0 }
 0x8b5   :  { %4846 = vmatpush1.bf16.msra.mxu1 %v8447_v39  ;;  %4889 = vmatpush1.bf16.msra.mxu0 %v8450_v0  ;;  %v10833_v39 = vld [vmem:[%s11368_s13 + $0xf8] sm:$0xff] }
 0x8b6   :  { %4847 = vmatprep.subr.bf16.mxu1 %v8455_v24  ;;  %4890 = vmatprep.subr.bf16.mxu0 %v8458_v9  ;;  %v10696_v26 = vpop.f32.mrf.mxu0  ;;  %v10838_v0 = vld [vmem:[%s11368_s13 + $0x78] sm:$0xff]  ;;  %v10845_v24 = vld [vmem:[%s11368_s13 + $0xf0] sm:$0xff] }
 0x8b7   :  { %v3959_v35 = vpack.c.bf16 %v10696_v26, %v10682_v19  ;;  %v10851_v9 = vld [vmem:[%s11368_s13 + $0x70] sm:$0xff]  ;;  %v10857_v19 = vld [vmem:[%s11368_s13 + $0xe8] sm:$0xff] }
 0x8b8   :  { %v3948_v18 = vpop.f32.mrf.mxu0  ;;  %v10893_v26 = vld [vmem:[%s11368_s13 + $0xd0] sm:$0xff] }
 0x8b9   :  { %4848 = vmatpush1.bf16.msra.mxu1 %v8453_v63  ;;  %4891 = vmatpush1.bf16.msra.mxu0 %v8456_v57  ;;  %v3960_v38 = vpack.c.bf16 %v3948_v18, %v3944_v30  ;;  %v10863_v30 = vld [vmem:[%s11368_s13 + $0x68] sm:$0xff]  ;;  %v10869_v63 = vld [vmem:[%s11368_s13 + $0xe0] sm:$0xff]  ;;  %v10899_v18 = vld [vmem:[%s11368_s13 + $0x50] sm:$0xff] }
 0x8ba   :  { %4849 = vmatprep.subr.bf16.mxu1 %v8461_v27  ;;  %4892 = vmatprep.subr.bf16.mxu0 %v8464_v6  ;;  %v10710_v2 = vpop.f32.mrf.mxu0  ;;  %v10875_v57 = vld [vmem:[%s11368_s13 + $0x60] sm:$0xff]  ;;  %v10881_v27 = vld [vmem:[%s11368_s13 + $0xd8] sm:$0xff] }
 0x8bb   :  { %4916 = vmatprep.mubr.bf16.mxu0 %v3960_v38  ;;  %v3961_v37 = vpack.c.bf16 %v10710_v2, %v10710_v2  ;;  %v10887_v6 = vld [vmem:[%s11368_s13 + $0x58] sm:$0xff]  ;;  %v10917_v38 = vld [vmem:[%s11368_s13 + $0xc0] sm:$0xff] }
 0x8bc   :  { %v10712_v1 = vpop.f32.mrf.mxu0  ;;  %v10933_v2 = vld [vmem:[%s11368_s13 + $0x38] sm:$0xff] }
 0x8bd   :  { %4850 = vmatpush2.bf16.msra.mxu1 %v8459_v32  ;;  %4893 = vmatpush1.bf16.msra.mxu0 %v8462_v23  ;;  %v3962_v3 = vpack.c.bf16 %v10712_v1, %v10712_v1  ;;  %v10905_v32 = vld [vmem:[%s11368_s13 + $0xc8] sm:$0xff]  ;;  %v10941_v1 = vld [vmem:[%s11368_s13 + $0xb0] sm:$0xff] }
 0x8be   :  { %4851 = vmatprep.subr.bf16.mxu1 %v8467_v21  ;;  %4894 = vmatprep.subr.bf16.mxu0 %v8470_v60  ;;  %v3956_v50 = vpop.f32.mrf.mxu0  ;;  %v10911_v23 = vld [vmem:[%s11368_s13 + $0x48] sm:$0xff]  ;;  %v10922_v21 = vld [vmem:[%s11368_s13 + $0x40] sm:$0xff]  ;;  %v10927_v60 = vld [vmem:[%s11368_s13 + $0xb8] sm:$0xff] }
 0x8bf   :  { %v10971_v50 = vld [vmem:[%s11368_s13 + $0x20] sm:$0xff] }
 0x8c0   :  { %v3957_v7 = vpop.f32.mrf.mxu0 }
 0x8c1   :  { %4852 = vmatpush2.bf16.msra.mxu1 %v8465_v11  ;;  %4895 = vmatpush1.bf16.msra.mxu0 %v8468_v12  ;;  %v10947_v11 = vld [vmem:[%s11368_s13 + $0x30] sm:$0xff]  ;;  %v10953_v12 = vld [vmem:[%s11368_s13 + $0xa8] sm:$0xff]  ;;  %v10977_v7 = vld [vmem:[%s11368_s13 + $0x98] sm:$0xff] }
 0x8c2   :  { %4853 = vmatprep.subr.bf16.mxu1 %v8473_v41  ;;  %4896 = vmatprep.subr.bf16.mxu0 %v8476_v51  ;;  %v10959_v41 = vld [vmem:[%s11368_s13 + $0x28] sm:$0xff]  ;;  %v10965_v51 = vld [vmem:[%s11368_s13 + $0xa0] sm:$0xff] }
 0x8c5   :  { %4854 = vmatpush2.bf16.msra.mxu1 %v8471_v43  ;;  %4897 = vmatpush1.bf16.msra.mxu0 %v8474_v61  ;;  %v10983_v43 = vld [vmem:[%s11368_s13 + $0x18] sm:$0xff]  ;;  %v10989_v61 = vld [vmem:[%s11368_s13 + $0x90] sm:$0xff] }
 0x8c6   :  { %4855 = vmatprep.subr.bf16.mxu1 %v8479_v42  ;;  %4898 = vmatprep.subr.bf16.mxu0 %v8482_v45  ;;  %v10995_v42 = vld [vmem:[%s11368_s13 + $0x10] sm:$0xff]  ;;  %v11001_v45 = vld [vmem:[%s11368_s13 + $0x88] sm:$0xff] }
 0x8c9   :  { %4856 = vmatpush2.bf16.msra.mxu1 %v8477_v46  ;;  %4899 = vmatpush1.bf16.msra.mxu0 %v8480_v52  ;;  %v11007_v46 = vld [vmem:[%s11368_s13 + $0x8] sm:$0xff]  ;;  %v11013_v52 = vld [vmem:[%s11368_s13 + $0x80] sm:$0xff] }
 0x8ca   :  { %4857 = vmatprep.subr.bf16.mxu1 %v8485_v47  ;;  %4900 = vmatprep.subr.bf16.mxu0 %v8488_v58  ;;  %v11018_v47 = vld [vmem:[%s11368_s13] sm:$0xff] }
 0x8cb   :  { %v5045_v58 = vld [vmem:[#allocation9 + $0x38] sm:$0xff] }
 0x8cd   :  { %4858 = vmatpush2.bf16.msra.mxu1 %v8483_v48  ;;  %4901 = vmatpush2.bf16.msra.mxu0 %v8486_v53 }
 0x8ce   :  { %4859 = vmatprep.subr.bf16.mxu1 %v8491_v13  ;;  %4902 = vmatprep.subr.bf16.mxu0 %v8494_v40 }
 0x8d1   :  { %4860 = vmatpush2.bf16.msra.mxu1 %v8489_v55  ;;  %4903 = vmatpush2.bf16.msra.mxu0 %v8492_v10 }
 0x8d2   :  { %4861 = vmatprep.subr.bf16.mxu1 %v8497_v54  ;;  %4904 = vmatprep.subr.bf16.mxu0 %v8500_v56 }
 0x8d5   :  { %4862 = vmatpush2.bf16.msra.mxu1 %v8495_v59  ;;  %4905 = vmatpush2.bf16.msra.mxu0 %v8498_v15 }
 0x8d6   :  { %4863 = vmatprep.subr.bf16.mxu1 %v8503_v25  ;;  %4906 = vmatprep.subr.bf16.mxu0 %v8506_v8 }
 0x8d9   :  { %4864 = vmatpush2.bf16.msra.mxu1 %v8501_v49  ;;  %4907 = vmatpush2.bf16.msra.mxu0 %v8504_v31 }
 0x8da   :  { %4908 = vmatprep.subr.bf16.mxu0 %v8509_v22  ;;  %7726 = vmatprep.subr.mxu1 %v10833_v39 }
 0x8dc   :  { %4866 = vmatmul.mubr.bf16.vlgmr.msra.gmra.mxu1 %v3886_v4  ;;  %v8516_v4 = vld [vmem:[%s11362_s7 + $0x380] ss:$8 sps:$4 sm:$0xff]  }
 0x8dd   :  { %4909 = vmatpush2.bf16.msra.mxu0 %v8507_v33  ;;  %4875 = vmatprep.mubr.bf16.mxu1 %v3889_v14 }
 0x8de   :  { %4910 = vmatprep.subr.bf16.mxu0 %v8512_v34  ;;  %7727 = vmatpush3.msra.mxu1 %v10838_v0 }
 0x8df   :  { %7728 = vmatprep.subr.mxu1 %v10845_v24 }
 0x8e0   :  { %7729 = vmatpush3.msra.mxu1 %v10851_v9 }
 0x8e1   :  { %4911 = vmatpush2.bf16.msra.mxu0 %v8510_v62  ;;  %7730 = vmatprep.subr.mxu1 %v10857_v19 }
 0x8e2   :  { %4912 = vmatprep.subr.bf16.mxu0 %v8515_v5  ;;  %7731 = vmatpush3.msra.mxu1 %v10863_v30 }
 0x8e3   :  { %7732 = vmatprep.subr.mxu1 %v10869_v63 }
 0x8e4   :  { %4876 = vmatmul.mubr.bf16.gmra.mxu1 %v3888_v36 }
 0x8e5   :  { %4913 = vmatpush2.bf16.msra.mxu0 %v8513_v17  ;;  %7733 = vmatpush3.msra.mxu1 %v10875_v57 }
 0x8e6   :  { %4914 = vmatprep.subr.bf16.mxu0 %v8518_v29  ;;  %7734 = vmatprep.subr.mxu1 %v10881_v27 }
 0x8e7   :  { %7735 = vmatpush3.msra.mxu1 %v10887_v6 }
 0x8e8   :  { %7736 = vmatprep.subr.mxu1 %v10893_v26 }
 0x8e9   :  { %4915 = vmatpush2.bf16.msra.mxu0 %v8516_v4  ;;  %7737 = vmatpush3.msra.mxu1 %v10899_v18 }
 0x8ea   :  { %7738 = vmatprep.subr.mxu1 %v10905_v32  ;;  %5073 = vmatprep.subr.mxu0 %v5045_v58 }
 0x8eb   :  { %7739 = vmatpush3.msra.mxu1 %v10911_v23 }
 0x8ec   :  { %4917 = vmatmul.mubr.bf16.vlgmr.msra.gmra.mxu0 %v3959_v35  ;;  %7740 = vmatprep.subr.mxu1 %v10917_v38 }
 0x8ed   :  { %4926 = vmatprep.mubr.bf16.mxu0 %v3962_v3  ;;  %7741 = vmatpush3.msra.mxu1 %v10922_v21 }
 0x8ee   :  { %7742 = vmatprep.subr.mxu1 %v10927_v60 }
 0x8ef   :  { %7743 = vmatpush3.msra.mxu1 %v10933_v2 }
 0x8f0   :  { %7744 = vmatprep.subr.mxu1 %v10941_v1 }
 0x8f1   :  { %7745 = vmatpush3.msra.mxu1 %v10947_v11 }
 0x8f2   :  { %7746 = vmatprep.subr.mxu1 %v10953_v12 }
 0x8f3   :  { %7747 = vmatpush3.msra.mxu1 %v10959_v41 }
 0x8f4   :  { %4927 = vmatmul.mubr.bf16.gmra.mxu0 %v3961_v37  ;;  %7748 = vmatprep.subr.mxu1 %v10965_v51 }
 0x8f5   :  { %5113 = vmatprep.mubr.f32.mxu0 %v11382_v16  ;;  %7749 = vmatpush3.msra.mxu1 %v10971_v50 }
 0x8f6   :  { %7750 = vmatprep.subr.mxu1 %v10977_v7 }
 0x8f7   :  { %7751 = vmatpush3.msra.mxu1 %v10983_v43 }
 0x8f8   :  { %7752 = vmatprep.subr.mxu1 %v10989_v61 }
 0x8f9   :  { %7753 = vmatpush3.msra.mxu1 %v10995_v42 }
 0x8fa   :  { %7754 = vmatprep.subr.mxu1 %v11001_v45 }
 0x8fb   :  { %7755 = vmatpush3.msra.mxu1 %v11007_v46 }
 0x8fc   :  { %7756 = vmatprep.subr.mxu1 %v11013_v52 }
 0x8fd   :  { %7757 = vmatpush3.msra.mxu1 %v11018_v47 }
 0x8fe   :  { %5250 = vmatprep.subr.mxu1 %v5045_v58 }
 0x95c   :  { %v4765_v48 = vpop.f32.mrf.mxu1 }
 0x95e   :  { %v4767_v53 = vpop.f32.mrf.mxu1 }
 0x960   :  { %v4769_v13 = vpop.f32.mrf.mxu1 }
 0x962   :  { %v4771_v40 = vpop.f32.mrf.mxu1 }
 0x964   :  { %v4775_v55 = vpop.f32.mrf.mxu1 }
 0x966   :  { %v4777_v10 = vpop.f32.mrf.mxu1 }
 0x968   :  { %v4779_v54 = vpop.f32.mrf.mxu1 }
 0x96a   :  { %v4780_v56 = vpop.f32.mrf.mxu1 }
 0x96c   :  { %v4816_v59 = vpop.f32.mrf.mxu0 }
 0x96d   :  { %v4817_v15 = vadd.f32 %v4816_v59, %v4765_v48 }
 0x96e   :  { %v4818_v25 = vpop.f32.mrf.mxu0 }
 0x96f   :  { %v4819_v8 = vadd.f32 %v4818_v25, %v4767_v53 }
 0x970   :  { %v4820_v49 = vpop.f32.mrf.mxu0 }
 0x971   :  { %v4821_v31 = vadd.f32 %v4820_v49, %v4769_v13 }
 0x972   :  { %v4822_v22 = vpop.f32.mrf.mxu0 }
 0x973   :  { %v4823_v33 = vadd.f32 %v4822_v22, %v4771_v40 }
 0x974   :  { %v4826_v14 = vpop.f32.mrf.mxu0 }
 0x976   :  { %v4828_v34 = vpop.f32.mrf.mxu0 }
 0x978   :  { %v4830_v62 = vpop.f32.mrf.mxu0 }
 0x979   :  { %v4829_v62 = vadd.f32 %v4828_v34, %v4777_v10  ;;  %v5042_v10 = vld [vmem:[#allocation9 + $0x20] sm:$0xff]  ;;  %v5039_v34 = vld [vmem:[#allocation9 + $0x8] sm:$0xff] }
 0x97a   :  { %v4831_v5 = vpop.f32.mrf.mxu0 }
 0x99c   :  { %v4867_v36 = vpop.f32.mrf.mxu1 }
 0x99d   :  { %v4868_v17 = vadd.f32 %v4867_v36, %v4817_v15 }
 0x99e   :  { %v4869_v29 = vpop.f32.mrf.mxu1 }
 0x99f   :  { %v4870_v4 = vadd.f32 %v4869_v29, %v4819_v8 }
 0x9a0   :  { %v4871_v3 = vpop.f32.mrf.mxu1 }
 0x9a1   :  { %v4872_v35 = vadd.f32 %v4871_v3, %v4821_v31  ;;  %v4827_v31 = vadd.f32 %v4826_v14, %v4775_v55  ;;  %v5041_v55 = vld [vmem:[#allocation9 + $0x18] sm:$0xff]  ;;  %v5040_v14 = vld [vmem:[#allocation9 + $0x10] sm:$0xff] }
 0x9a2   :  { %v4873_v37 = vpop.f32.mrf.mxu1 }
 0x9a3   :  { %v4874_v58 = vadd.f32 %v4873_v37, %v4823_v33 }
 0x9a4   :  { %v4877_v54 = vpop.f32.mrf.mxu1 }
 0x9a5   :  { %v4878_v36 = vadd.f32 %v4877_v54, %v4827_v31 }
 0x9a6   :  { %v4879_v48 = vpop.f32.mrf.mxu1 }
 0x9a7   :  { %v4880_v33 = vadd.f32 %v4879_v48, %v4829_v62 }
 0x9a8   :  { %v4881_v56 = vpop.f32.mrf.mxu1 }
 0x9aa   :  { %v4882_v53 = vpop.f32.mrf.mxu1 }
 0x9ac   :  { %v4918_v59 = vpop.f32.mrf.mxu0 }
 0x9ad   :  { %v11022_v13 = vadd.f32 %v4918_v59, %v4868_v17 }
 0x9ae   :  { %v4920_v40 = vpop.f32.mrf.mxu0 }
 0x9af   :  { %v11024_v25 = vadd.f32 %v4920_v40, %v4870_v4  ;;  %v5044_v4 = vld [vmem:[#allocation9 + $0x30] sm:$0xff]  ;;  %v5326_v40 = vld [vmem:[#allocation7 + $0x1] ss:$2 sm:$0x3] }
 0x9b0   :  { %v4922_v49 = vpop.f32.mrf.mxu0  ;;  %5074 = vmatpush1.msra.mxu0 %v5044_v4 }
 0x9b1   :  { %v11026_v22 = vadd.f32 %v4922_v49, %v4872_v35  ;;  %v5043_v35 = vld [vmem:[#allocation9 + $0x28] sm:$0xff] }
 0x9b2   :  { %v4924_v15 = vpop.f32.mrf.mxu0  ;;  %5075 = vmatprep.subr.mxu0 %v5043_v35 }
 0x9b3   :  { %v11028_v8 = vadd.f32 %v4924_v15, %v4874_v58  ;;  %5076 = vmatpush1.msra.mxu0 %v5042_v10  ;;  %v5038_v58 = vld [vmem:[#allocation9] sm:$0xff]  ;;  %v5331_v15 = vrot.slane %v5326_v40, %v10347_v20 }
 0x9b4   :  { %v4928_v5 = vpop.f32.mrf.mxu0  ;;  %5077 = vmatprep.subr.mxu0 %v5041_v55 }
 0x9b5   :  { %v4929_v37 = vadd.f32 %v4928_v5, %v4878_v36  ;;  %5078 = vmatpush1.msra.mxu0 %v5040_v14  ;;  %v5335_v36 = vrot.slane %v5326_v40, %v10368_v44  ;;  %v8541_v40 = vld [vmem:[#allocation4 + $0x30] ss:$8 sps:$4 sm:$0xff]  }
 0x9b6   :  { %v4930_v29 = vpop.f32.mrf.mxu0  ;;  %5079 = vmatprep.subr.mxu0 %v5039_v34 }
 0x9b7   :  { %v4931_v3 = vadd.f32 %v4930_v29, %v4880_v33  ;;  %5080 = vmatpush1.msra.mxu0 %v5038_v58 }
 0x9b8   :  { %v4932_v56 = vpop.f32.mrf.mxu0  ;;  %7761 = vmatprep.subr.mxu0 %v10833_v39 }
 0x9b9   :  { %5031 = vmatprep.mubr.f32.mxu1 %v4931_v3 }
 0x9ba   :  { %5032 = vmatmul.mubr.f32.vlgmr.msra.gmra.mxu1 %v4929_v37  ;;  %v4933_v17 = vpop.f32.mrf.mxu0 }
 0x9bb   :  { %5290 = vmatprep.mubr.f32.mxu1 %v11382_v16  ;;  %5251 = vmatpush1.msra.mxu1 %v5044_v4 }
 0x9bc   :  { %5252 = vmatprep.subr.mxu1 %v5043_v35 }
 0x9bd   :  { %5253 = vmatpush1.msra.mxu1 %v5042_v10 }
 0x9be   :  { %5254 = vmatprep.subr.mxu1 %v5041_v55 }
 0x9bf   :  { %5255 = vmatpush1.msra.mxu1 %v5040_v14 }
 0x9c0   :  { %5256 = vmatprep.subr.mxu1 %v5039_v34 }
 0x9c1   :  { %5257 = vmatpush1.msra.mxu1 %v5038_v58 }
 0xa7a   :  { %v7758_v54 = vpop.f32.mrf.mxu1 }
 0xa7c   :  { %v7759_v48 = vpop.f32.mrf.mxu1 }
 0xa7d   :  { %v7760_v53 = vadd.f32 %v7759_v48, %v7758_v54 }
 0xa7f   :  { %v5037_v59 = vmul.f32 0.0078125, %v7760_v53 }
 0xa81   :  { %7508 = vmatmul.mubr.msk.f32.vlgmr.msra.gmra.mxu0 %vm3682_vm2, %v5037_v59 }
 0xa82   :  { %7762 = vmatpush3.msra.mxu0 %v10838_v0 }
 0xa83   :  { %7763 = vmatprep.subr.mxu0 %v10845_v24 }
 0xa84   :  { %7764 = vmatpush3.msra.mxu0 %v10851_v9 }
 0xa85   :  { %7765 = vmatprep.subr.mxu0 %v10857_v19 }
 0xa86   :  { %7766 = vmatpush3.msra.mxu0 %v10863_v30 }
 0xa87   :  { %7767 = vmatprep.subr.mxu0 %v10869_v63 }
 0xa88   :  { %7768 = vmatpush3.msra.mxu0 %v10875_v57 }
 0xa89   :  { %7769 = vmatprep.subr.mxu0 %v10881_v27 }
 0xa8a   :  { %7770 = vmatpush3.msra.mxu0 %v10887_v6 }
 0xa8b   :  { %7771 = vmatprep.subr.mxu0 %v10893_v26 }
 0xa8c   :  { %7772 = vmatpush3.msra.mxu0 %v10899_v18 }
 0xa8d   :  { %7773 = vmatprep.subr.mxu0 %v10905_v32 }
 0xa8e   :  { %7774 = vmatpush3.msra.mxu0 %v10911_v23 }
 0xa8f   :  { %7775 = vmatprep.subr.mxu0 %v10917_v38 }
 0xa90   :  { %7776 = vmatpush3.msra.mxu0 %v10922_v21 }
 0xa91   :  { %7777 = vmatprep.subr.mxu0 %v10927_v60 }
 0xa92   :  { %7778 = vmatpush3.msra.mxu0 %v10933_v2 }
 0xa93   :  { %7779 = vmatprep.subr.mxu0 %v10941_v1 }
 0xa94   :  { %7780 = vmatpush3.msra.mxu0 %v10947_v11 }
 0xa95   :  { %7781 = vmatprep.subr.mxu0 %v10953_v12 }
 0xa96   :  { %7782 = vmatpush3.msra.mxu0 %v10959_v41 }
 0xa97   :  { %7783 = vmatprep.subr.mxu0 %v10965_v51 }
 0xa98   :  { %7784 = vmatpush3.msra.mxu0 %v10971_v50 }
 0xa99   :  { %7785 = vmatprep.subr.mxu0 %v10977_v7 }
 0xa9a   :  { %7786 = vmatpush3.msra.mxu0 %v10983_v43 }
 0xa9b   :  { %7787 = vmatprep.subr.mxu0 %v10989_v61 }
 0xa9c   :  { %7788 = vmatpush3.msra.mxu0 %v10995_v42 }
 0xa9d   :  { %7789 = vmatprep.subr.mxu0 %v11001_v45 }
 0xa9e   :  { %7790 = vmatpush3.msra.mxu0 %v11007_v46 }
 0xa9f   :  { %7791 = vmatprep.subr.mxu0 %v11013_v52 }
 0xaa0   :  { %7792 = vmatpush3.msra.mxu0 %v11018_v47 }
 0xb41   :  { %v5115_v39 = vpop.f32.mrf.mxu0 }
 0xb42   :  { %v5123_v0 = vrot.slane %v5115_v39, %v10347_v20 }
 0xb43   :  { %v5117_v24 = vpop.f32.mrf.mxu0 }
 0xb44   :  { %v5128_v9 = vsub.f32 %v11022_v13, %v5123_v0  ;;  %v5130_v19 = vsub.f32 %v11026_v22, %v5123_v0  ;;  %v5127_v30 = vrot.slane %v5117_v24, %v10347_v20  ;;  %v5309_v13 = vld [vmem:[#allocation7] ss:$2 sm:$0x3] }
 0xb45   :  { %v5314_v22 = vrot.slane %v5309_v13, %v10347_v20  ;;  %v5318_v33 = vrot.slane %v5309_v13, %v10368_v44  ;;  %v8582_v13 = vld [vmem:[#allocation4 + $0x1f4] ss:$8 sps:$4 sm:$0xff]  }
 0xb46   :  { %v5132_v63 = vmul.f32 %v5128_v9, %v5128_v9  ;;  %v5134_v57 = vmul.f32 %v5130_v19, %v5130_v19  ;;  %v5129_v27 = vsub.f32 %v11024_v25, %v5127_v30  ;;  %v5131_v6 = vsub.f32 %v11028_v8, %v5127_v30  ;;  %v8519_v30 = vld [vmem:[%s11397_s2] sm:$0x1f]  }
 0xb48   :  { %v5136_v26 = vadd.f32 %v5134_v57, %v5132_v63  ;;  %v5133_v18 = vmul.f32 %v5129_v27, %v5129_v27  ;;  %v5135_v32 = vmul.f32 %v5131_v6, %v5131_v6  ;;  %v8522_v63 = vld [vmem:[%s11397_s2 + $0x18] sm:$0x1f]  }
 0xb49   :  { %v8532_v57 = vld [vmem:[#allocation4 + $0x170] ss:$8 sps:$4 sm:$0xff]  }
 0xb4a   :  { %v5137_v23 = vrot.slane %v5136_v26, 4  ;;  %v5143_v38 = vadd.f32 %v5135_v32, %v5133_v18  ;;  %v8520_v18 = vld [vmem:[%s11397_s2 + $0x8] sm:$0x1f]   ;;  %v8525_v32 = vld [vmem:[#allocation4 + $0x74] ss:$8 sps:$4 sm:$0xff]  }
 0xb4c   :  { %v5138_v21 = vadd.f32 %v5137_v23, %v5136_v26  ;;  %v5144_v60 = vrot.slane %v5143_v38, 4  ;;  %v8546_v26 = vld [vmem:[#allocation4 + $0x154] ss:$8 sps:$4 sm:$0xff]   ;;  %v8544_v23 = vld [vmem:[#allocation4 + $0x150] ss:$8 sps:$4 sm:$0xff]  }
 0xb4e   :  { %v5139_v2 = vrot.slane %v5138_v21, 2  ;;  %v5145_v1 = vadd.f32 %v5144_v60, %v5143_v38  ;;  %v8552_v38 = vld [vmem:[#allocation4 + $0x144] ss:$8 sps:$4 sm:$0xff]   ;;  %v8558_v60 = vld [vmem:[#allocation4 + $0x134] ss:$8 sps:$4 sm:$0xff]  }
 0xb50   :  { %v5140_v11 = vadd.f32 %v5139_v2, %v5138_v21  ;;  %v5146_v12 = vrot.slane %v5145_v1, 2  ;;  %v8550_v21 = vld [vmem:[#allocation4 + $0x140] ss:$8 sps:$4 sm:$0xff]   ;;  %v8521_v2 = vld [vmem:[%s11397_s2 + $0x10] sm:$0x1f]  }
 0xb52   :  { %v5147_v41 = vadd.f32 %v5146_v12, %v5145_v1  ;;  %v5141_v51 = vrot.slane %v5140_v11, 1  ;;  %v8523_v1 = vld [vmem:[#allocation4 + $0x70] ss:$8 sps:$4 sm:$0xff]  }
 0xb53   :  { %v8556_v12 = vld [vmem:[#allocation4 + $0x130] ss:$8 sps:$4 sm:$0xff]  }
 0xb54   :  { %v5148_v50 = vrot.slane %v5147_v41, 1  ;;  %v5142_v43 = vadd.f32 %v5141_v51, %v5140_v11  ;;  %v8528_v11 = vld [vmem:[#allocation4 + $0x64] ss:$8 sps:$4 sm:$0xff]   ;;  %v8526_v51 = vld [vmem:[#allocation4 + $0x60] ss:$8 sps:$4 sm:$0xff]  }
 0xb56   :  { %v5149_v7 = vadd.f32 %v5148_v50, %v5147_v41  ;;  %v8564_v41 = vld [vmem:[#allocation4 + $0x124] ss:$8 sps:$4 sm:$0xff]   ;;  %v8562_v50 = vld [vmem:[#allocation4 + $0x120] ss:$8 sps:$4 sm:$0xff]  }
 0xb58   :  { %5214 = vmatprep.mubr.f32.mxu0 %v5149_v7  ;;  %v8570_v7 = vld [vmem:[#allocation4 + $0x114] ss:$8 sps:$4 sm:$0xff]  }
 0xb59   :  { %5215 = vmatmul.mubr.f32.vlgmr.msra.gmra.mxu0 %v5142_v43  ;;  %v8529_v43 = vld [vmem:[#allocation4 + $0x50] ss:$8 sps:$4 sm:$0xff]  }
 0xb5a   :  { %5562 = vmatprep.mubr.bf16.mxu0 %v11394_v28 }
 0xc19   :  { %v7793_v61 = vpop.f32.mrf.mxu0 }
 0xc1b   :  { %v7794_v42 = vpop.f32.mrf.mxu0 }
 0xc1c   :  { %v7795_v45 = vadd.f32 %v7794_v42, %v7793_v61  ;;  %v8537_v61 = vld [vmem:[#allocation4 + $0x44] ss:$8 sps:$4 sm:$0xff]   ;;  %v8568_v42 = vld [vmem:[#allocation4 + $0x110] ss:$8 sps:$4 sm:$0xff]  }
 0xc1e   :  { %v5220_v46 = vmul.f32 0.0078125, %v7795_v45  ;;  %v8576_v45 = vld [vmem:[#allocation4 + $0x104] ss:$8 sps:$4 sm:$0xff]  }
 0xc20   :  { %v5221_v52 = vadd.f32 1e-05, %v5220_v46  ;;  %v8535_v46 = vld [vmem:[#allocation4 + $0x40] ss:$8 sps:$4 sm:$0xff]  }
 0xc22   :  { %8717 = vrsqrt.f32 %v5221_v52  ;;  %v8543_v52 = vld [vmem:[#allocation4 + $0x34] ss:$8 sps:$4 sm:$0xff]  }
 0xc2f   :  { %v8718_v47 = vpop.eup %8717 }
 0xc30   :  { %7509 = vmatmul.mubr.msk.f32.vlgmr.msra.gmra.mxu1 %vm3682_vm2, %v8718_v47  ;;  %v8574_v47 = vld [vmem:[#allocation4 + $0x100] ss:$8 sps:$4 sm:$0xff]  }
 0xc31   :  { %5394 = vmatprep.mubr.bf16.mxu1 %v11394_v28 }
 0xcf0   :  { %v5292_v25 = vpop.f32.mrf.mxu1 }
 0xcf1   :  { %v5300_v49 = vrot.slane %v5292_v25, %v10347_v20  ;;  %v8549_v25 = vld [vmem:[#allocation4 + $0x24] ss:$8 sps:$4 sm:$0xff]  }
 0xcf2   :  { %v5294_v62 = vpop.f32.mrf.mxu1 }
 0xcf3   :  { %v5305_v8 = vmul.f32 %v5300_v49, %v5128_v9  ;;  %v5307_v31 = vmul.f32 %v5300_v49, %v5130_v19  ;;  %v5304_v5 = vrot.slane %v5294_v62, %v10347_v20  ;;  %v8534_v9 = vld [vmem:[#allocation4 + $0x174] ss:$8 sps:$4 sm:$0xff]   ;;  %v8580_v49 = vld [vmem:[#allocation4 + $0x1f0] ss:$8 sps:$4 sm:$0xff]  }
 0xcf4   :  { %v8555_v62 = vld [vmem:[#allocation4 + $0x14] ss:$8 sps:$4 sm:$0xff]  }
 0xcf5   :  { %v5321_v29 = vmul.f32 %v5314_v22, %v5305_v8  ;;  %v5323_v3 = vmul.f32 %v5314_v22, %v5307_v31  ;;  %v5306_v37 = vmul.f32 %v5304_v5, %v5129_v27  ;;  %v5308_v56 = vmul.f32 %v5304_v5, %v5131_v6  ;;  %v8540_v27 = vld [vmem:[#allocation4 + $0x164] ss:$8 sps:$4 sm:$0xff]   ;;  %v8538_v6 = vld [vmem:[#allocation4 + $0x160] ss:$8 sps:$4 sm:$0xff]   ;;  %v8594_v31 = vld [vmem:[#allocation4 + $0x1d4] ss:$8 sps:$4 sm:$0xff]  }
 0xcf6   :  { %v8588_v22 = vld [vmem:[#allocation4 + $0x1e4] ss:$8 sps:$4 sm:$0xff]   ;;  %v8586_v8 = vld [vmem:[#allocation4 + $0x1e0] ss:$8 sps:$4 sm:$0xff]   ;;  %v8553_v5 = vld [vmem:[#allocation4 + $0x10] ss:$8 sps:$4 sm:$0xff]  }
 0xcf7   :  { %v5338_v17 = vadd.f32 %v5331_v15, %v5321_v29  ;;  %v5340_v4 = vadd.f32 %v5331_v15, %v5323_v3  ;;  %v5322_v35 = vmul.f32 %v5318_v33, %v5306_v37  ;;  %v5324_v10 = vmul.f32 %v5318_v33, %v5308_v56  ;;  %v8547_v15 = vld [vmem:[#allocation4 + $0x20] ss:$8 sps:$4 sm:$0xff]   ;;  %v8561_v33 = vld [vmem:[#allocation4 + $0x4] ss:$8 sps:$4 sm:$0xff]   ;;  %v8567_v37 = vld [vmem:[#allocation4 + $0xf4] ss:$8 sps:$4 sm:$0xff]  }
 0xcf8   :  { %v8600_v29 = vld [vmem:[#allocation4 + $0x1c4] ss:$8 sps:$4 sm:$0xff]   ;;  %v8559_v3 = vld [vmem:[#allocation4] ss:$8 sps:$4 sm:$0xff]  }
 0xcf9   :  { %v5342_v55 = vmul.f32 0.2, %v5338_v17  ;;  %v5344_v14 = vmul.f32 0.2, %v5340_v4  ;;  %v5339_v34 = vadd.f32 %v5335_v36, %v5322_v35  ;;  %v5341_v58 = vadd.f32 %v5335_v36, %v5324_v10  ;;  %v8592_v36 = vld [vmem:[#allocation4 + $0x1d0] ss:$8 sps:$4 sm:$0xff]  }
 0xcfa   :  { %v8598_v56 = vld [vmem:[#allocation4 + $0x1c0] ss:$8 sps:$4 sm:$0xff]   ;;  %v8579_v10 = vld [vmem:[#allocation4 + $0xd4] ss:$8 sps:$4 sm:$0xff]  }
 0xcfb   :  { %v5343_v54 = vmul.f32 0.2, %v5339_v34  ;;  %v5345_v48 = vmul.f32 0.2, %v5341_v58  ;;  %v5346_v53 = vmax.f32 %v5338_v17, %v5342_v55  ;;  %v5348_v59 = vmax.f32 %v5340_v4, %v5344_v14  ;;  %v8565_v17 = vld [vmem:[#allocation4 + $0xf0] ss:$8 sps:$4 sm:$0xff]  }
 0xcfc   :  { %v8573_v4 = vld [vmem:[#allocation4 + $0xe4] ss:$8 sps:$4 sm:$0xff]   ;;  %v8571_v35 = vld [vmem:[#allocation4 + $0xe0] ss:$8 sps:$4 sm:$0xff]   ;;  %v8577_v55 = vld [vmem:[#allocation4 + $0xd0] ss:$8 sps:$4 sm:$0xff]  }
 0xcfd   :  { %v5347_v39 = vmax.f32 %v5339_v34, %v5343_v54  ;;  %v5349_v0 = vmax.f32 %v5341_v58, %v5345_v48  ;;  %v5350_v19 = vpack.c.bf16 %v5348_v59, %v5346_v53  ;;  %v8585_v14 = vld [vmem:[#allocation4 + $0xc4] ss:$8 sps:$4 sm:$0xff]   ;;  %v8583_v34 = vld [vmem:[#allocation4 + $0xc0] ss:$8 sps:$4 sm:$0xff]   ;;  %v8591_v58 = vld [vmem:[#allocation4 + $0xb4] ss:$8 sps:$4 sm:$0xff]  }
 0xcfe   :  { %v8589_v54 = vld [vmem:[#allocation4 + $0xb0] ss:$8 sps:$4 sm:$0xff]   ;;  %v8597_v48 = vld [vmem:[#allocation4 + $0xa4] ss:$8 sps:$4 sm:$0xff]   ;;  %v8595_v59 = vld [vmem:[#allocation4 + $0xa0] ss:$8 sps:$4 sm:$0xff]  }
 0xcff   :  { %v5351_v24 = vpack.c.bf16 %v5349_v0, %v5347_v39  ;;  %v8604_v53 = vld [vmem:[#allocation4 + $0x1b0] ss:$8 sps:$4 sm:$0xff]   ;;  %v8606_v39 = vld [vmem:[#allocation4 + $0x1b4] ss:$8 sps:$4 sm:$0xff]  }
 0xd00   :  { %v8603_v0 = vld [vmem:[#allocation4 + $0x94] ss:$8 sps:$4 sm:$0xff]  }
 0xd01   :  { %5376 = vmatprep.subr.bf16.mxu1 %v5351_v24  ;;  %5544 = vmatprep.subr.bf16.mxu0 %v5351_v24 }
 0xd02   :  { %5377 = vmatpush1.bf16.msra.mxu1 %v5350_v19  ;;  %5545 = vmatpush1.bf16.msra.mxu0 %v5350_v19 }
 0xd03   :  { %5432 = vmatprep.subr.bf16.mxu1 %v5351_v24  ;;  %6386 = vmatprep.subr.bf16.mxu0 %v8534_v9  ;;  %v8601_v9 = vld [vmem:[#allocation4 + $0x90] ss:$8 sps:$4 sm:$0xff]  }
 0xd05   :  { %7511 = vmatmul.mubr.msk.bf16.vlgmr.msra.gmra.mxu1 %vm3330_vm1, %v8519_v30  ;;  %7523 = vmatmul.mubr.msk.bf16.vlgmr.msra.gmra.mxu0 %vm3330_vm1, %v8522_v63  ;;  %v8609_v30 = vld [vmem:[#allocation4 + $0x84] ss:$8 sps:$4 sm:$0xff]   ;;  %v8615_v63 = vld [vmem:[#allocation4 + $0x194] ss:$8 sps:$4 sm:$0xff]  }
 0xd06   :  { %5433 = vmatpush1.bf16.msra.mxu1 %v5350_v19  ;;  %5450 = vmatprep.mubr.bf16.mxu1 %v11394_v28 }
 0xd07   :  { %5488 = vmatprep.subr.bf16.mxu1 %v5351_v24  ;;  %6387 = vmatpush1.bf16.msra.mxu0 %v8532_v57  ;;  %v8612_v24 = vld [vmem:[#allocation4 + $0x1a4] ss:$8 sps:$4 sm:$0xff]   ;;  %v8607_v57 = vld [vmem:[#allocation4 + $0x80] ss:$8 sps:$4 sm:$0xff]  }
 0xd08   :  { %6388 = vmatprep.subr.bf16.mxu0 %v8540_v27  ;;  %v8613_v27 = vld [vmem:[#allocation4 + $0x190] ss:$8 sps:$4 sm:$0xff]  }
 0xd0b   :  { %6389 = vmatpush1.bf16.msra.mxu0 %v8538_v6  ;;  %v8618_v6 = vld [vmem:[#allocation4 + $0x274] ss:$8 sps:$4 sm:$0xff]  }
 0xd0c   :  { %6390 = vmatprep.subr.bf16.mxu0 %v8546_v26  ;;  %v8621_v26 = vld [vmem:[#allocation4 + $0x184] ss:$8 sps:$4 sm:$0xff]  }
 0xd0d   :  { %7515 = vmatmul.mubr.msk.bf16.vlgmr.msra.gmra.mxu1 %vm3330_vm1, %v8520_v18  ;;  %v8619_v18 = vld [vmem:[#allocation4 + $0x180] ss:$8 sps:$4 sm:$0xff]  }
 0xd0e   :  { %5489 = vmatpush1.bf16.msra.mxu1 %v5350_v19  ;;  %5506 = vmatprep.mubr.bf16.mxu1 %v11394_v28  ;;  %v8531_v28 = vld [vmem:[#allocation4 + $0x54] ss:$8 sps:$4 sm:$0xff]   ;;  %v8610_v19 = vld [vmem:[#allocation4 + $0x1a0] ss:$8 sps:$4 sm:$0xff]  }
 0xd0f   :  { %6343 = vmatprep.subr.bf16.mxu1 %v8525_v32  ;;  %6391 = vmatpush1.bf16.msra.mxu0 %v8544_v23  ;;  %v8630_v32 = vld [vmem:[#allocation4 + $0x374] ss:$8 sps:$4 sm:$0xff]  }
 0xd10   :  { %6392 = vmatprep.subr.bf16.mxu0 %v8552_v38 }
 0xd13   :  { %6393 = vmatpush1.bf16.msra.mxu0 %v8550_v21 }
 0xd14   :  { %6394 = vmatprep.subr.bf16.mxu0 %v8558_v60 }
 0xd15   :  { %7519 = vmatmul.mubr.msk.bf16.vlgmr.msra.gmra.mxu1 %vm3330_vm1, %v8521_v2 }
 0xd16   :  { %6344 = vmatpush1.bf16.msra.mxu1 %v8523_v1 }
 0xd17   :  { %6345 = vmatprep.subr.bf16.mxu1 %v8528_v11  ;;  %6395 = vmatpush1.bf16.msra.mxu0 %v8556_v12  ;;  %v8616_v12 = vld [vmem:[#allocation4 + $0x270] ss:$8 sps:$4 sm:$0xff]  }
 0xd18   :  { %6396 = vmatprep.subr.bf16.mxu0 %v8564_v41 }
 0xd1a   :  { %6346 = vmatpush1.bf16.msra.mxu1 %v8526_v51 }
 0xd1b   :  { %6347 = vmatprep.subr.bf16.mxu1 %v8531_v28  ;;  %6397 = vmatpush1.bf16.msra.mxu0 %v8562_v50  ;;  %v8624_v28 = vld [vmem:[#allocation4 + $0x264] ss:$8 sps:$4 sm:$0xff]  }
 0xd1c   :  { %6398 = vmatprep.subr.bf16.mxu0 %v8570_v7 }
 0xd1e   :  { %6348 = vmatpush1.bf16.msra.mxu1 %v8529_v43  ;;  %v8622_v43 = vld [vmem:[#allocation4 + $0x260] ss:$8 sps:$4 sm:$0xff]  }
 0xd1f   :  { %6349 = vmatprep.subr.bf16.mxu1 %v8537_v61  ;;  %6399 = vmatpush1.bf16.msra.mxu0 %v8568_v42  ;;  %v8627_v42 = vld [vmem:[#allocation4 + $0x254] ss:$8 sps:$4 sm:$0xff]  }
 0xd20   :  { %6400 = vmatprep.subr.bf16.mxu0 %v8576_v45 }
 0xd22   :  { %6350 = vmatpush1.bf16.msra.mxu1 %v8535_v46 }
 0xd23   :  { %6351 = vmatprep.subr.bf16.mxu1 %v8543_v52  ;;  %6401 = vmatpush1.bf16.msra.mxu0 %v8574_v47  ;;  %v8625_v47 = vld [vmem:[#allocation4 + $0x250] ss:$8 sps:$4 sm:$0xff]  }
 0xd24   :  { %6402 = vmatprep.subr.bf16.mxu0 %v8582_v13  ;;  %v8628_v13 = vld [vmem:[#allocation4 + $0x370] ss:$8 sps:$4 sm:$0xff]  }
 0xd26   :  { %6352 = vmatpush1.bf16.msra.mxu1 %v8541_v40 }
 0xd27   :  { %6353 = vmatprep.subr.bf16.mxu1 %v8549_v25  ;;  %6403 = vmatpush2.bf16.msra.mxu0 %v8580_v49  ;;  %v8633_v25 = vld [vmem:[#allocation4 + $0x244] ss:$8 sps:$4 sm:$0xff]  }
 0xd28   :  { %6404 = vmatprep.subr.bf16.mxu0 %v8588_v22  ;;  %v8636_v49 = vld [vmem:[#allocation4 + $0x364] ss:$8 sps:$4 sm:$0xff]  }
 0xd2a   :  { %6354 = vmatpush1.bf16.msra.mxu1 %v8547_v15 }
 0xd2b   :  { %6355 = vmatprep.subr.bf16.mxu1 %v8555_v62  ;;  %6405 = vmatpush2.bf16.msra.mxu0 %v8586_v8  ;;  %v8631_v8 = vld [vmem:[#allocation4 + $0x240] ss:$8 sps:$4 sm:$0xff]  }
 0xd2c   :  { %6406 = vmatprep.subr.bf16.mxu0 %v8594_v31  ;;  %v8634_v31 = vld [vmem:[#allocation4 + $0x360] ss:$8 sps:$4 sm:$0xff]  }
 0xd2e   :  { %6356 = vmatpush1.bf16.msra.mxu1 %v8553_v5  ;;  %v8639_v5 = vld [vmem:[#allocation4 + $0x234] ss:$8 sps:$4 sm:$0xff]  }
 0xd2f   :  { %6357 = vmatprep.subr.bf16.mxu1 %v8561_v33  ;;  %6407 = vmatpush2.bf16.msra.mxu0 %v8592_v36  ;;  %v8642_v33 = vld [vmem:[#allocation4 + $0x354] ss:$8 sps:$4 sm:$0xff]  }
 0xd30   :  { %6408 = vmatprep.subr.bf16.mxu0 %v8600_v29 }
 0xd32   :  { %6358 = vmatpush1.bf16.msra.mxu1 %v8559_v3  ;;  %v8637_v3 = vld [vmem:[#allocation4 + $0x230] ss:$8 sps:$4 sm:$0xff]  }
 0xd33   :  { %6359 = vmatprep.subr.bf16.mxu1 %v8567_v37  ;;  %6409 = vmatpush2.bf16.msra.mxu0 %v8598_v56  ;;  %v8640_v37 = vld [vmem:[#allocation4 + $0x350] ss:$8 sps:$4 sm:$0xff]  }
 0xd34   :  { %6410 = vmatprep.subr.bf16.mxu0 %v8606_v39  ;;  %v8663_v39 = vld [vmem:[#allocation4 + $0x2f4] ss:$8 sps:$4 sm:$0xff]  }
 0xd36   :  { %6360 = vmatpush2.bf16.msra.mxu1 %v8565_v17  ;;  %v8645_v17 = vld [vmem:[#allocation4 + $0x224] ss:$8 sps:$4 sm:$0xff]  }
 0xd37   :  { %6361 = vmatprep.subr.bf16.mxu1 %v8573_v4  ;;  %6411 = vmatpush2.bf16.msra.mxu0 %v8604_v53  ;;  %v8648_v4 = vld [vmem:[#allocation4 + $0x344] ss:$8 sps:$4 sm:$0xff]   ;;  %v8655_v53 = vld [vmem:[#allocation4 + $0x200] ss:$8 sps:$4 sm:$0xff]  }
 0xd38   :  { %6412 = vmatprep.subr.bf16.mxu0 %v8612_v24  ;;  %v8661_v24 = vld [vmem:[#allocation4 + $0x2f0] ss:$8 sps:$4 sm:$0xff]  }
 0xd3a   :  { %6362 = vmatpush2.bf16.msra.mxu1 %v8571_v35  ;;  %v8643_v35 = vld [vmem:[#allocation4 + $0x220] ss:$8 sps:$4 sm:$0xff]  }
 0xd3b   :  { %6363 = vmatprep.subr.bf16.mxu1 %v8579_v10  ;;  %6413 = vmatpush2.bf16.msra.mxu0 %v8610_v19  ;;  %v8646_v10 = vld [vmem:[#allocation4 + $0x340] ss:$8 sps:$4 sm:$0xff]   ;;  %v8669_v19 = vld [vmem:[#allocation4 + $0x2e4] ss:$8 sps:$4 sm:$0xff]  }
 0xd3c   :  { %6414 = vmatprep.subr.bf16.mxu0 %v8615_v63  ;;  %v8667_v63 = vld [vmem:[#allocation4 + $0x2e0] ss:$8 sps:$4 sm:$0xff]  }
 0xd3e   :  { %6364 = vmatpush2.bf16.msra.mxu1 %v8577_v55  ;;  %v8651_v55 = vld [vmem:[#allocation4 + $0x214] ss:$8 sps:$4 sm:$0xff]  }
 0xd3f   :  { %6365 = vmatprep.subr.bf16.mxu1 %v8585_v14  ;;  %6415 = vmatpush2.bf16.msra.mxu0 %v8613_v27  ;;  %v8654_v14 = vld [vmem:[#allocation4 + $0x334] ss:$8 sps:$4 sm:$0xff]  }
 0xd40   :  { %6416 = vmatprep.subr.bf16.mxu0 %v8621_v26  ;;  %v8675_v27 = vld [vmem:[#allocation4 + $0x2d4] ss:$8 sps:$4 sm:$0xff]   ;;  %v8673_v26 = vld [vmem:[#allocation4 + $0x2d0] ss:$8 sps:$4 sm:$0xff]  }
 0xd42   :  { %6366 = vmatpush2.bf16.msra.mxu1 %v8583_v34  ;;  %v8649_v34 = vld [vmem:[#allocation4 + $0x210] ss:$8 sps:$4 sm:$0xff]  }
 0xd43   :  { %6367 = vmatprep.subr.bf16.mxu1 %v8591_v58  ;;  %6417 = vmatpush2.bf16.msra.mxu0 %v8619_v18  ;;  %v8652_v58 = vld [vmem:[#allocation4 + $0x330] ss:$8 sps:$4 sm:$0xff]  }
 0xd44   :  { %6472 = vmatprep.subr.bf16.mxu0 %v8630_v32  ;;  %v8676_v18 = vld [vmem:[#allocation4 + $0x3f0] ss:$8 sps:$4 sm:$0xff]   ;;  %v8681_v32 = vld [vmem:[#allocation4 + $0x2c4] ss:$8 sps:$4 sm:$0xff]  }
 0xd46   :  { %6368 = vmatpush2.bf16.msra.mxu1 %v8589_v54  ;;  %v8657_v54 = vld [vmem:[#allocation4 + $0x204] ss:$8 sps:$4 sm:$0xff]  }
 0xd47   :  { %6369 = vmatprep.subr.bf16.mxu1 %v8597_v48  ;;  %v8660_v48 = vld [vmem:[#allocation4 + $0x324] ss:$8 sps:$4 sm:$0xff]  }
 0xd4a   :  { %6370 = vmatpush2.bf16.msra.mxu1 %v8595_v59  ;;  %v8658_v59 = vld [vmem:[#allocation4 + $0x320] ss:$8 sps:$4 sm:$0xff]  }
 0xd4b   :  { %6371 = vmatprep.subr.bf16.mxu1 %v8603_v0  ;;  %v8666_v0 = vld [vmem:[#allocation4 + $0x314] ss:$8 sps:$4 sm:$0xff]  }
 0xd4e   :  { %6372 = vmatpush2.bf16.msra.mxu1 %v8601_v9  ;;  %v8664_v9 = vld [vmem:[#allocation4 + $0x310] ss:$8 sps:$4 sm:$0xff]  }
 0xd4f   :  { %6373 = vmatprep.subr.bf16.mxu1 %v8609_v30  ;;  %v8672_v30 = vld [vmem:[#allocation4 + $0x304] ss:$8 sps:$4 sm:$0xff]  }
 0xd52   :  { %6374 = vmatpush2.bf16.msra.mxu1 %v8607_v57  ;;  %v8670_v57 = vld [vmem:[#allocation4 + $0x300] ss:$8 sps:$4 sm:$0xff]  }
 0xd53   :  { %6429 = vmatprep.subr.bf16.mxu1 %v8618_v6  ;;  %v8678_v6 = vld [vmem:[#allocation4 + $0x3f4] ss:$8 sps:$4 sm:$0xff]  }
 0xdc5   :  { %v5396_v23 = vpop.f32.mrf.mxu1  ;;  %v11097_v21 = vpop.f32.mrf.mxu0 }
 0xdc7   :  { %v5398_v38 = vpop.f32.mrf.mxu1  ;;  %v5566_v1 = vpop.f32.mrf.mxu0 }
 0xdc9   :  { %v5400_v60 = vpop.f32.mrf.mxu1  ;;  %v11099_v7 = vpop.f32.mrf.mxu0 }
 0xdca   :  { %v5405_v41 = vpack.c.bf16 %v5400_v60, %v5396_v23  ;;  %v8684_v23 = vld [vmem:[#allocation4 + $0x3e4] ss:$8 sps:$4 sm:$0xff]   ;;  %v8682_v60 = vld [vmem:[#allocation4 + $0x3e0] ss:$8 sps:$4 sm:$0xff]  }
 0xdcb   :  { %v5402_v2 = vpop.f32.mrf.mxu1  ;;  %v5570_v46 = vpop.f32.mrf.mxu0 }
 0xdcc   :  { %v5406_v11 = vpack.c.bf16 %v5402_v2, %v5398_v38  ;;  %v5574_v15 = vpack.c.bf16 %v5570_v46, %v5566_v1  ;;  %v8679_v38 = vld [vmem:[#allocation4 + $0x2c0] ss:$8 sps:$4 sm:$0xff]   ;;  %v8687_v2 = vld [vmem:[#allocation4 + $0x2b4] ss:$8 sps:$4 sm:$0xff]   ;;  %v8705_v46 = vld [vmem:[#allocation4 + $0x284] ss:$8 sps:$4 sm:$0xff]  }
 0xdcd   :  { %v5452_v51 = vpop.f32.mrf.mxu1  ;;  %v8690_v1 = vld [vmem:[#allocation4 + $0x3d4] ss:$8 sps:$4 sm:$0xff]  }
 0xdce   :  { %6375 = vmatprep.mubr.bf16.mxu1 %v5406_v11  ;;  %v8685_v11 = vld [vmem:[#allocation4 + $0x2b0] ss:$8 sps:$4 sm:$0xff]  }
 0xdcf   :  { %v5454_v50 = vpop.f32.mrf.mxu1  ;;  %6376 = vmatmul.mubr.bf16.vlgmr.msra.gmra.mxu1 %v5405_v41  ;;  %v8693_v41 = vld [vmem:[#allocation4 + $0x2a4] ss:$8 sps:$4 sm:$0xff]  }
 0xdd0   :  { %6430 = vmatpush1.bf16.msra.mxu1 %v8616_v12  ;;  %v8688_v12 = vld [vmem:[#allocation4 + $0x3d0] ss:$8 sps:$4 sm:$0xff]  }
 0xdd1   :  { %v5456_v61 = vpop.f32.mrf.mxu1  ;;  %6431 = vmatprep.subr.bf16.mxu1 %v8624_v28  ;;  %v8691_v28 = vld [vmem:[#allocation4 + $0x2a0] ss:$8 sps:$4 sm:$0xff]  }
 0xdd2   :  { %v5461_v40 = vpack.c.bf16 %v5456_v61, %v5452_v51  ;;  %v8696_v51 = vld [vmem:[#allocation4 + $0x3c4] ss:$8 sps:$4 sm:$0xff]   ;;  %v8702_v61 = vld [vmem:[#allocation4 + $0x3b4] ss:$8 sps:$4 sm:$0xff]  }
 0xdd3   :  { %v5458_v45 = vpop.f32.mrf.mxu1 }
 0xdd4   :  { %v5462_v52 = vpack.c.bf16 %v5458_v45, %v5454_v50  ;;  %6432 = vmatpush1.bf16.msra.mxu1 %v8622_v43  ;;  %v8694_v50 = vld [vmem:[#allocation4 + $0x3c0] ss:$8 sps:$4 sm:$0xff]   ;;  %v8699_v43 = vld [vmem:[#allocation4 + $0x294] ss:$8 sps:$4 sm:$0xff]   ;;  %v8700_v45 = vld [vmem:[#allocation4 + $0x3b0] ss:$8 sps:$4 sm:$0xff]  }
 0xdd5   :  { %6433 = vmatprep.subr.bf16.mxu1 %v8627_v42  ;;  %v11101_v22 = vpop.f32.mrf.mxu1  ;;  %v8697_v42 = vld [vmem:[#allocation4 + $0x290] ss:$8 sps:$4 sm:$0xff]  }
 0xdd6   :  { %6418 = vmatprep.mubr.bf16.mxu0 %v5462_v52  ;;  %v8708_v52 = vld [vmem:[#allocation4 + $0x3a4] ss:$8 sps:$4 sm:$0xff]  }
 0xdd7   :  { %6419 = vmatmul.mubr.bf16.vlgmr.msra.gmra.mxu0 %v5461_v40  ;;  %v5510_v62 = vpop.f32.mrf.mxu1  ;;  %v8711_v40 = vld [vmem:[#allocation4 + $0x394] ss:$8 sps:$4 sm:$0xff]  }
 0xdd8   :  { %6434 = vmatpush1.bf16.msra.mxu1 %v8625_v47  ;;  %6473 = vmatpush1.bf16.msra.mxu0 %v8628_v13  ;;  %v8703_v47 = vld [vmem:[#allocation4 + $0x280] ss:$8 sps:$4 sm:$0xff]  }
 0xdd9   :  { %6435 = vmatprep.subr.bf16.mxu1 %v8633_v25  ;;  %6474 = vmatprep.subr.bf16.mxu0 %v8636_v49  ;;  %v11103_v36 = vpop.f32.mrf.mxu1  ;;  %v8706_v13 = vld [vmem:[#allocation4 + $0x3a0] ss:$8 sps:$4 sm:$0xff]   ;;  %v8709_v49 = vld [vmem:[#allocation4 + $0x390] ss:$8 sps:$4 sm:$0xff]  }
 0xdda   :  { %6504 = vmatprep.mubr.bf16.mxu0 %v5574_v15  ;;  %v5517_v25 = vpack.c.bf16 %v11103_v36, %v11101_v22  ;;  %v8714_v15 = vld [vmem:[#allocation4 + $0x384] ss:$8 sps:$4 sm:$0xff]   ;;  %v11113_v22 = vld [vmem:[%s11371_s16 + $0xf8] sm:$0xff] }
 0xddb   :  { %v5514_v29 = vpop.f32.mrf.mxu1  ;;  %v11147_v36 = vld [vmem:[%s11371_s16 + $0xe0] sm:$0xff] }
 0xddc   :  { %6436 = vmatpush1.bf16.msra.mxu1 %v8631_v8  ;;  %6475 = vmatpush1.bf16.msra.mxu0 %v8634_v31  ;;  %v5518_v56 = vpack.c.bf16 %v5514_v29, %v5510_v62  ;;  %v8712_v62 = vld [vmem:[#allocation4 + $0x380] ss:$8 sps:$4 sm:$0xff]   ;;  %v5573_v8 = vpack.c.bf16 %v11099_v7, %v11097_v21  ;;  %v11118_v31 = vld [vmem:[%s11371_s16 + $0x78] sm:$0xff]  ;;  %v11129_v21 = vld [vmem:[%s11371_s16 + $0x70] sm:$0xff] }
 0xddd   :  { %6437 = vmatprep.subr.bf16.mxu1 %v8639_v5  ;;  %6476 = vmatprep.subr.bf16.mxu0 %v8642_v33  ;;  %v11123_v5 = vld [vmem:[%s11371_s16 + $0xf0] sm:$0xff]  ;;  %v11135_v7 = vld [vmem:[%s11371_s16 + $0xe8] sm:$0xff]  ;;  %v11153_v29 = vld [vmem:[%s11371_s16 + $0x60] sm:$0xff] }
 0xdde   :  { %6461 = vmatprep.mubr.bf16.mxu1 %v5518_v56  ;;  %v11141_v33 = vld [vmem:[%s11371_s16 + $0x68] sm:$0xff]  ;;  %v11171_v56 = vld [vmem:[%s11371_s16 + $0xd0] sm:$0xff] }
 0xde0   :  { %6438 = vmatpush1.bf16.msra.mxu1 %v8637_v3  ;;  %6477 = vmatpush1.bf16.msra.mxu0 %v8640_v37  ;;  %v11159_v3 = vld [vmem:[%s11371_s16 + $0xd8] sm:$0xff] }
 0xde1   :  { %6439 = vmatprep.subr.bf16.mxu1 %v8645_v17  ;;  %6478 = vmatprep.subr.bf16.mxu0 %v8648_v4  ;;  %v11165_v37 = vld [vmem:[%s11371_s16 + $0x58] sm:$0xff]  ;;  %v11177_v17 = vld [vmem:[%s11371_s16 + $0x50] sm:$0xff]  ;;  %v11183_v4 = vld [vmem:[%s11371_s16 + $0xc8] sm:$0xff] }
 0xde4   :  { %6440 = vmatpush1.bf16.msra.mxu1 %v8643_v35  ;;  %6479 = vmatpush1.bf16.msra.mxu0 %v8646_v10  ;;  %v11189_v35 = vld [vmem:[%s11371_s16 + $0x48] sm:$0xff]  ;;  %v11197_v10 = vld [vmem:[%s11371_s16 + $0xc0] sm:$0xff] }
 0xde5   :  { %6441 = vmatprep.subr.bf16.mxu1 %v8651_v55  ;;  %6480 = vmatprep.subr.bf16.mxu0 %v8654_v14  ;;  %v11203_v55 = vld [vmem:[%s11371_s16 + $0x40] sm:$0xff]  ;;  %v11209_v14 = vld [vmem:[%s11371_s16 + $0xb8] sm:$0xff] }
 0xde8   :  { %6442 = vmatpush1.bf16.msra.mxu1 %v8649_v34  ;;  %6481 = vmatpush1.bf16.msra.mxu0 %v8652_v58  ;;  %v11215_v34 = vld [vmem:[%s11371_s16 + $0x38] sm:$0xff]  ;;  %v11221_v58 = vld [vmem:[%s11371_s16 + $0xb0] sm:$0xff] }
 0xde9   :  { %6443 = vmatprep.subr.bf16.mxu1 %v8657_v54  ;;  %6482 = vmatprep.subr.bf16.mxu0 %v8660_v48  ;;  %v11227_v54 = vld [vmem:[%s11371_s16 + $0x30] sm:$0xff]  ;;  %v11233_v48 = vld [vmem:[%s11371_s16 + $0xa8] sm:$0xff] }
 0xdec   :  { %6444 = vmatpush1.bf16.msra.mxu1 %v8655_v53  ;;  %6483 = vmatpush1.bf16.msra.mxu0 %v8658_v59  ;;  %v11239_v53 = vld [vmem:[%s11371_s16 + $0x28] sm:$0xff]  ;;  %v11245_v59 = vld [vmem:[%s11371_s16 + $0xa0] sm:$0xff] }
 0xded   :  { %6445 = vmatprep.subr.bf16.mxu1 %v8663_v39  ;;  %6484 = vmatprep.subr.bf16.mxu0 %v8666_v0  ;;  %v11251_v39 = vld [vmem:[%s11371_s16 + $0x20] sm:$0xff]  ;;  %v11257_v0 = vld [vmem:[%s11371_s16 + $0x98] sm:$0xff] }
 0xdf0   :  { %6446 = vmatpush2.bf16.msra.mxu1 %v8661_v24  ;;  %6485 = vmatpush1.bf16.msra.mxu0 %v8664_v9  ;;  %v11263_v24 = vld [vmem:[%s11371_s16 + $0x18] sm:$0xff]  ;;  %v11269_v9 = vld [vmem:[%s11371_s16 + $0x90] sm:$0xff] }
 0xdf1   :  { %6447 = vmatprep.subr.bf16.mxu1 %v8669_v19  ;;  %6486 = vmatprep.subr.bf16.mxu0 %v8672_v30  ;;  %v11275_v19 = vld [vmem:[%s11371_s16 + $0x10] sm:$0xff]  ;;  %v11281_v30 = vld [vmem:[%s11371_s16 + $0x88] sm:$0xff] }
 0xdf4   :  { %6448 = vmatpush2.bf16.msra.mxu1 %v8667_v63  ;;  %6487 = vmatpush1.bf16.msra.mxu0 %v8670_v57  ;;  %v11287_v63 = vld [vmem:[%s11371_s16 + $0x8] sm:$0xff]  ;;  %v11293_v57 = vld [vmem:[%s11371_s16 + $0x80] sm:$0xff] }
 0xdf5   :  { %6449 = vmatprep.subr.bf16.mxu1 %v8675_v27  ;;  %6488 = vmatprep.subr.bf16.mxu0 %v8678_v6  ;;  %v11298_v27 = vld [vmem:[%s11371_s16] sm:$0xff] }
 0xdf6   :  { %v6633_v6 = vld [vmem:[#allocation12 + $0x78] sm:$0xff] }
 0xdf8   :  { %6450 = vmatpush2.bf16.msra.mxu1 %v8673_v26  ;;  %6489 = vmatpush2.bf16.msra.mxu0 %v8676_v18  ;;  %v6632_v26 = vld [vmem:[#allocation12 + $0x70] sm:$0xff]  ;;  %v6631_v18 = vld [vmem:[#allocation12 + $0x68] sm:$0xff] }
 0xdf9   :  { %6451 = vmatprep.subr.bf16.mxu1 %v8681_v32  ;;  %6490 = vmatprep.subr.bf16.mxu0 %v8684_v23  ;;  %v6630_v32 = vld [vmem:[#allocation12 + $0x60] sm:$0xff]  ;;  %v6629_v23 = vld [vmem:[#allocation12 + $0x58] sm:$0xff] }
 0xdfc   :  { %6452 = vmatpush2.bf16.msra.mxu1 %v8679_v38  ;;  %6491 = vmatpush2.bf16.msra.mxu0 %v8682_v60  ;;  %v6628_v38 = vld [vmem:[#allocation12 + $0x50] sm:$0xff]  ;;  %v6627_v60 = vld [vmem:[#allocation12 + $0x48] sm:$0xff] }
 0xdfd   :  { %6453 = vmatprep.subr.bf16.mxu1 %v8687_v2  ;;  %6492 = vmatprep.subr.bf16.mxu0 %v8690_v1  ;;  %v6626_v2 = vld [vmem:[#allocation12 + $0x40] sm:$0xff]  ;;  %v6625_v1 = vld [vmem:[#allocation12 + $0x38] sm:$0xff] }
 0xe00   :  { %6454 = vmatpush2.bf16.msra.mxu1 %v8685_v11  ;;  %6493 = vmatpush2.bf16.msra.mxu0 %v8688_v12 }
 0xe01   :  { %6455 = vmatprep.subr.bf16.mxu1 %v8693_v41  ;;  %6494 = vmatprep.subr.bf16.mxu0 %v8696_v51 }
 0xe04   :  { %6456 = vmatpush2.bf16.msra.mxu1 %v8691_v28  ;;  %6495 = vmatpush2.bf16.msra.mxu0 %v8694_v50 }
 0xe05   :  { %6457 = vmatprep.subr.bf16.mxu1 %v8699_v43  ;;  %6496 = vmatprep.subr.bf16.mxu0 %v8702_v61 }
 0xe08   :  { %6458 = vmatpush2.bf16.msra.mxu1 %v8697_v42  ;;  %6497 = vmatpush2.bf16.msra.mxu0 %v8700_v45 }
 0xe09   :  { %6459 = vmatprep.subr.bf16.mxu1 %v8705_v46  ;;  %6498 = vmatprep.subr.bf16.mxu0 %v8708_v52 }
 0xe0c   :  { %6460 = vmatpush2.bf16.msra.mxu1 %v8703_v47  ;;  %6499 = vmatpush2.bf16.msra.mxu0 %v8706_v13 }
 0xe0d   :  { %6500 = vmatprep.subr.bf16.mxu0 %v8711_v40  ;;  %7796 = vmatprep.subr.mxu1 %v11113_v22 }
 0xe0f   :  { %6462 = vmatmul.mubr.bf16.vlgmr.msra.gmra.mxu1 %v5517_v25 }
 0xe10   :  { %6501 = vmatpush2.bf16.msra.mxu0 %v8709_v49  ;;  %7797 = vmatpush3.msra.mxu1 %v11118_v31 }
 0xe11   :  { %6502 = vmatprep.subr.bf16.mxu0 %v8714_v15  ;;  %7798 = vmatprep.subr.mxu1 %v11123_v5 }
 0xe12   :  { %7799 = vmatpush3.msra.mxu1 %v11129_v21 }
 0xe13   :  { %7800 = vmatprep.subr.mxu1 %v11135_v7 }
 0xe14   :  { %6503 = vmatpush2.bf16.msra.mxu0 %v8712_v62  ;;  %7801 = vmatpush3.msra.mxu1 %v11141_v33 }
 0xe15   :  { %7802 = vmatprep.subr.mxu1 %v11147_v36  ;;  %6653 = vmatprep.subr.mxu0 %v6633_v6 }
 0xe16   :  { %7803 = vmatpush3.msra.mxu1 %v11153_v29 }
 0xe17   :  { %6505 = vmatmul.mubr.bf16.vlgmr.msra.gmra.mxu0 %v5573_v8  ;;  %7804 = vmatprep.subr.mxu1 %v11159_v3 }
 0xe18   :  { %6701 = vmatprep.mubr.f32.mxu0 %v11382_v16  ;;  %7805 = vmatpush3.msra.mxu1 %v11165_v37 }
 0xe19   :  { %7806 = vmatprep.subr.mxu1 %v11171_v56  ;;  %6654 = vmatpush1.msra.mxu0 %v6632_v26 }
 0xe1a   :  { %7807 = vmatpush3.msra.mxu1 %v11177_v17  ;;  %6655 = vmatprep.subr.mxu0 %v6631_v18 }
 0xe1b   :  { %7808 = vmatprep.subr.mxu1 %v11183_v4  ;;  %6656 = vmatpush1.msra.mxu0 %v6630_v32 }
 0xe1c   :  { %7809 = vmatpush3.msra.mxu1 %v11189_v35  ;;  %6657 = vmatprep.subr.mxu0 %v6629_v23 }
 0xe1d   :  { %7810 = vmatprep.subr.mxu1 %v11197_v10  ;;  %6658 = vmatpush1.msra.mxu0 %v6628_v38 }
 0xe1e   :  { %7811 = vmatpush3.msra.mxu1 %v11203_v55  ;;  %6659 = vmatprep.subr.mxu0 %v6627_v60 }
 0xe1f   :  { %7812 = vmatprep.subr.mxu1 %v11209_v14  ;;  %6660 = vmatpush1.msra.mxu0 %v6626_v2 }
 0xe20   :  { %7813 = vmatpush3.msra.mxu1 %v11215_v34  ;;  %6661 = vmatprep.subr.mxu0 %v6625_v1 }
 0xe21   :  { %7814 = vmatprep.subr.mxu1 %v11221_v58 }
 0xe22   :  { %7815 = vmatpush3.msra.mxu1 %v11227_v54 }
 0xe23   :  { %7816 = vmatprep.subr.mxu1 %v11233_v48 }
 0xe24   :  { %7817 = vmatpush3.msra.mxu1 %v11239_v53 }
 0xe25   :  { %7818 = vmatprep.subr.mxu1 %v11245_v59 }
 0xe26   :  { %7819 = vmatpush3.msra.mxu1 %v11251_v39 }
 0xe27   :  { %7820 = vmatprep.subr.mxu1 %v11257_v0 }
 0xe28   :  { %7821 = vmatpush3.msra.mxu1 %v11263_v24 }
 0xe29   :  { %7822 = vmatprep.subr.mxu1 %v11269_v9 }
 0xe2a   :  { %7823 = vmatpush3.msra.mxu1 %v11275_v19 }
 0xe2b   :  { %7824 = vmatprep.subr.mxu1 %v11281_v30 }
 0xe2c   :  { %7825 = vmatpush3.msra.mxu1 %v11287_v63 }
 0xe2d   :  { %7826 = vmatprep.subr.mxu1 %v11293_v57 }
 0xe2e   :  { %7827 = vmatpush3.msra.mxu1 %v11298_v27 }
 0xe2f   :  { %6824 = vmatprep.subr.mxu1 %v6633_v6 }
 0xe8f   :  { %v6377_v11 = vpop.f32.mrf.mxu1 }
 0xe91   :  { %v6379_v51 = vpop.f32.mrf.mxu1 }
 0xe93   :  { %v6381_v43 = vpop.f32.mrf.mxu1 }
 0xe95   :  { %v6383_v61 = vpop.f32.mrf.mxu1 }
 0xe97   :  { %v6420_v12 = vpop.f32.mrf.mxu0 }
 0xe98   :  { %v6421_v41 = vadd.f32 %v6420_v12, %v6377_v11 }
 0xe99   :  { %v6422_v28 = vpop.f32.mrf.mxu0 }
 0xe9a   :  { %v6423_v50 = vadd.f32 %v6422_v28, %v6379_v51 }
 0xe9b   :  { %v6424_v46 = vpop.f32.mrf.mxu0 }
 0xe9c   :  { %v6425_v11 = vadd.f32 %v6424_v46, %v6381_v43  ;;  %v6623_v43 = vld [vmem:[#allocation12 + $0x28] sm:$0xff]  ;;  %v11399_v46 = vld [vmem:[#allocation21_spill] sm:$0xff] }
 0xe9d   :  { %v6426_v13 = vpop.f32.mrf.mxu0 }
 0xe9e   :  { %v6427_v8 = vadd.f32 %v6426_v13, %v6383_v61  ;;  %v6624_v61 = vld [vmem:[#allocation12 + $0x30] sm:$0xff] }
 0xe9f   :  { %6662 = vmatpush1.msra.mxu0 %v6624_v61 }
 0xea0   :  { %6663 = vmatprep.subr.mxu0 %v6623_v43 }
 0xecf   :  { %v6463_v42 = vpop.f32.mrf.mxu1 }
 0xed0   :  { %v6464_v45 = vadd.f32 %v6463_v42, %v6421_v41  ;;  %v6622_v42 = vld [vmem:[#allocation12 + $0x20] sm:$0xff] }
 0xed1   :  { %v6465_v52 = vpop.f32.mrf.mxu1  ;;  %6664 = vmatpush1.msra.mxu0 %v6622_v42 }
 0xed2   :  { %v6466_v47 = vadd.f32 %v6465_v52, %v6423_v50  ;;  %v11398_v50 = vmov 0.0  }
 0xed3   :  { %v6467_v40 = vpop.f32.mrf.mxu1 }
 0xed4   :  { %v6468_v28 = vadd.f32 %v6467_v40, %v6425_v11  ;;  %v6923_v11 = vld [vmem:[#allocation13 + $0x8] sm:$0xff] }
 0xed5   :  { %v6469_v15 = vpop.f32.mrf.mxu1 }
 0xed6   :  { %v6470_v51 = vadd.f32 %v6469_v15, %v6427_v8 }
 0xed7   :  { %v6506_v25 = vpop.f32.mrf.mxu0 }
 0xed8   :  { %v11302_v49 = vadd.f32 %v6506_v25, %v6464_v45 }
 0xed9   :  { %v6508_v62 = vpop.f32.mrf.mxu0 }
 0xeda   :  { %v11304_v6 = vadd.f32 %v6508_v62, %v6466_v47 }
 0xedb   :  { %v6510_v12 = vpop.f32.mrf.mxu0 }
 0xedc   :  { %v6511_v41 = vadd.f32 %v6510_v12, %v6468_v28 }
 0xedd   :  { %v6512_v16 = vpop.f32.mrf.mxu0 }
 0xede   :  { %v6513_v44 = vadd.f32 %v6512_v16, %v6470_v51  ;;  %v6621_v16 = vld [vmem:[#allocation12 + $0x18] sm:$0xff]  ;;  %v6922_v51 = vld [vmem:[#allocation13] sm:$0xff] }
 0xedf   :  { %6665 = vmatprep.subr.mxu0 %v6621_v16 }
 0xee0   :  { %6611 = vmatprep.mubr.f32.mxu1 %v6513_v44  ;;  %v6620_v44 = vld [vmem:[#allocation12 + $0x10] sm:$0xff] }
 0xee1   :  { %6612 = vmatmul.mubr.f32.vlgmr.msra.gmra.mxu1 %v6511_v41  ;;  %6666 = vmatpush1.msra.mxu0 %v6620_v44 }
 0xee2   :  { %6825 = vmatpush1.msra.mxu1 %v6632_v26  ;;  %6872 = vmatprep.mubr.f32.mxu1 %v11398_v50  ;;  %v6619_v26 = vld [vmem:[#allocation12 + $0x8] sm:$0xff] }
 0xee3   :  { %6826 = vmatprep.subr.mxu1 %v6631_v18  ;;  %6667 = vmatprep.subr.mxu0 %v6619_v26  ;;  %v6618_v18 = vld [vmem:[#allocation12] sm:$0xff] }
 0xee4   :  { %6827 = vmatpush1.msra.mxu1 %v6630_v32  ;;  %6668 = vmatpush1.msra.mxu0 %v6618_v18 }
 0xee5   :  { %6828 = vmatprep.subr.mxu1 %v6629_v23  ;;  %7831 = vmatprep.subr.mxu0 %v11113_v22 }
 0xee6   :  { %6829 = vmatpush1.msra.mxu1 %v6628_v38 }
 0xee7   :  { %6830 = vmatprep.subr.mxu1 %v6627_v60 }
 0xee8   :  { %6831 = vmatpush1.msra.mxu1 %v6626_v2 }
 0xee9   :  { %6832 = vmatprep.subr.mxu1 %v6625_v1 }
 0xeea   :  { %6833 = vmatpush1.msra.mxu1 %v6624_v61 }
 0xeeb   :  { %6834 = vmatprep.subr.mxu1 %v6623_v43 }
 0xeec   :  { %6835 = vmatpush1.msra.mxu1 %v6622_v42 }
 0xeed   :  { %6836 = vmatprep.subr.mxu1 %v6621_v16 }
 0xeee   :  { %6837 = vmatpush1.msra.mxu1 %v6620_v44 }
 0xeef   :  { %6838 = vmatprep.subr.mxu1 %v6619_v26 }
 0xef0   :  { %6839 = vmatpush1.msra.mxu1 %v6618_v18 }
 0xfa1   :  { %v7828_v32 = vpop.f32.mrf.mxu1 }
 0xfa3   :  { %v7829_v23 = vpop.f32.mrf.mxu1 }
 0xfa4   :  { %v7830_v38 = vadd.f32 %v7829_v23, %v7828_v32 }
 0xfa6   :  { %v6617_v60 = vmul.f32 0.03125, %v7830_v38 }
 0xfa8   :  { %7652 = vmatmul.mubr.msk.f32.vlgmr.msra.gmra.mxu0 %vm1849_vm0, %v6617_v60 }
 0xfa9   :  { %7832 = vmatpush3.msra.mxu0 %v11118_v31 }
 0xfaa   :  { %7833 = vmatprep.subr.mxu0 %v11123_v5 }
 0xfab   :  { %7834 = vmatpush3.msra.mxu0 %v11129_v21 }
 0xfac   :  { %7835 = vmatprep.subr.mxu0 %v11135_v7 }
 0xfad   :  { %7836 = vmatpush3.msra.mxu0 %v11141_v33 }
 0xfae   :  { %7837 = vmatprep.subr.mxu0 %v11147_v36 }
 0xfaf   :  { %7838 = vmatpush3.msra.mxu0 %v11153_v29 }
 0xfb0   :  { %7839 = vmatprep.subr.mxu0 %v11159_v3 }
 0xfb1   :  { %7840 = vmatpush3.msra.mxu0 %v11165_v37 }
 0xfb2   :  { %7841 = vmatprep.subr.mxu0 %v11171_v56 }
 0xfb3   :  { %7842 = vmatpush3.msra.mxu0 %v11177_v17 }
 0xfb4   :  { %7843 = vmatprep.subr.mxu0 %v11183_v4 }
 0xfb5   :  { %7844 = vmatpush3.msra.mxu0 %v11189_v35 }
 0xfb6   :  { %7845 = vmatprep.subr.mxu0 %v11197_v10 }
 0xfb7   :  { %7846 = vmatpush3.msra.mxu0 %v11203_v55 }
 0xfb8   :  { %7847 = vmatprep.subr.mxu0 %v11209_v14 }
 0xfb9   :  { %7848 = vmatpush3.msra.mxu0 %v11215_v34 }
 0xfba   :  { %7849 = vmatprep.subr.mxu0 %v11221_v58 }
 0xfbb   :  { %7850 = vmatpush3.msra.mxu0 %v11227_v54 }
 0xfbc   :  { %7851 = vmatprep.subr.mxu0 %v11233_v48 }
 0xfbd   :  { %7852 = vmatpush3.msra.mxu0 %v11239_v53 }
 0xfbe   :  { %7853 = vmatprep.subr.mxu0 %v11245_v59 }
 0xfbf   :  { %7854 = vmatpush3.msra.mxu0 %v11251_v39 }
 0xfc0   :  { %7855 = vmatprep.subr.mxu0 %v11257_v0 }
 0xfc1   :  { %7856 = vmatpush3.msra.mxu0 %v11263_v24 }
 0xfc2   :  { %7857 = vmatprep.subr.mxu0 %v11269_v9  ;;  %v6889_v9 = vld [vmem:[#allocation10] ss:$2 sm:$0x3] }
 0xfc3   :  { %7858 = vmatpush3.msra.mxu0 %v11275_v19  ;;  %v6898_v52 = vrot.slane %v6889_v9, %v11399_v46 }
 0xfc4   :  { %7859 = vmatprep.subr.mxu0 %v11281_v30  ;;  %v6904_v30 = vld [vmem:[#allocation10 + $0x1] ss:$2 sm:$0x3] }
 0xfc5   :  { %7860 = vmatpush3.msra.mxu0 %v11287_v63  ;;  %v6909_v1 = vrot.slane %v6904_v30, %v10347_v20  ;;  %v6913_v40 = vrot.slane %v6904_v30, %v11399_v46 }
 0xfc6   :  { %7861 = vmatprep.subr.mxu0 %v11293_v57  ;;  %v6894_v57 = vrot.slane %v6889_v9, %v10347_v20 }
 0xfc7   :  { %7862 = vmatpush3.msra.mxu0 %v11298_v27 }
0x1068   :  { %v6703_v22 = vpop.f32.mrf.mxu0 }
0x1069   :  { %v6711_v31 = vrot.slane %v6703_v22, %v10347_v20 }
0x106a   :  { %v6705_v5 = vpop.f32.mrf.mxu0 }
0x106b   :  { %v6716_v21 = vsub.f32 %v11302_v49, %v6711_v31  ;;  %v6715_v7 = vrot.slane %v6705_v5, %v10347_v20 }
0x106d   :  { %v6718_v33 = vmul.f32 %v6716_v21, %v6716_v21  ;;  %v6717_v36 = vsub.f32 %v11304_v6, %v6715_v7 }
0x106f   :  { %v6720_v29 = vrot.slane %v6718_v33, 4  ;;  %v6719_v3 = vmul.f32 %v6717_v36, %v6717_v36 }
0x1071   :  { %v6721_v37 = vadd.f32 %v6720_v29, %v6718_v33  ;;  %v6726_v56 = vrot.slane %v6719_v3, 4 }
0x1073   :  { %v6722_v17 = vrot.slane %v6721_v37, 2  ;;  %v6727_v4 = vadd.f32 %v6726_v56, %v6719_v3 }
0x1075   :  { %v6723_v35 = vadd.f32 %v6722_v17, %v6721_v37  ;;  %v6728_v10 = vrot.slane %v6727_v4, 2 }
0x1077   :  { %v6729_v55 = vadd.f32 %v6728_v10, %v6727_v4  ;;  %v6724_v14 = vrot.slane %v6723_v35, 1 }
0x1079   :  { %v6730_v34 = vrot.slane %v6729_v55, 1  ;;  %v6725_v54 = vadd.f32 %v6724_v14, %v6723_v35 }
0x107b   :  { %v6731_v58 = vadd.f32 %v6730_v34, %v6729_v55 }
0x107d   :  { %6796 = vmatprep.mubr.f32.mxu0 %v6731_v58 }
0x107e   :  { %6797 = vmatmul.mubr.f32.vlgmr.msra.gmra.mxu0 %v6725_v54 }
0x113e   :  { %v7863_v48 = vpop.f32.mrf.mxu0 }
0x1140   :  { %v7864_v53 = vpop.f32.mrf.mxu0 }
0x1141   :  { %v7865_v59 = vadd.f32 %v7864_v53, %v7863_v48 }
0x1143   :  { %v6802_v39 = vmul.f32 0.03125, %v7865_v59 }
0x1145   :  { %v6803_v0 = vadd.f32 1e-05, %v6802_v39 }
0x1147   :  { %8719 = vrsqrt.f32 %v6803_v0 }
0x1154   :  { %v8720_v24 = vpop.eup %8719 }
0x1155   :  { %7653 = vmatmul.mubr.msk.f32.vlgmr.msra.gmra.mxu1 %vm1849_vm0, %v8720_v24 }
0x1156   :  { %6995 = vmatprep.mubr.f32.mxu1 %v11398_v50  ;;  %v6926_v50 = vld [vmem:[#allocation15] sm:$0x3] }
0x1215   :  { %v6874_v19 = vpop.f32.mrf.mxu1 }
0x1216   :  { %v6882_v63 = vrot.slane %v6874_v19, %v10347_v20 }
0x1217   :  { %v6876_v27 = vpop.f32.mrf.mxu1 }
0x1218   :  { %v6887_v2 = vmul.f32 %v6882_v63, %v6716_v21  ;;  %v6886_v45 = vrot.slane %v6876_v27, %v10347_v20 }
0x121a   :  { %v6901_v47 = vmul.f32 %v6894_v57, %v6887_v2  ;;  %v6888_v13 = vmul.f32 %v6886_v45, %v6717_v36 }
0x121c   :  { %v6916_v25 = vadd.f32 %v6909_v1, %v6901_v47  ;;  %v6902_v49 = vmul.f32 %v6898_v52, %v6888_v13 }
0x121e   :  { %v6918_v15 = vmul.f32 0.2, %v6916_v25  ;;  %v6917_v62 = vadd.f32 %v6913_v40, %v6902_v49 }
0x1220   :  { %v6919_v8 = vmul.f32 0.2, %v6917_v62  ;;  %v6920_v6 = vmax.f32 %v6916_v25, %v6918_v15 }
0x1222   :  { %v6921_v12 = vmax.f32 %v6917_v62, %v6919_v8  ;;  %v6924_v41 = vmul.f32 %v6922_v51, %v6920_v6 }
0x1224   :  { %v6925_v28 = vmul.f32 %v6923_v11, %v6921_v12 }
0x1226   :  { %6961 = vmatprep.subr.mxu1 %v6925_v28 }
0x1227   :  { %6962 = vmatpush1.msra.mxu1 %v6924_v41 }
0x1228   :  { %7654 = vmatmul.mubr.msk.f32.vlgmr.msra.gmra.mxu1 %vm6927_vm3, %v6926_v50 }
0x12e8   :  { %v6997_v20 = vpop.f32.mrf.mxu1 }
0x12e9   :  { %v7003_v43 = vsel %vm7002_vm4, %v6997_v20, 0.0 }
0x12ea   :  { %v6999_v61 = vpop.f32.mrf.mxu1 }
0x12eb   :  { %v7004_v42 = vsel %vm7002_vm4, %v6999_v61, 0.0 }
0x12ec   :  { %v7005_v16 = vadd.f32 %v7004_v42, %v7003_v43 }
0x12ee   :  { %7006 = vadd.xlane.f32.xlu0 %v7005_v16 }
0x1377   :  { %v7007_v44 = vpop.xlane.xlu0 %7006 }
0x1378   :  { %v7655_v26 = vmul.f32 -1.442695, %v7007_v44 }
0x137a   :  { %8721 = vpow2.f32 %v7655_v26 }
0x1387   :  { %v8722_v18 = vpop.eup %8721 }
0x1388   :  { %v7011_v32 = vadd.f32 1.0, %v8722_v18 }
0x138a   :  { %8723 = vrcp.f32 %v7011_v32 }
0x1397   :  { %v8724_v23 = vpop.eup %8723 }
0x1398   :  { %7015 = vst.msk [vmem:[%s11375_s20] sm:$0x3] %vm7014_vm5, %v8724_v23 }
0x1399   :  { %7020 = vsyncpa [#allocation3], 1 }
0x139a   :  { %7021 = vsyncpa [#allocation5], 1 }
0x139b   :  { %7022 = vsyncpa [#allocation8], 1 }
0x139c   :  { %7023 = vsyncpa [#allocation11], 1 }
0x139d   :  { %7024 = vsyncpa [#allocation14], 1 }

</bundles_post_ra>
